<compile_context>
chip_gen: v7x
topology: tpu7x:2x2x1
jax: 0.10.0
libtpu: 0.0.40
codegen_flags: <defaults>
</compile_context>

<pallas_src>
import functools

import jax
import jax.numpy as jnp
from jax import lax
from jax.experimental import pallas as pl
from jax.experimental.pallas import tpu as pltpu

_LOG2E = 1.4426950408889634


def _prenorm_attn_kernel(x_ref, wqkv_ref, bqkv_ref, wout_ref, bout_ref,
                         o_ref, qkv_ref, ctx_ref, *,
                         heads, dim_head, q_tile, eps, exp_dtype):
    """Grid = (batch, query-tile).

    x_ref:    (C, hw)         f32 NCHW slab (channels on sublanes, hw on lanes)
    wqkv_ref: (3*hidden, C)   bf16 to_qkv weight; GroupNorm gamma and the
                              attention scale * log2(e) pre-folded (q rows).
    bqkv_ref: (3*hidden, 1)   f32 folded GroupNorm beta bias (q rows scaled).
    wout_ref: (C, hidden)     bf16 to_out weight
    bout_ref: (C, 1)          f32 to_out bias
    o_ref:    (C, q_tile)     f32 output tile (lane-dense, directly NCHW)
    qkv_ref:  (3*hidden, hw)  bf16 scratch: QKV for the whole slab, computed
                              once per batch element (qt == 0) and reused.
    ctx_ref:  (hidden, q_tile) bf16 scratch: per-head contexts, head-major.
    """
    hidden = heads * dim_head
    qt = pl.program_id(1)

    # ---- GroupNorm(1, C) + QKV projection, once per batch element --------
    @pl.when(qt == 0)
    def _():
        x = x_ref[...]                                    # (C, hw) f32
        mean = jnp.mean(x)
        var = jnp.mean(jnp.square(x - mean))              # biased, like PyTorch
        xn = (x - mean) * lax.rsqrt(var + eps)            # affine folded into W/b
        qkv = jnp.dot(wqkv_ref[...], xn.astype(jnp.bfloat16),
                      preferred_element_type=jnp.float32)  # (3*hidden, hw)
        qkv_ref[...] = (qkv + bqkv_ref[...]).astype(jnp.bfloat16)

    q_start = pl.multiple_of(qt * q_tile, q_tile)

    # ---- per-head attention on this query tile ---------------------------
    # Static head loop; every sublane offset is a compile-time multiple of
    # dim_head=32, so all slices are (8,128)/(16,128)-tile aligned.  Each
    # head's context is written straight into ctx_ref (no concat copy).
    # TODO(synk): switch to lax.fori_loop over heads (3-D scratch) if peak
    # VMEM from the unrolled heads ever binds at very large hw on v7x.
    for h in range(heads):
        lo = h * dim_head
        q = qkv_ref[lo:lo + dim_head, pl.ds(q_start, q_tile)]          # (d, tq)
        k = qkv_ref[hidden + lo:hidden + lo + dim_head, :]             # (d, hw)
        v = qkv_ref[2 * hidden + lo:2 * hidden + lo + dim_head, :]     # (d, hw)

        # (kv, q) orientation: sim[j, i] = sum_d k[d, j] * q[d, i].
        # Softmax reductions then run down the sublane axis and the PV matmul
        # below is a canonical (d, kv) @ (kv, tq) with no transposed operand.
        sim = lax.dot_general(k, q, (((0,), (0,)), ((), ())),
                              preferred_element_type=jnp.float32)      # (hw, tq)
        m = jnp.max(sim, axis=0, keepdims=True)                        # (1, tq)
        # exp2: log2(e) is folded into the q rows on the host, so this equals
        # exp(sim_ref - max).  bf16 EUP on v6e/v7x, f32 on v5e and older.
        p = jnp.exp2((sim - m).astype(exp_dtype))                      # (hw, tq)
        denom = jnp.sum(p, axis=0, keepdims=True, dtype=jnp.float32)   # (1, tq)

        # Normalize AFTER the PV matmul: ctx = (v @ p) * 1/colsum(p).
        ctx = jnp.dot(v, p.astype(jnp.bfloat16),
                      preferred_element_type=jnp.float32)              # (d, tq)
        ctx = ctx * pl.reciprocal(denom, approx=True)
        ctx_ref[lo:lo + dim_head, :] = ctx.astype(jnp.bfloat16)

    # ---- to_out (1x1 conv with bias): (C, hidden) @ (hidden, tq) ----------
    out = jnp.dot(wout_ref[...], ctx_ref[...],
                  preferred_element_type=jnp.float32) + bout_ref[...]
    o_ref[...] = out.astype(o_ref.dtype)                  # lane-dense store


def _has_bf16_eup():
    """bf16 transcendentals are native on v6e / v7x; fall back to f32 otherwise."""
    try:
        kind = jax.devices()[0].device_kind.lower()
    except Exception:
        return False
    return any(tag in kind for tag in ("v6", "v7", "7x"))


def _pick_q_tile(hw):
    for t in (512, 256, 128):
        if hw % t == 0:
            return t
    # TODO(synk): mask/pad the hw remainder (padded keys must not reach the
    # softmax max/sum) for spatial sizes where hw is not a multiple of 128.
    return hw


def prenorm_attention_pallas(x_nchw, gamma, beta, w_qkv, w_out, b_out, *,
                             heads=4, dim_head=32, eps=1e-5, q_tile=None):
    """PreNorm(dim, Attention(dim, heads, dim_head)).forward(x).

    x_nchw: (B, C, H, W) f32
    gamma, beta: (C,) GroupNorm(1, C) affine params
    w_qkv: (3*hidden, C, 1, 1) conv weight (no bias)
    w_out: (C, hidden, 1, 1) conv weight;  b_out: (C,)
    """
    B, C, H, W = x_nchw.shape
    hidden = heads * dim_head
    hw = H * W
    if q_tile is None:
        q_tile = _pick_q_tile(hw)
    assert hw % q_tile == 0, (hw, q_tile)
    nq = hw // q_tile
    scale = dim_head ** (-0.5)

    # NCHW -> (B, C, hw): reshape only, no transpose (channels-on-sublanes,
    # hw-on-lanes layout in the kernel, output comes back already NCHW).
    x = x_nchw.reshape(B, C, hw)

    # Fold GroupNorm affine into the 1x1-conv QKV weights:
    #     W @ (xn*gamma + beta) == (W * gamma) @ xn + (W @ beta)
    # and fold the attention scale * log2(e) into the q rows (weight + bias)
    # so the kernel's softmax can use exp2 directly.
    w = w_qkv.reshape(3 * hidden, C).astype(jnp.float32)
    row_scale = jnp.concatenate(
        [jnp.full((hidden, 1), scale * _LOG2E, jnp.float32),
         jnp.ones((2 * hidden, 1), jnp.float32)], axis=0)
    w_fold = w * gamma.reshape(1, C).astype(jnp.float32) * row_scale
    b_fold = (w @ beta.reshape(C, 1).astype(jnp.float32)) * row_scale

    wqkv_bf = w_fold.astype(jnp.bfloat16)
    wout_bf = w_out.reshape(C, hidden).astype(jnp.bfloat16)
    bout2 = b_out.reshape(C, 1).astype(jnp.float32)

    exp_dtype = jnp.bfloat16 if _has_bf16_eup() else jnp.float32
    kernel = functools.partial(_prenorm_attn_kernel, heads=heads,
                               dim_head=dim_head, q_tile=q_tile, eps=eps,
                               exp_dtype=exp_dtype)

    # Explicit VMEM budget (defaults are only 16 MiB on v5e / 32 MiB on v6e+).
    est = (
        2 * C * hw * 4                              # x slab, double-buffered
        + 2 * C * q_tile * 4                        # out tiles, double-buffered
        + 2 * (3 * hidden * C + C * hidden) * 2     # weights, double-buffered
        + 2 * (3 * hidden + C) * 128 * 4            # biases (lane-padded)
        + 3 * hidden * hw * (2 + 4)                 # qkv scratch + f32 pre-cast
        + hidden * q_tile * 2                       # ctx scratch
        + heads * hw * q_tile * (4 + 2)             # sim f32 + p (worst case)
        + 2 * C * hw * 4                            # GroupNorm temporaries
    )
    vmem_limit = int(min(max(3 * est // 2, 32 << 20), 100 << 20))

    out = pl.pallas_call(
        kernel,
        out_shape=jax.ShapeDtypeStruct((B, C, hw), x.dtype),
        grid_spec=pltpu.PrefetchScalarGridSpec(
            num_scalar_prefetch=0,
            grid=(B, nq),                            # batch x query tiles
            in_specs=[
                # x: index_map constant along the q-tile axis -> the slab is
                # DMA'd once per batch element (default depth-2 pipelining).
                pl.BlockSpec((pl.Squeezed(), C, hw), lambda b, q: (b, 0, 0)),
                # Batch-invariant params (block (0,0) every step).  NOTE:
                # pipeline_mode=pl.Buffered(1) would single-buffer them and
                # halve their (small) footprint; left default for portability.
                pl.BlockSpec((3 * hidden, C), lambda b, q: (0, 0)),
                pl.BlockSpec((3 * hidden, 1), lambda b, q: (0, 0)),
                pl.BlockSpec((C, hidden), lambda b, q: (0, 0)),
                pl.BlockSpec((C, 1), lambda b, q: (0, 0)),
            ],
            out_specs=pl.BlockSpec((pl.Squeezed(), C, q_tile),
                                   lambda b, q: (b, 0, q)),
            scratch_shapes=[
                pltpu.VMEM((3 * hidden, hw), jnp.bfloat16),   # QKV cache
                pltpu.VMEM((hidden, q_tile), jnp.bfloat16),   # head contexts
            ],
        ),
        # Batch shards across TensorCores; the q-tile axis must stay
        # "arbitrary" because the QKV scratch is filled at qt == 0 and reused.
        # TODO(synk): for B == 1 on v7x, recompute QKV per tile so the q-tile
        # axis can be marked "parallel" and the second core is not idle.
        compiler_params=pltpu.CompilerParams(
            dimension_semantics=("parallel", "arbitrary"),
            vmem_limit_bytes=vmem_limit),
    )(x, wqkv_bf, b_fold, wout_bf, bout2)

    return out.reshape(B, C, H, W)


def prenorm_attention_ref(x, gamma, beta, w_qkv, w_out, b_out, *,
                          heads=4, dim_head=32, eps=1e-5):
    """Plain-JAX f32 reference mirroring the PyTorch forward exactly."""
    B, C, H, W = x.shape
    hidden = heads * dim_head
    scale = dim_head ** (-0.5)

    # GroupNorm(1, C)
    xf = x.reshape(B, -1)
    mean = xf.mean(axis=1).reshape(B, 1, 1, 1)
    var = xf.var(axis=1).reshape(B, 1, 1, 1)          # biased, like PyTorch
    xn = (x - mean) / jnp.sqrt(var + eps)
    xn = xn * gamma.reshape(1, C, 1, 1) + beta.reshape(1, C, 1, 1)

    # Attention (the wrapped fn)
    qkv = jnp.einsum('bchw,oc->bohw', xn, w_qkv.reshape(3 * hidden, C))
    q, k, v = jnp.split(qkv, 3, axis=1)
    rearr = lambda t: t.reshape(B, heads, dim_head, H * W)
    q, k, v = rearr(q), rearr(k), rearr(v)
    q = q * scale
    sim = jnp.einsum('bhdi,bhdj->bhij', q, k)
    sim = sim - jnp.max(sim, axis=-1, keepdims=True)
    attn = jax.nn.softmax(sim, axis=-1)
    out = jnp.einsum('bhij,bhdj->bhid', attn, v)              # (B, h, hw, d)
    out = jnp.transpose(out, (0, 1, 3, 2)).reshape(B, hidden, H, W)
    return (jnp.einsum('bchw,oc->bohw', out, w_out.reshape(C, hidden))
            + b_out.reshape(1, C, 1, 1))


if __name__ == "__main__":
    B, dim, H, W = 2, 8, 16, 16
    heads, dim_head = 4, 32
    hidden = heads * dim_head

    key = jax.random.PRNGKey(0)
    kx, kg, kb, kqkv, kwo, kbo = jax.random.split(key, 6)

    x = jax.random.normal(kx, (B, dim, H, W), dtype=jnp.float32)
    gamma = 1.0 + 0.1 * jax.random.normal(kg, (dim,), dtype=jnp.float32)
    beta = 0.1 * jax.random.normal(kb, (dim,), dtype=jnp.float32)
    # Conv2d weights: to_qkv (3*hidden, dim, 1, 1) no bias;
    # to_out (dim, hidden, 1, 1) with bias (dim,)
    w_qkv = 0.05 * jax.random.normal(kqkv, (3 * hidden, dim, 1, 1), dtype=jnp.float32)
    w_out = 0.05 * jax.random.normal(kwo, (dim, hidden, 1, 1), dtype=jnp.float32)
    b_out = 0.1 * jax.random.normal(kbo, (dim,), dtype=jnp.float32)

    # q_tile=128 so the 16x16 test exercises two query tiles per batch element
    # (QKV-scratch reuse across tiles, tiled lane-dense output stores).
    y = prenorm_attention_pallas(x, gamma, beta, w_qkv, w_out, b_out,
                                 heads=heads, dim_head=dim_head, q_tile=128)
    y = jax.block_until_ready(y)

    y_ref = prenorm_attention_ref(x, gamma, beta, w_qkv, w_out, b_out,
                                  heads=heads, dim_head=dim_head)
    assert y.shape == (B, dim, H, W), y.shape
    err = float(jnp.max(jnp.abs(y - y_ref)))
    # bf16 MXU matmuls, exp2 softmax and EUP approx reciprocal vs pure-f32 ref
    assert err < 5e-3, err

    print("KERNEL_OK")
</pallas_src>

<mosaic_0001>
module attributes {stable_mosaic.version = 11 : i64} {
  func.func @_prenorm_attn_kernel(%arg0: i32, %arg1: i32, %arg2: memref<1x8x256xf32, #tpu.memory_space<vmem>>, %arg3: memref<384x8xbf16, #tpu.memory_space<vmem>>, %arg4: memref<384x1xf32, #tpu.memory_space<vmem>>, %arg5: memref<8x128xbf16, #tpu.memory_space<vmem>>, %arg6: memref<8x1xf32, #tpu.memory_space<vmem>>, %arg7: memref<1x8x128xf32, #tpu.memory_space<vmem>>, %arg8: memref<384x256xbf16, #tpu.memory_space<vmem>>, %arg9: memref<128x128xbf16, #tpu.memory_space<vmem>>) attributes {dimension_semantics = [#tpu.dimension_semantics<parallel>, #tpu.dimension_semantics<arbitrary>], iteration_bounds = array<i64: 2, 2>, scalar_prefetch = 0 : i64, scratch_operands = 2 : i64, tpu.core_type = #tpu.core_type<tc>, window_params = [{transform_indices = @transform_0, window_bounds = array<i64: 1, 8, 256>}, {pipeline_mode = #tpu.pipeline_mode<synchronous>, transform_indices = @transform_1, window_bounds = array<i64: 384, 8>}, {pipeline_mode = #tpu.pipeline_mode<synchronous>, transform_indices = @transform_2, window_bounds = array<i64: 384, 1>}, {pipeline_mode = #tpu.pipeline_mode<synchronous>, transform_indices = @transform_3, window_bounds = array<i64: 8, 128>}, {pipeline_mode = #tpu.pipeline_mode<synchronous>, transform_indices = @transform_4, window_bounds = array<i64: 8, 1>}, {transform_indices = @transform_5, window_bounds = array<i64: 1, 8, 128>}]} {
    %c0_i32 = arith.constant 0 : i32
    %0 = arith.cmpi eq, %arg1, %c0_i32 : i32
    %1 = arith.extui %0 : i1 to i32
    %c0_i32_0 = arith.constant 0 : i32
    %2 = arith.cmpi ne, %1, %c0_i32_0 : i32
    scf.if %2 {
      %c0_42 = arith.constant 0 : index
      %c0_43 = arith.constant 0 : index
      %c0_44 = arith.constant 0 : index
      %90 = vector.load %arg2[%c0_42, %c0_43, %c0_44] : memref<1x8x256xf32, #tpu.memory_space<vmem>>, vector<1x8x256xf32>
      %91 = vector.shape_cast %90 : vector<1x8x256xf32> to vector<8x256xf32>
      %92 = vector.shape_cast %91 : vector<8x256xf32> to vector<1x8x256xf32>
      %cst_45 = arith.constant dense<0.000000e+00> : vector<1xf32>
      %93 = vector.multi_reduction <add>, %92, %cst_45 [1, 2] : vector<1x8x256xf32> to vector<1xf32>
      %94 = vector.shape_cast %93 : vector<1xf32> to vector<1x1x1xf32>
      %95 = vector.extract %94[0, 0, 0] : f32 from vector<1x1x1xf32>
      %cst_46 = arith.constant 2.048000e+03 : f32
      %96 = arith.divf %95, %cst_46 : f32
      %97 = vector.broadcast %96 : f32 to vector<8x256xf32>
      %98 = arith.subf %91, %97 : vector<8x256xf32>
      %99 = arith.mulf %98, %98 : vector<8x256xf32>
      %100 = vector.shape_cast %99 : vector<8x256xf32> to vector<1x8x256xf32>
      %cst_47 = arith.constant dense<0.000000e+00> : vector<1xf32>
      %101 = vector.multi_reduction <add>, %100, %cst_47 [1, 2] : vector<1x8x256xf32> to vector<1xf32>
      %102 = vector.shape_cast %101 : vector<1xf32> to vector<1x1x1xf32>
      %103 = vector.extract %102[0, 0, 0] : f32 from vector<1x1x1xf32>
      %cst_48 = arith.constant 2.048000e+03 : f32
      %104 = arith.divf %103, %cst_48 : f32
      %105 = vector.broadcast %96 : f32 to vector<8x256xf32>
      %106 = arith.subf %91, %105 : vector<8x256xf32>
      %cst_49 = arith.constant 9.99999974E-6 : f32
      %107 = arith.addf %104, %cst_49 : f32
      %108 = math.rsqrt %107 : f32
      %109 = vector.broadcast %108 : f32 to vector<8x256xf32>
      %110 = arith.mulf %106, %109 : vector<8x256xf32>
      %c0_50 = arith.constant 0 : index
      %c0_51 = arith.constant 0 : index
      %111 = vector.load %arg3[%c0_50, %c0_51] : memref<384x8xbf16, #tpu.memory_space<vmem>>, vector<384x8xbf16>
      %112 = arith.truncf %110 : vector<8x256xf32> to vector<8x256xbf16>
      %cst_52 = arith.constant dense<0.000000e+00> : vector<384x256xf32>
      %113 = tpu.matmul %111, %112, %cst_52 {dimension_numbers = #tpu.dot_dimension_numbers<[1], [0], [0], [1], [0, 0, 1, 1], [], []>} : vector<384x8xbf16>, vector<8x256xbf16>, vector<384x256xf32> -> vector<384x256xf32>
      %c0_53 = arith.constant 0 : index
      %c0_54 = arith.constant 0 : index
      %114 = vector.load %arg4[%c0_53, %c0_54] : memref<384x1xf32, #tpu.memory_space<vmem>>, vector<384x1xf32>
      %115 = vector.broadcast %114 : vector<384x1xf32> to vector<384x256xf32>
      %116 = arith.addf %113, %115 : vector<384x256xf32>
      %117 = arith.truncf %116 : vector<384x256xf32> to vector<384x256xbf16>
      %c0_55 = arith.constant 0 : index
      %c0_56 = arith.constant 0 : index
      %118 = vector.load %arg8[%c0_55, %c0_56] : memref<384x256xbf16, #tpu.memory_space<vmem>>, vector<384x256xbf16>
      tpu.vector_store %arg8[%c0_55, %c0_56], %117 {strides = array<i32>} : memref<384x256xbf16, #tpu.memory_space<vmem>>, vector<384x256xbf16>,
    } else {
    }
    %c128_i32 = arith.constant 128 : i32
    %3 = arith.muli %arg1, %c128_i32 : i32
    %4 = tpu.assume_multiple %3, 128 : i32
    %c0 = arith.constant 0 : index
    %5 = arith.index_cast %4 : i32 to index
    %6 = vector.load %arg8[%c0, %5] : memref<384x256xbf16, #tpu.memory_space<vmem>>, vector<32x128xbf16>
    %c128 = arith.constant 128 : index
    %c0_1 = arith.constant 0 : index
    %7 = vector.load %arg8[%c128, %c0_1] : memref<384x256xbf16, #tpu.memory_space<vmem>>, vector<32x256xbf16>
    %c256 = arith.constant 256 : index
    %c0_2 = arith.constant 0 : index
    %8 = vector.load %arg8[%c256, %c0_2] : memref<384x256xbf16, #tpu.memory_space<vmem>>, vector<32x256xbf16>
    %cst = arith.constant dense<0.000000e+00> : vector<256x128xf32>
    %9 = tpu.matmul %7, %6, %cst {dimension_numbers = #tpu.dot_dimension_numbers<[0], [0], [1], [1], [0, 1, 1, 1], [], []>} : vector<32x256xbf16>, vector<32x128xbf16>, vector<256x128xf32> -> vector<256x128xf32>
    %cst_3 = arith.constant dense<0xFF800000> : vector<128xf32>
    %10 = vector.multi_reduction <maximumf>, %9, %cst_3 [0] : vector<256x128xf32> to vector<128xf32>
    %11 = vector.shape_cast %10 : vector<128xf32> to vector<1x128xf32>
    %12 = vector.broadcast %11 : vector<1x128xf32> to vector<256x128xf32>
    %13 = arith.subf %9, %12 : vector<256x128xf32>
    %14 = math.exp2 %13 : vector<256x128xf32>
    %cst_4 = arith.constant dense<0.000000e+00> : vector<128xf32>
    %15 = vector.multi_reduction <add>, %14, %cst_4 [0] : vector<256x128xf32> to vector<128xf32>
    %16 = vector.shape_cast %15 : vector<128xf32> to vector<1x128xf32>
    %17 = arith.truncf %14 : vector<256x128xf32> to vector<256x128xbf16>
    %cst_5 = arith.constant dense<0.000000e+00> : vector<32x128xf32>
    %18 = tpu.matmul %8, %17, %cst_5 {dimension_numbers = #tpu.dot_dimension_numbers<[1], [0], [0], [1], [0, 0, 1, 1], [], []>} : vector<32x256xbf16>, vector<256x128xbf16>, vector<32x128xf32> -> vector<32x128xf32>
    %19 = tpu.reciprocal %16 {approx = true} : vector<1x128xf32> -> vector<1x128xf32>
    %20 = vector.broadcast %19 : vector<1x128xf32> to vector<32x128xf32>
    %21 = arith.mulf %18, %20 : vector<32x128xf32>
    %22 = arith.truncf %21 : vector<32x128xf32> to vector<32x128xbf16>
    %c0_6 = arith.constant 0 : index
    %c0_7 = arith.constant 0 : index
    %23 = vector.load %arg9[%c0_6, %c0_7] : memref<128x128xbf16, #tpu.memory_space<vmem>>, vector<32x128xbf16>
    tpu.vector_store %arg9[%c0_6, %c0_7], %22 {strides = array<i32>} : memref<128x128xbf16, #tpu.memory_space<vmem>>, vector<32x128xbf16>,
    %c32 = arith.constant 32 : index
    %24 = arith.index_cast %4 : i32 to index
    %25 = vector.load %arg8[%c32, %24] : memref<384x256xbf16, #tpu.memory_space<vmem>>, vector<32x128xbf16>
    %c160 = arith.constant 160 : index
    %c0_8 = arith.constant 0 : index
    %26 = vector.load %arg8[%c160, %c0_8] : memref<384x256xbf16, #tpu.memory_space<vmem>>, vector<32x256xbf16>
    %c288 = arith.constant 288 : index
    %c0_9 = arith.constant 0 : index
    %27 = vector.load %arg8[%c288, %c0_9] : memref<384x256xbf16, #tpu.memory_space<vmem>>, vector<32x256xbf16>
    %cst_10 = arith.constant dense<0.000000e+00> : vector<256x128xf32>
    %28 = tpu.matmul %26, %25, %cst_10 {dimension_numbers = #tpu.dot_dimension_numbers<[0], [0], [1], [1], [0, 1, 1, 1], [], []>} : vector<32x256xbf16>, vector<32x128xbf16>, vector<256x128xf32> -> vector<256x128xf32>
    %cst_11 = arith.constant dense<0xFF800000> : vector<128xf32>
    %29 = vector.multi_reduction <maximumf>, %28, %cst_11 [0] : vector<256x128xf32> to vector<128xf32>
    %30 = vector.shape_cast %29 : vector<128xf32> to vector<1x128xf32>
    %31 = vector.broadcast %30 : vector<1x128xf32> to vector<256x128xf32>
    %32 = arith.subf %28, %31 : vector<256x128xf32>
    %33 = math.exp2 %32 : vector<256x128xf32>
    %cst_12 = arith.constant dense<0.000000e+00> : vector<128xf32>
    %34 = vector.multi_reduction <add>, %33, %cst_12 [0] : vector<256x128xf32> to vector<128xf32>
    %35 = vector.shape_cast %34 : vector<128xf32> to vector<1x128xf32>
    %36 = arith.truncf %33 : vector<256x128xf32> to vector<256x128xbf16>
    %cst_13 = arith.constant dense<0.000000e+00> : vector<32x128xf32>
    %37 = tpu.matmul %27, %36, %cst_13 {dimension_numbers = #tpu.dot_dimension_numbers<[1], [0], [0], [1], [0, 0, 1, 1], [], []>} : vector<32x256xbf16>, vector<256x128xbf16>, vector<32x128xf32> -> vector<32x128xf32>
    %38 = tpu.reciprocal %35 {approx = true} : vector<1x128xf32> -> vector<1x128xf32>
    %39 = vector.broadcast %38 : vector<1x128xf32> to vector<32x128xf32>
    %40 = arith.mulf %37, %39 : vector<32x128xf32>
    %41 = arith.truncf %40 : vector<32x128xf32> to vector<32x128xbf16>
    %c32_14 = arith.constant 32 : index
    %c0_15 = arith.constant 0 : index
    %42 = vector.load %arg9[%c32_14, %c0_15] : memref<128x128xbf16, #tpu.memory_space<vmem>>, vector<32x128xbf16>
    tpu.vector_store %arg9[%c32_14, %c0_15], %41 {strides = array<i32>} : memref<128x128xbf16, #tpu.memory_space<vmem>>, vector<32x128xbf16>,
    %c64 = arith.constant 64 : index
    %43 = arith.index_cast %4 : i32 to index
    %44 = vector.load %arg8[%c64, %43] : memref<384x256xbf16, #tpu.memory_space<vmem>>, vector<32x128xbf16>
    %c192 = arith.constant 192 : index
    %c0_16 = arith.constant 0 : index
    %45 = vector.load %arg8[%c192, %c0_16] : memref<384x256xbf16, #tpu.memory_space<vmem>>, vector<32x256xbf16>
    %c320 = arith.constant 320 : index
    %c0_17 = arith.constant 0 : index
    %46 = vector.load %arg8[%c320, %c0_17] : memref<384x256xbf16, #tpu.memory_space<vmem>>, vector<32x256xbf16>
    %cst_18 = arith.constant dense<0.000000e+00> : vector<256x128xf32>
    %47 = tpu.matmul %45, %44, %cst_18 {dimension_numbers = #tpu.dot_dimension_numbers<[0], [0], [1], [1], [0, 1, 1, 1], [], []>} : vector<32x256xbf16>, vector<32x128xbf16>, vector<256x128xf32> -> vector<256x128xf32>
    %cst_19 = arith.constant dense<0xFF800000> : vector<128xf32>
    %48 = vector.multi_reduction <maximumf>, %47, %cst_19 [0] : vector<256x128xf32> to vector<128xf32>
    %49 = vector.shape_cast %48 : vector<128xf32> to vector<1x128xf32>
    %50 = vector.broadcast %49 : vector<1x128xf32> to vector<256x128xf32>
    %51 = arith.subf %47, %50 : vector<256x128xf32>
    %52 = math.exp2 %51 : vector<256x128xf32>
    %cst_20 = arith.constant dense<0.000000e+00> : vector<128xf32>
    %53 = vector.multi_reduction <add>, %52, %cst_20 [0] : vector<256x128xf32> to vector<128xf32>
    %54 = vector.shape_cast %53 : vector<128xf32> to vector<1x128xf32>
    %55 = arith.truncf %52 : vector<256x128xf32> to vector<256x128xbf16>
    %cst_21 = arith.constant dense<0.000000e+00> : vector<32x128xf32>
    %56 = tpu.matmul %46, %55, %cst_21 {dimension_numbers = #tpu.dot_dimension_numbers<[1], [0], [0], [1], [0, 0, 1, 1], [], []>} : vector<32x256xbf16>, vector<256x128xbf16>, vector<32x128xf32> -> vector<32x128xf32>
    %57 = tpu.reciprocal %54 {approx = true} : vector<1x128xf32> -> vector<1x128xf32>
    %58 = vector.broadcast %57 : vector<1x128xf32> to vector<32x128xf32>
    %59 = arith.mulf %56, %58 : vector<32x128xf32>
    %60 = arith.truncf %59 : vector<32x128xf32> to vector<32x128xbf16>
    %c64_22 = arith.constant 64 : index
    %c0_23 = arith.constant 0 : index
    %61 = vector.load %arg9[%c64_22, %c0_23] : memref<128x128xbf16, #tpu.memory_space<vmem>>, vector<32x128xbf16>
    tpu.vector_store %arg9[%c64_22, %c0_23], %60 {strides = array<i32>} : memref<128x128xbf16, #tpu.memory_space<vmem>>, vector<32x128xbf16>,
    %c96 = arith.constant 96 : index
    %62 = arith.index_cast %4 : i32 to index
    %63 = vector.load %arg8[%c96, %62] : memref<384x256xbf16, #tpu.memory_space<vmem>>, vector<32x128xbf16>
    %c224 = arith.constant 224 : index
    %c0_24 = arith.constant 0 : index
    %64 = vector.load %arg8[%c224, %c0_24] : memref<384x256xbf16, #tpu.memory_space<vmem>>, vector<32x256xbf16>
    %c352 = arith.constant 352 : index
    %c0_25 = arith.constant 0 : index
    %65 = vector.load %arg8[%c352, %c0_25] : memref<384x256xbf16, #tpu.memory_space<vmem>>, vector<32x256xbf16>
    %cst_26 = arith.constant dense<0.000000e+00> : vector<256x128xf32>
    %66 = tpu.matmul %64, %63, %cst_26 {dimension_numbers = #tpu.dot_dimension_numbers<[0], [0], [1], [1], [0, 1, 1, 1], [], []>} : vector<32x256xbf16>, vector<32x128xbf16>, vector<256x128xf32> -> vector<256x128xf32>
    %cst_27 = arith.constant dense<0xFF800000> : vector<128xf32>
    %67 = vector.multi_reduction <maximumf>, %66, %cst_27 [0] : vector<256x128xf32> to vector<128xf32>
    %68 = vector.shape_cast %67 : vector<128xf32> to vector<1x128xf32>
    %69 = vector.broadcast %68 : vector<1x128xf32> to vector<256x128xf32>
    %70 = arith.subf %66, %69 : vector<256x128xf32>
    %71 = math.exp2 %70 : vector<256x128xf32>
    %cst_28 = arith.constant dense<0.000000e+00> : vector<128xf32>
    %72 = vector.multi_reduction <add>, %71, %cst_28 [0] : vector<256x128xf32> to vector<128xf32>
    %73 = vector.shape_cast %72 : vector<128xf32> to vector<1x128xf32>
    %74 = arith.truncf %71 : vector<256x128xf32> to vector<256x128xbf16>
    %cst_29 = arith.constant dense<0.000000e+00> : vector<32x128xf32>
    %75 = tpu.matmul %65, %74, %cst_29 {dimension_numbers = #tpu.dot_dimension_numbers<[1], [0], [0], [1], [0, 0, 1, 1], [], []>} : vector<32x256xbf16>, vector<256x128xbf16>, vector<32x128xf32> -> vector<32x128xf32>
    %76 = tpu.reciprocal %73 {approx = true} : vector<1x128xf32> -> vector<1x128xf32>
    %77 = vector.broadcast %76 : vector<1x128xf32> to vector<32x128xf32>
    %78 = arith.mulf %75, %77 : vector<32x128xf32>
    %79 = arith.truncf %78 : vector<32x128xf32> to vector<32x128xbf16>
    %c96_30 = arith.constant 96 : index
    %c0_31 = arith.constant 0 : index
    %80 = vector.load %arg9[%c96_30, %c0_31] : memref<128x128xbf16, #tpu.memory_space<vmem>>, vector<32x128xbf16>
    tpu.vector_store %arg9[%c96_30, %c0_31], %79 {strides = array<i32>} : memref<128x128xbf16, #tpu.memory_space<vmem>>, vector<32x128xbf16>,
    %c0_32 = arith.constant 0 : index
    %c0_33 = arith.constant 0 : index
    %81 = vector.load %arg5[%c0_32, %c0_33] : memref<8x128xbf16, #tpu.memory_space<vmem>>, vector<8x128xbf16>
    %c0_34 = arith.constant 0 : index
    %c0_35 = arith.constant 0 : index
    %82 = vector.load %arg9[%c0_34, %c0_35] : memref<128x128xbf16, #tpu.memory_space<vmem>>, vector<128x128xbf16>
    %cst_36 = arith.constant dense<0.000000e+00> : vector<8x128xf32>
    %83 = tpu.matmul %81, %82, %cst_36 {dimension_numbers = #tpu.dot_dimension_numbers<[1], [0], [0], [1], [0, 0, 1, 1], [], []>} : vector<8x128xbf16>, vector<128x128xbf16>, vector<8x128xf32> -> vector<8x128xf32>
    %c0_37 = arith.constant 0 : index
    %c0_38 = arith.constant 0 : index
    %84 = vector.load %arg6[%c0_37, %c0_38] : memref<8x1xf32, #tpu.memory_space<vmem>>, vector<8x1xf32>
    %85 = vector.broadcast %84 : vector<8x1xf32> to vector<8x128xf32>
    %86 = arith.addf %83, %85 : vector<8x128xf32>
    %c0_39 = arith.constant 0 : index
    %c0_40 = arith.constant 0 : index
    %c0_41 = arith.constant 0 : index
    %87 = vector.load %arg7[%c0_39, %c0_40, %c0_41] : memref<1x8x128xf32, #tpu.memory_space<vmem>>, vector<1x8x128xf32>
    %88 = vector.shape_cast %87 : vector<1x8x128xf32> to vector<8x128xf32>
    %89 = vector.shape_cast %86 : vector<8x128xf32> to vector<1x8x128xf32>
    tpu.vector_store %arg7[%c0_39, %c0_40, %c0_41], %89 {strides = array<i32>} : memref<1x8x128xf32, #tpu.memory_space<vmem>>, vector<1x8x128xf32>,
    return
  }
  func.func @transform_0(%arg0: i32, %arg1: i32) -> (i32, i32, i32) {
    %c0_i32 = arith.constant 0 : i32
    %c0_i32_0 = arith.constant 0 : i32
    %c0_i32_1 = arith.constant 0 : i32
    return %arg0, %c0_i32, %c0_i32_0 : i32, i32, i32
  }
  func.func @transform_1(%arg0: i32, %arg1: i32) -> (i32, i32) {
    %c0_i32 = arith.constant 0 : i32
    %c0_i32_0 = arith.constant 0 : i32
    %c0_i32_1 = arith.constant 0 : i32
    return %c0_i32, %c0_i32_0 : i32, i32
  }
  func.func @transform_2(%arg0: i32, %arg1: i32) -> (i32, i32) {
    %c0_i32 = arith.constant 0 : i32
    %c0_i32_0 = arith.constant 0 : i32
    %c0_i32_1 = arith.constant 0 : i32
    return %c0_i32, %c0_i32_0 : i32, i32
  }
  func.func @transform_3(%arg0: i32, %arg1: i32) -> (i32, i32) {
    %c0_i32 = arith.constant 0 : i32
    %c0_i32_0 = arith.constant 0 : i32
    %c0_i32_1 = arith.constant 0 : i32
    return %c0_i32, %c0_i32_0 : i32, i32
  }
  func.func @transform_4(%arg0: i32, %arg1: i32) -> (i32, i32) {
    %c0_i32 = arith.constant 0 : i32
    %c0_i32_0 = arith.constant 0 : i32
    %c0_i32_1 = arith.constant 0 : i32
    return %c0_i32, %c0_i32_0 : i32, i32
  }
  func.func @transform_5(%arg0: i32, %arg1: i32) -> (i32, i32, i32) {
    %c0_i32 = arith.constant 0 : i32
    %c0_i32_0 = arith.constant 0 : i32
    return %arg0, %c0_i32, %arg1 : i32, i32, i32
  }
}

</mosaic_0001>

<bundles_post_ra>
// kernel: tpu_custom_call.1
= control target key start
LH: loop header
LB: loop body
LE: loop exit
PB: predicated region body
PF: predicated region fallthrough
CT: control target
= control target key end

     0   :  { %10 = vsyncpa [#allocation5], 0  ;;  %s5841_s0 = inlined_call_operand.vmem [shape: f32[2,8,256], index: 0, kind: input, shape index: {}]   ;;  %s5842_s1 = inlined_call_operand.vmem [shape: bf16[384,8], index: 1, kind: input, shape index: {}]   ;;  %s5843_s2 = inlined_call_operand.vmem [shape: f32[384,1], index: 2, kind: input, shape index: {}]   ;;  %s5844_s3 = inlined_call_operand.vmem [shape: bf16[8,128], index: 3, kind: input, shape index: {}]   ;;  %s5845_s4 = inlined_call_operand.vmem [shape: f32[8,1], index: 4, kind: input, shape index: {}]   ;;  %s5846_s5 = inlined_call_operand.hbm [shape: f32[2,8,256], index: 5, kind: output, shape index: {}]  }
   0x1   :  { %12 = vsyncpa [#allocation5 + $0x1], 0  ;;  %s4187_s18 = smov 0   ;;  %s4189_s19 = smov 0  }
   0x2   :  { %s4191_s20 = smov 0   ;;  %s4193_s21 = smov 0  }
   0x3   :  { %s4195_s22 = smov 0   ;;  %s4197_s23 = smov 0  }
   0x4   :  { %s4199_s24 = smov 0   ;;  %s4201_s25 = smov 0  }
   0x5 LB: > { %s3193_s26 = sadd.s32 4294967295, %s4150_s25   ;;  %s3194_s27 = sadd.s32 4294967294, %s4150_s25   ;;  %s4150_s25 = sphi %s4201_s25, %s18_s25   ;;  %s4146_s24 = sphi %s4199_s24, %s5862_s24   ;;  %s4142_s23 = sphi %s4197_s23, %s5861_s23   ;;  %s4138_s22 = sphi %s4195_s22, %s5860_s22   ;;  %s4134_s21 = sphi %s4193_s21, %s5859_s21   ;;  %s4130_s20 = sphi %s4191_s20, %s5858_s20   ;;  %s4126_s19 = sphi %s4189_s19, %s5857_s19   ;;  %s4122_s18 = sphi %s4187_s18, %s5856_s18  }
   0x6   : > { %s27_s28 = sadd.s32 1, %s4142_s23  ;;  %s30_s29 = sadd.s32 1, %s4146_s24 }
   0x7   : > { %p28_p0 = scmp.ge.s32.totalorder %s27_s28, 2  ;;  %p159_p1 = scmp.ne.s32.totalorder %s4130_s20, %s4126_s19 }
   0x8   : > { %p160_p2 = scmp.eq.s32.totalorder %s3193_s26, 3  ;;  %p165_p5 = scmp.ne.s32.totalorder %s4126_s19, %s4122_s18 }
   0x9   : > { %s5864_s28 = smov (%p28_p0, %s27_s28), 0  ;;  %s5866_s29 = smov (!%p28_p0, %s30_s29), %s4146_s24 }
   0xa   : > { %s145_s30 = ssub.s32 %s4142_s23, %s5864_s28  ;;  %p4238_p3 = por %p160_p2, %p159_p1 }
   0xb   : > { %p32_p4 = scmp.ge.s32.totalorder %s5866_s29, 2  ;;  %p166_p6 = scmp.eq.s32.totalorder %s3194_s27, 3 }
   0xc   : > { %p3197_p7 = scmp.ge.s32.totalorder %s4150_s25, 1  ;;  %p204_p9 = scmp.lt.s32.totalorder %s4150_s25, 5 }
   0xd   : > { %s5868_s29 = smov (%p32_p4, %s5866_s29), 0  ;;  %p4247_p8 = por %p166_p6, %p165_p5 }
   0xe   : > { %s144_s8 = ssub.s32 %s4146_s24, %s5868_s29  ;;  %s149_s9 = sadd.s32 1, %s4130_s20 }
   0xf   : > { %s146_s10 = sor.u32 %s145_s30, %s144_s8  ;;  %p205_p10 = pnand %p3197_p7, %p204_p9 }
  0x10   : > { %p147_p11 = scmp.eq.s32.totalorder %s146_s10, 0  ;;  %s5847_s12 = sand.u32 (!%p205_p10), 1, %s4126_s19  }
  0x11   : > { %208 = sbr.rel (%p205_p10) target bundleno = 2883 (0xb43), region = 40  ;;  %p232_p12 = scmp.lt.s32.totalorder (!%p205_p10), %s4138_s22, 1 }
  0x12   : > { %s4256_s11 = scalar_select %p147_p11, %s4130_s20, %s149_s9  }
  0x13   : > { %s4262_s13 = sshll.u32 (!%p205_p10), %s5847_s12, 3  ;;  %p3201_p13 = scmp.ne.s32.totalorder (!%p205_p10), %s4134_s21, 0 }
  0x18   : > { %s233_s14 = scalar_select %p232_p12, %s4138_s22, 1 }
  0x19   : > { %241 = sbr.rel (%p3201_p13) target bundleno = 831 (0x33f), region = 44  ;;  %v332_v16 = vld [vmem:[%s5843_s2] sm:$0xff] (!%p3201_p13)  ;;  %v4152_v17 = vmov (!%p3201_p13), 0   ;;  %v333_v18 = vld [vmem:[%s5843_s2 + $0x8] sm:$0xff] (!%p3201_p13)  ;;  %v335_v19 = vld [vmem:[%s5843_s2 + $0x18] sm:$0xff] (!%p3201_p13)  ;;  %vm813_vm0 = vcmask (!%p3201_p13), 1043456  }
  0x1a   : > { %s3322_s15 = sshll.u32 %s233_s14, 4  ;;  %3763 = vset.pattern.permute.xlu1 (!%p3201_p13), %v4152_v17  ;;  %852 = vmatprep.mubr.bf16.mxu0 (!%p3201_p13), %v4152_v17  ;;  %v336_v20 = vld [vmem:[%s5843_s2 + $0x20] sm:$0xff] (!%p3201_p13)  ;;  %v337_v21 = vld [vmem:[%s5843_s2 + $0x28] sm:$0xff] (!%p3201_p13)  ;;  %v338_v22 = vld [vmem:[%s5843_s2 + $0x30] sm:$0xff] (!%p3201_p13)  ;;  %vm740_vm1 = vcmask (!%p3201_p13), 64512  }
  0x1b   : > { %s236_s26 = scalar_lea.vmem %s5841_s0, %s3322_s15  ;;  %382 = vperm.xlu1 (!%p3201_p13), %3763, %v332_v16   ;;  %972 = vmatprep.mubr.bf16.mxu1 (!%p3201_p13), %v4152_v17  ;;  %v339_v23 = vld [vmem:[%s5843_s2 + $0x38] sm:$0xff] (!%p3201_p13)  ;;  %v340_v24 = vld [vmem:[%s5843_s2 + $0x40] sm:$0xff] (!%p3201_p13)  ;;  %v341_v25 = vld [vmem:[%s5843_s2 + $0x48] sm:$0xff] (!%p3201_p13) }
  0x1c   : > { %v242_v0 = vld [vmem:[%s236_s26] sm:$0xff] (!%p3201_p13)  ;;  %v243_v1 = vld [vmem:[%s236_s26 + $0x8] sm:$0xff] (!%p3201_p13)  ;;  %3764 = vset.pattern.permute.xlu0 (!%p3201_p13), %v4152_v17  ;;  %v342_v26 = vld [vmem:[%s5843_s2 + $0x50] sm:$0xff] (!%p3201_p13) }
  0x1d   : > { %v244_v2 = vadd.f32 (!%p3201_p13), %v243_v1, %v242_v0  ;;  %v343_v27 = vld [vmem:[%s5843_s2 + $0x58] sm:$0xff] (!%p3201_p13)  ;;  %v344_v28 = vld [vmem:[%s5843_s2 + $0x60] sm:$0xff] (!%p3201_p13)  ;;  %v345_v30 = vld [vmem:[%s5843_s2 + $0x68] sm:$0xff] (!%p3201_p13) }
  0x1e   : > { %v347_v33 = vld [vmem:[%s5843_s2 + $0x78] sm:$0xff] (!%p3201_p13)  ;;  %v349_v36 = vld [vmem:[%s5843_s2 + $0x88] sm:$0xff] (!%p3201_p13)  ;;  %v334_v48 = vld [vmem:[%s5843_s2 + $0x10] sm:$0xff] (!%p3201_p13) }
  0x1f   : > { %245 = vadd.xlane.f32.xlu0 (!%p3201_p13), %v244_v2  ;;  %387 = vperm.xlu1 (!%p3201_p13), %3763, %v333_v18   ;;  %v351_v38 = vld [vmem:[%s5843_s2 + $0x98] sm:$0xff] (!%p3201_p13)  ;;  %v353_v40 = vld [vmem:[%s5843_s2 + $0xa8] sm:$0xff] (!%p3201_p13)  ;;  %v346_v51 = vld [vmem:[%s5843_s2 + $0x70] sm:$0xff] (!%p3201_p13) }
  0x20   : > { %v355_v41 = vld [vmem:[%s5843_s2 + $0xb8] sm:$0xff]  ;;  %v357_v42 = vld [vmem:[%s5843_s2 + $0xc8] sm:$0xff]  ;;  %v348_v52 = vld [vmem:[%s5843_s2 + $0x80] sm:$0xff] }
  0x21   : > { %v359_v43 = vld [vmem:[%s5843_s2 + $0xd8] sm:$0xff]  ;;  %v361_v44 = vld [vmem:[%s5843_s2 + $0xe8] sm:$0xff]  ;;  %v350_v55 = vld [vmem:[%s5843_s2 + $0x90] sm:$0xff] }
  0x22   : > { %v363_v45 = vld [vmem:[%s5843_s2 + $0xf8] sm:$0xff]  ;;  %v365_v46 = vld [vmem:[%s5843_s2 + $0x108] sm:$0xff]  ;;  %v352_v56 = vld [vmem:[%s5843_s2 + $0xa0] sm:$0xff] }
  0x23   : > { %397 = vperm.xlu1 %3763, %v335_v19   ;;  %v367_v47 = vld [vmem:[%s5843_s2 + $0x118] sm:$0xff]  ;;  %v369_v49 = vld [vmem:[%s5843_s2 + $0x128] sm:$0xff]  ;;  %v354_v59 = vld [vmem:[%s5843_s2 + $0xb0] sm:$0xff] }
  0x24   : > { %v371_v50 = vld [vmem:[%s5843_s2 + $0x138] sm:$0xff]  ;;  %v373_v53 = vld [vmem:[%s5843_s2 + $0x148] sm:$0xff]  ;;  %v356_v61 = vld [vmem:[%s5843_s2 + $0xc0] sm:$0xff] }
  0x25   : > { %v375_v54 = vld [vmem:[%s5843_s2 + $0x158] sm:$0xff]  ;;  %v377_v57 = vld [vmem:[%s5843_s2 + $0x168] sm:$0xff]  ;;  %v358_v62 = vld [vmem:[%s5843_s2 + $0xd0] sm:$0xff] }
  0x26   : > { %v379_v58 = vld [vmem:[%s5843_s2 + $0x178] sm:$0xff]  ;;  %v360_v63 = vld [vmem:[%s5843_s2 + $0xe0] sm:$0xff] }
  0x27   : > { %402 = vperm.xlu1 %3763, %v336_v20   ;;  %v364_v2 = vld [vmem:[%s5843_s2 + $0x100] sm:$0xff] }
  0x28   : > { %v3765_v19 = vld [vmem:[%s5842_s1] sm:$0xff]  }
  0x29   : > { %v3766_v20 = vld [vmem:[%s5842_s1 + $0x60] sm:$0xff]  }
  0x2b   : > { %407 = vperm.xlu1 %3763, %v337_v21   ;;  %v3769_v21 = vld [vmem:[%s5842_s1 + $0x10] sm:$0xff]  }
  0x2f   : > { %412 = vperm.xlu1 %3763, %v338_v22   ;;  %v3770_v22 = vld [vmem:[%s5842_s1 + $0x70] sm:$0xff]  }
  0x33   : > { %417 = vperm.xlu1 %3763, %v339_v23   ;;  %v3771_v23 = vld [vmem:[%s5842_s1 + $0x18] sm:$0xff]  }
  0x37   : > { %422 = vperm.xlu1 %3763, %v340_v24   ;;  %v3772_v24 = vld [vmem:[%s5842_s1 + $0x78] sm:$0xff]  }
  0x3b   : > { %427 = vperm.xlu1 %3763, %v341_v25   ;;  %v3773_v25 = vld [vmem:[%s5842_s1 + $0x20] sm:$0xff]  }
  0x3f   : > { %432 = vperm.xlu1 %3763, %v342_v26   ;;  %v3774_v26 = vld [vmem:[%s5842_s1 + $0x80] sm:$0xff]  }
  0x43   : > { %437 = vperm.xlu1 %3763, %v343_v27   ;;  %v3775_v27 = vld [vmem:[%s5842_s1 + $0x28] sm:$0xff]  }
  0x47   : > { %442 = vperm.xlu1 %3763, %v344_v28   ;;  %v3776_v28 = vld [vmem:[%s5842_s1 + $0x88] sm:$0xff]  }
  0x4b   : > { %447 = vperm.xlu1 %3763, %v345_v30   ;;  %v3778_v30 = vld [vmem:[%s5842_s1 + $0x90] sm:$0xff]  }
  0x4f   : > { %457 = vperm.xlu1 %3763, %v347_v33   ;;  %v3781_v33 = vld [vmem:[%s5842_s1 + $0x40] sm:$0xff]  }
  0x53   : > { %467 = vperm.xlu1 %3763, %v349_v36   ;;  %v3784_v36 = vld [vmem:[%s5842_s1 + $0xa8] sm:$0xff]  }
  0x57   : > { %477 = vperm.xlu1 %3763, %v351_v38   ;;  %v3786_v38 = vld [vmem:[%s5842_s1 + $0xb0] sm:$0xff]  }
  0x5b   : > { %487 = vperm.xlu1 %3763, %v353_v40   ;;  %v3788_v40 = vld [vmem:[%s5842_s1 + $0xb8] sm:$0xff]  }
  0x5f   : > { %497 = vperm.xlu1 %3763, %v355_v41  }
  0x63   : > { %507 = vperm.xlu1 %3763, %v357_v42  }
  0x67   : > { %517 = vperm.xlu1 %3763, %v359_v43  }
  0x6b   : > { %527 = vperm.xlu1 %3763, %v361_v44  }
  0x6f   : > { %537 = vperm.xlu1 %3763, %v363_v45  }
  0x73   : > { %547 = vperm.xlu1 %3763, %v365_v46  }
  0x77   : > { %557 = vperm.xlu1 %3763, %v367_v47  }
  0x7b   : > { %567 = vperm.xlu1 %3763, %v369_v49  }
  0x7f   : > { %577 = vperm.xlu1 %3763, %v371_v50  }
  0x83   : > { %587 = vperm.xlu1 %3763, %v373_v53  }
  0x87   : > { %597 = vperm.xlu1 %3763, %v375_v54  }
  0x8b   : > { %607 = vperm.xlu1 %3763, %v377_v57  }
  0x8f   : > { %617 = vperm.xlu1 %3763, %v379_v58  }
  0x9a   : > { %v383_v41 = vpop.permute.xlu1 %382 }
  0x9e   : > { %v388_v42 = vpop.permute.xlu1 %387 }
  0xa2   : > { %v4546_v43 = vpop.permute.xlu1 %397 }
  0xa6   : > { %v4548_v44 = vpop.permute.xlu1 %402 }
  0xaa   : > { %v4550_v45 = vpop.permute.xlu1 %407 }
  0xac   : > { %v246_v3 = vpop.xlane.xlu0 %245 }
  0xad   : > { %v247_v4 = vrot.slane %v246_v3, 4 }
  0xaf   : > { %v248_v5 = vadd.f32 %v247_v4, %v246_v3  ;;  %v366_v3 = vld [vmem:[%s5843_s2 + $0x110] sm:$0xff]  ;;  %v368_v4 = vld [vmem:[%s5843_s2 + $0x120] sm:$0xff] }
  0xb1   : > { %v249_v6 = vrot.slane %v248_v5, 2 }
  0xb3   : > { %v250_v7 = vadd.f32 %v249_v6, %v248_v5  ;;  %v370_v5 = vld [vmem:[%s5843_s2 + $0x130] sm:$0xff]  ;;  %v372_v6 = vld [vmem:[%s5843_s2 + $0x140] sm:$0xff] }
  0xb5   : > { %v251_v8 = vrot.slane %v250_v7, 1 }
  0xb7   : > { %v252_v9 = vadd.f32 %v251_v8, %v250_v7  ;;  %v374_v7 = vld [vmem:[%s5843_s2 + $0x150] sm:$0xff]  ;;  %v376_v8 = vld [vmem:[%s5843_s2 + $0x160] sm:$0xff] }
  0xb9   : > { %3682 = vpush %v252_v9  ;;  %v378_v9 = vld [vmem:[%s5843_s2 + $0x170] sm:$0xff] }
  0xea   : > { %s3683_s30 = spop %3682 }
  0xeb   : > { %s256_s8 = smul.f32 0.00048828125, %s3683_s30 }
  0xed   : > { %v257_v10 = vstv %s256_s8 }
  0xee   : > { %v4270_v11 = vsub.f32 %v242_v0, %v257_v10  ;;  %v4272_v12 = vsub.f32 %v243_v1, %v257_v10  ;;  %v362_v1 = vld [vmem:[%s5843_s2 + $0xf0] sm:$0xff] }
  0xf0   : > { %v260_v13 = vmul.f32 %v4270_v11, %v4270_v11  ;;  %v261_v14 = vmul.f32 %v4272_v12, %v4272_v12 }
  0xf2   : > { %v262_v15 = vadd.f32 %v261_v14, %v260_v13 }
  0xf4   : > { %263 = vadd.xlane.f32.xlu0 %v262_v15 }
 0x10a   : > { %392 = vperm.xlu0 %3764, %v334_v48  }
 0x10e   : > { %452 = vperm.xlu0 %3764, %v346_v51  }
 0x112   : > { %462 = vperm.xlu0 %3764, %v348_v52  }
 0x116   : > { %472 = vperm.xlu0 %3764, %v350_v55  }
 0x11a   : > { %482 = vperm.xlu0 %3764, %v352_v56  }
 0x11e   : > { %492 = vperm.xlu0 %3764, %v354_v59  }
 0x122   : > { %502 = vperm.xlu0 %3764, %v356_v61  }
 0x126   : > { %512 = vperm.xlu0 %3764, %v358_v62  }
 0x12a   : > { %522 = vperm.xlu0 %3764, %v360_v63  }
 0x12e   : > { %532 = vperm.xlu0 %3764, %v362_v1  }
 0x132   : > { %542 = vperm.xlu0 %3764, %v364_v2  }
 0x136   : > { %552 = vperm.xlu0 %3764, %v366_v3  }
 0x13a   : > { %562 = vperm.xlu0 %3764, %v368_v4  }
 0x13e   : > { %572 = vperm.xlu0 %3764, %v370_v5  }
 0x142   : > { %582 = vperm.xlu0 %3764, %v372_v6  }
 0x146   : > { %592 = vperm.xlu0 %3764, %v374_v7  }
 0x14a   : > { %602 = vperm.xlu0 %3764, %v376_v8  }
 0x14e   : > { %612 = vperm.xlu0 %3764, %v378_v9  }
 0x181   : > { %v264_v29 = vpop.xlane.xlu0 %263 }
 0x182   : > { %v265_v31 = vrot.slane %v264_v29, 4 }
 0x184   : > { %v266_v32 = vadd.f32 %v265_v31, %v264_v29  ;;  %v3777_v29 = vld [vmem:[%s5842_s1 + $0x30] sm:$0xff]   ;;  %v3779_v31 = vld [vmem:[%s5842_s1 + $0x38] sm:$0xff]  }
 0x186   : > { %v267_v34 = vrot.slane %v266_v32, 2 }
 0x188   : > { %v268_v35 = vadd.f32 %v267_v34, %v266_v32  ;;  %v3780_v32 = vld [vmem:[%s5842_s1 + $0x98] sm:$0xff]   ;;  %v3782_v34 = vld [vmem:[%s5842_s1 + $0xa0] sm:$0xff]  }
 0x189   : > { %v393_v53 = vpop.permute.xlu0 %392 }
 0x18a   : > { %v269_v37 = vrot.slane %v268_v35, 1 }
 0x18c   : > { %v270_v39 = vadd.f32 %v269_v37, %v268_v35  ;;  %v3783_v35 = vld [vmem:[%s5842_s1 + $0x48] sm:$0xff]   ;;  %v3785_v37 = vld [vmem:[%s5842_s1 + $0x50] sm:$0xff]  }
 0x18d   : > { %v4570_v55 = vpop.permute.xlu0 %452 }
 0x18e   : > { %3684 = vpush %v270_v39  ;;  %v3787_v39 = vld [vmem:[%s5842_s1 + $0x58] sm:$0xff]  }
 0x191   : > { %v4574_v57 = vpop.permute.xlu0 %462 }
 0x195   : > { %v4578_v59 = vpop.permute.xlu0 %472 }
 0x199   : > { %v4582_v61 = vpop.permute.xlu0 %482 }
 0x19d   : > { %v4586_v63 = vpop.permute.xlu0 %492 }
 0x1a1   : > { %v503_v1 = vpop.permute.xlu0 %502 }
 0x1bf   : > { %s3685_s26 = spop %3684 }
 0x1c0   : > { %s274_s9 = smul.f32 0.00048828125, %s3685_s26 }
 0x1c2   : > { %s275_s27 = sadd.f32 1e-05, %s274_s9 }
 0x1c4   : > { %v276_v60 = vstv %s275_s27 }
 0x1c5   : > { %3789 = vrsqrt.f32 %v276_v60 }
 0x1cf   : > { %v3790_v0 = vpop.eup %3789 }
 0x1d0   : > { %3686 = vpush %v3790_v0 }
 0x201   : > { %s3687_s26 = spop %3686 }
 0x202   : > { %v279_v10 = vstv %s3687_s26 }
 0x203   : > { %v280_v13 = vmul.f32 %v279_v10, %v4270_v11  ;;  %v281_v14 = vmul.f32 %v279_v10, %v4272_v12  ;;  %v3767_v11 = vld [vmem:[%s5842_s1 + $0x8] sm:$0xff]  }
 0x204   : > { %v3768_v12 = vld [vmem:[%s5842_s1 + $0x68] sm:$0xff]  }
 0x205   : > { %v330_v15 = vpack.c.bf16 %v280_v13, %v280_v13  ;;  %v331_v16 = vpack.c.bf16 %v281_v14, %v281_v14 }
 0x207   : > { %3226 = vmatprep.subr.msk.bf16.mxu0 %vm813_vm0, %v331_v16  ;;  %3680 = vmatprep.subr.msk.bf16.mxu1 %vm813_vm0, %v331_v16  ;;  %v815_v18 = vsel %vm813_vm0, %v330_v15, 0 }
 0x208   : > { %821 = vmatpush1.bf16.msra.mxu0 %v815_v18  ;;  %3681 = vmatpush1.bf16.msra.mxu1 %v815_v18 }
 0x20b   : > { %3227 = vmatmul.mubr.msk.bf16.vlgmr.msra.gmra.mrb[0].mxu0 %vm740_vm1, %v3765_v19  ;;  %3239 = vmatmul.mubr.msk.bf16.vlgmr.msra.gmra.mrb[0].mxu1 %vm740_vm1, %v3766_v20 }
 0x20c   : > { %862 = vmatprep.mubr.bf16.mxu0 %v4152_v17  ;;  %982 = vmatprep.mubr.bf16.mxu1 %v4152_v17 }
 0x213   : > { %3228 = vmatmul.mubr.msk.bf16.gmra.mrb[4].mxu0 %vm740_vm1, %v3767_v11  ;;  %3240 = vmatmul.mubr.msk.bf16.gmra.mrb[4].mxu1 %vm740_vm1, %v3768_v12 }
 0x214   : > { %872 = vmatprep.mubr.bf16.mxu0 %v4152_v17  ;;  %992 = vmatprep.mubr.bf16.mxu1 %v4152_v17 }
 0x21b   : > { %3229 = vmatmul.mubr.msk.bf16.gmra.mrb[8].mxu0 %vm740_vm1, %v3769_v21  ;;  %3241 = vmatmul.mubr.msk.bf16.gmra.mrb[8].mxu1 %vm740_vm1, %v3770_v22 }
 0x21c   : > { %882 = vmatprep.mubr.bf16.mxu0 %v4152_v17  ;;  %1002 = vmatprep.mubr.bf16.mxu1 %v4152_v17 }
 0x223   : > { %3230 = vmatmul.mubr.msk.bf16.gmra.mrb[12].mxu0 %vm740_vm1, %v3771_v23  ;;  %3242 = vmatmul.mubr.msk.bf16.gmra.mrb[12].mxu1 %vm740_vm1, %v3772_v24  ;;  %v513_v24 = vpop.permute.xlu0 %512 }
 0x224   : > { %892 = vmatprep.mubr.bf16.mxu0 %v4152_v17  ;;  %1012 = vmatprep.mubr.bf16.mxu1 %v4152_v17 }
 0x22b   : > { %3231 = vmatmul.mubr.msk.bf16.gmra.mrb[16].mxu0 %vm740_vm1, %v3773_v25  ;;  %3243 = vmatmul.mubr.msk.bf16.gmra.mrb[16].mxu1 %vm740_vm1, %v3774_v26 }
 0x22c   : > { %902 = vmatprep.mubr.bf16.mxu0 %v4152_v17  ;;  %1022 = vmatprep.mubr.bf16.mxu1 %v4152_v17 }
 0x233   : > { %3232 = vmatmul.mubr.msk.bf16.gmra.mrb[20].mxu0 %vm740_vm1, %v3775_v27  ;;  %3244 = vmatmul.mubr.msk.bf16.gmra.mrb[20].mxu1 %vm740_vm1, %v3776_v28 }
 0x234   : > { %912 = vmatprep.mubr.bf16.mxu0 %v4152_v17  ;;  %1032 = vmatprep.mubr.bf16.mxu1 %v4152_v17 }
 0x23b   : > { %3233 = vmatmul.mubr.msk.bf16.gmra.mrb[24].mxu0 %vm740_vm1, %v3777_v29  ;;  %3245 = vmatmul.mubr.msk.bf16.gmra.mrb[24].mxu1 %vm740_vm1, %v3778_v30 }
 0x23c   : > { %922 = vmatprep.mubr.bf16.mxu0 %v4152_v17  ;;  %1042 = vmatprep.mubr.bf16.mxu1 %v4152_v17 }
 0x243   : > { %3234 = vmatmul.mubr.msk.bf16.gmra.mrb[28].mxu0 %vm740_vm1, %v3779_v31  ;;  %3246 = vmatmul.mubr.msk.bf16.gmra.mrb[28].mxu1 %vm740_vm1, %v3780_v32 }
 0x244   : > { %932 = vmatprep.mubr.bf16.mxu0 %v4152_v17  ;;  %1052 = vmatprep.mubr.bf16.mxu1 %v4152_v17 }
 0x24b   : > { %3235 = vmatmul.mubr.msk.bf16.gmra.mrb[32].mxu0 %vm740_vm1, %v3781_v33  ;;  %3247 = vmatmul.mubr.msk.bf16.gmra.mrb[32].mxu1 %vm740_vm1, %v3782_v34 }
 0x24c   : > { %942 = vmatprep.mubr.bf16.mxu0 %v4152_v17  ;;  %1062 = vmatprep.mubr.bf16.mxu1 %v4152_v17 }
 0x253   : > { %3236 = vmatmul.mubr.msk.bf16.gmra.mrb[36].mxu0 %vm740_vm1, %v3783_v35  ;;  %3248 = vmatmul.mubr.msk.bf16.gmra.mrb[36].mxu1 %vm740_vm1, %v3784_v36 }
 0x254   : > { %952 = vmatprep.mubr.bf16.mxu0 %v4152_v17  ;;  %1072 = vmatprep.mubr.bf16.mxu1 %v4152_v17 }
 0x25b   : > { %3237 = vmatmul.mubr.msk.bf16.gmra.mrb[40].mxu0 %vm740_vm1, %v3785_v37  ;;  %3249 = vmatmul.mubr.msk.bf16.gmra.mrb[40].mxu1 %vm740_vm1, %v3786_v38 }
 0x25c   : > { %962 = vmatprep.mubr.bf16.mxu0 %v4152_v17  ;;  %1082 = vmatprep.mubr.bf16.mxu1 %v4152_v17  ;;  %v4552_v17 = vpop.permute.xlu1 %412 }
 0x260   : > { %v4554_v46 = vpop.permute.xlu1 %417 }
 0x263   : > { %3238 = vmatmul.mubr.msk.bf16.gmra.mrb[44].mxu0 %vm740_vm1, %v3787_v39  ;;  %3250 = vmatmul.mubr.msk.bf16.gmra.mrb[44].mxu1 %vm740_vm1, %v3788_v40 }
 0x264   : > { %v4556_v47 = vpop.permute.xlu1 %422 }
 0x268   : > { %v4558_v48 = vpop.permute.xlu1 %427 }
 0x26c   : > { %v4560_v49 = vpop.permute.xlu1 %432 }
 0x270   : > { %v4562_v50 = vpop.permute.xlu1 %437 }
 0x274   : > { %v4564_v51 = vpop.permute.xlu1 %442 }
 0x278   : > { %v4566_v52 = vpop.permute.xlu1 %447 }
 0x27c   : > { %v4568_v54 = vpop.permute.xlu1 %457 }
 0x280   : > { %v4572_v56 = vpop.permute.xlu1 %467 }
 0x284   : > { %v4576_v58 = vpop.permute.xlu1 %477 }
 0x288   : > { %v4580_v60 = vpop.permute.xlu1 %487 }
 0x28c   : > { %v4584_v62 = vpop.permute.xlu1 %497 }
 0x290   : > { %v508_v0 = vpop.permute.xlu1 %507 }
 0x294   : > { %v518_v23 = vpop.permute.xlu1 %517 }
 0x2de   : > { %v854_v2 = vpop.f32.mrb[0].mxu0  ;;  %v974_v3 = vpop.f32.mrb[0].mxu1 }
 0x2df   : > { %v856_v4 = vpop.f32.mrb[1].mxu0  ;;  %v976_v5 = vpop.f32.mrb[1].mxu1  ;;  %v855_v8 = vadd.f32 %v854_v2, %v383_v41  ;;  %v975_v9 = vadd.f32 %v974_v3, %v503_v1 }
 0x2e0   : > { %v858_v6 = vpop.f32.mrb[2].mxu0  ;;  %v978_v7 = vpop.f32.mrb[2].mxu1  ;;  %v857_v16 = vadd.f32 %v856_v4, %v383_v41  ;;  %v977_v18 = vadd.f32 %v976_v5, %v503_v1 }
 0x2e1   : > { %v859_v10 = vadd.f32 %v858_v6, %v388_v42  ;;  %v979_v13 = vadd.f32 %v978_v7, %v508_v0  ;;  %v860_v14 = vpop.f32.mrb[3].mxu0  ;;  %v980_v15 = vpop.f32.mrb[3].mxu1 }
 0x2e2   : > { %v861_v19 = vadd.f32 %v860_v14, %v388_v42  ;;  %v981_v20 = vadd.f32 %v980_v15, %v508_v0  ;;  %v528_v2 = vpop.permute.xlu1 %527  ;;  %v523_v3 = vpop.permute.xlu0 %522 }
 0x2e3   : > { %v1093_v11 = vpack.c.bf16 %v859_v10, %v855_v8  ;;  %v1117_v12 = vpack.c.bf16 %v979_v13, %v975_v9 }
 0x2e4   : > { %v1094_v21 = vpack.c.bf16 %v861_v19, %v857_v16  ;;  %v1118_v22 = vpack.c.bf16 %v981_v20, %v977_v18 }
 0x2e5   : > { %1141 = vst [vmem:[#allocation2] sm:$0xff] %v1093_v11  ;;  %1165 = vst [vmem:[#allocation2 + $0xc0] sm:$0xff] %v1117_v12 }
 0x2e6   : > { %1142 = vst [vmem:[#allocation2 + $0x8] sm:$0xff] %v1094_v21  ;;  %1166 = vst [vmem:[#allocation2 + $0xc8] sm:$0xff] %v1118_v22  ;;  %v864_v25 = vpop.f32.mrb[4].mxu0  ;;  %v984_v26 = vpop.f32.mrb[4].mxu1 }
 0x2e7   : > { %v866_v27 = vpop.f32.mrb[5].mxu0  ;;  %v986_v28 = vpop.f32.mrb[5].mxu1  ;;  %v865_v31 = vadd.f32 %v864_v25, %v393_v53  ;;  %v985_v32 = vadd.f32 %v984_v26, %v513_v24 }
 0x2e8   : > { %v868_v29 = vpop.f32.mrb[6].mxu0  ;;  %v988_v30 = vpop.f32.mrb[6].mxu1  ;;  %v867_v37 = vadd.f32 %v866_v27, %v393_v53  ;;  %v987_v38 = vadd.f32 %v986_v28, %v513_v24 }
 0x2e9   : > { %v869_v33 = vadd.f32 %v868_v29, %v4546_v43  ;;  %v989_v34 = vadd.f32 %v988_v30, %v518_v23  ;;  %v870_v35 = vpop.f32.mrb[7].mxu0  ;;  %v990_v36 = vpop.f32.mrb[7].mxu1 }
 0x2ea   : > { %v871_v39 = vadd.f32 %v870_v35, %v4546_v43  ;;  %v991_v40 = vadd.f32 %v990_v36, %v518_v23  ;;  %v538_v23 = vpop.permute.xlu1 %537  ;;  %v533_v24 = vpop.permute.xlu0 %532 }
 0x2eb   : > { %v1095_v41 = vpack.c.bf16 %v869_v33, %v865_v31  ;;  %v1119_v42 = vpack.c.bf16 %v989_v34, %v985_v32 }
 0x2ec   : > { %v1096_v0 = vpack.c.bf16 %v871_v39, %v867_v37  ;;  %v1120_v1 = vpack.c.bf16 %v991_v40, %v987_v38 }
 0x2ed   : > { %1143 = vst [vmem:[#allocation2 + $0x10] sm:$0xff] %v1095_v41  ;;  %1167 = vst [vmem:[#allocation2 + $0xd0] sm:$0xff] %v1119_v42 }
 0x2ee   : > { %1144 = vst [vmem:[#allocation2 + $0x18] sm:$0xff] %v1096_v0  ;;  %1168 = vst [vmem:[#allocation2 + $0xd8] sm:$0xff] %v1120_v1  ;;  %v874_v4 = vpop.f32.mrb[8].mxu0  ;;  %v994_v5 = vpop.f32.mrb[8].mxu1 }
 0x2ef   : > { %v876_v6 = vpop.f32.mrb[9].mxu0  ;;  %v996_v7 = vpop.f32.mrb[9].mxu1  ;;  %v875_v9 = vadd.f32 %v874_v4, %v4548_v44  ;;  %v995_v43 = vadd.f32 %v994_v5, %v523_v3 }
 0x2f0   : > { %v878_v8 = vpop.f32.mrb[10].mxu0  ;;  %v998_v53 = vpop.f32.mrb[10].mxu1  ;;  %v877_v16 = vadd.f32 %v876_v6, %v4548_v44  ;;  %v997_v18 = vadd.f32 %v996_v7, %v523_v3 }
 0x2f1   : > { %v879_v10 = vadd.f32 %v878_v8, %v4550_v45  ;;  %v999_v13 = vadd.f32 %v998_v53, %v528_v2  ;;  %v880_v14 = vpop.f32.mrb[11].mxu0  ;;  %v1000_v15 = vpop.f32.mrb[11].mxu1 }
 0x2f2   : > { %v881_v19 = vadd.f32 %v880_v14, %v4550_v45  ;;  %v1001_v20 = vadd.f32 %v1000_v15, %v528_v2  ;;  %v548_v0 = vpop.permute.xlu1 %547  ;;  %v543_v1 = vpop.permute.xlu0 %542 }
 0x2f3   : > { %v1097_v11 = vpack.c.bf16 %v879_v10, %v875_v9  ;;  %v1121_v12 = vpack.c.bf16 %v999_v13, %v995_v43 }
 0x2f4   : > { %v1098_v21 = vpack.c.bf16 %v881_v19, %v877_v16  ;;  %v1122_v22 = vpack.c.bf16 %v1001_v20, %v997_v18 }
 0x2f5   : > { %1145 = vst [vmem:[#allocation2 + $0x20] sm:$0xff] %v1097_v11  ;;  %1169 = vst [vmem:[#allocation2 + $0xe0] sm:$0xff] %v1121_v12 }
 0x2f6   : > { %1146 = vst [vmem:[#allocation2 + $0x28] sm:$0xff] %v1098_v21  ;;  %1170 = vst [vmem:[#allocation2 + $0xe8] sm:$0xff] %v1122_v22  ;;  %v884_v25 = vpop.f32.mrb[12].mxu0  ;;  %v1004_v26 = vpop.f32.mrb[12].mxu1 }
 0x2f7   : > { %v886_v27 = vpop.f32.mrb[13].mxu0  ;;  %v1006_v28 = vpop.f32.mrb[13].mxu1  ;;  %v885_v30 = vadd.f32 %v884_v25, %v4552_v17  ;;  %v1005_v45 = vadd.f32 %v1004_v26, %v533_v24 }
 0x2f8   : > { %v888_v29 = vpop.f32.mrb[14].mxu0  ;;  %v1008_v44 = vpop.f32.mrb[14].mxu1  ;;  %v887_v35 = vadd.f32 %v886_v27, %v4552_v17  ;;  %v1007_v36 = vadd.f32 %v1006_v28, %v533_v24 }
 0x2f9   : > { %v889_v31 = vadd.f32 %v888_v29, %v4554_v46  ;;  %v1009_v32 = vadd.f32 %v1008_v44, %v538_v23  ;;  %v890_v33 = vpop.f32.mrb[15].mxu0  ;;  %v1010_v34 = vpop.f32.mrb[15].mxu1 }
 0x2fa   : > { %v891_v37 = vadd.f32 %v890_v33, %v4554_v46  ;;  %v1011_v38 = vadd.f32 %v1010_v34, %v538_v23  ;;  %v558_v11 = vpop.permute.xlu1 %557  ;;  %v553_v12 = vpop.permute.xlu0 %552 }
 0x2fb   : > { %v1099_v39 = vpack.c.bf16 %v889_v31, %v885_v30  ;;  %v1123_v40 = vpack.c.bf16 %v1009_v32, %v1005_v45 }
 0x2fc   : > { %v1100_v41 = vpack.c.bf16 %v891_v37, %v887_v35  ;;  %v1124_v42 = vpack.c.bf16 %v1011_v38, %v1007_v36 }
 0x2fd   : > { %1147 = vst [vmem:[#allocation2 + $0x30] sm:$0xff] %v1099_v39  ;;  %1171 = vst [vmem:[#allocation2 + $0xf0] sm:$0xff] %v1123_v40 }
 0x2fe   : > { %1148 = vst [vmem:[#allocation2 + $0x38] sm:$0xff] %v1100_v41  ;;  %1172 = vst [vmem:[#allocation2 + $0xf8] sm:$0xff] %v1124_v42  ;;  %v894_v2 = vpop.f32.mrb[16].mxu0  ;;  %v1014_v3 = vpop.f32.mrb[16].mxu1 }
 0x2ff   : > { %v896_v4 = vpop.f32.mrb[17].mxu0  ;;  %v1016_v5 = vpop.f32.mrb[17].mxu1  ;;  %v895_v7 = vadd.f32 %v894_v2, %v4556_v47  ;;  %v1015_v46 = vadd.f32 %v1014_v3, %v543_v1 }
 0x300   : > { %v898_v6 = vpop.f32.mrb[18].mxu0  ;;  %v1018_v17 = vpop.f32.mrb[18].mxu1  ;;  %v897_v10 = vadd.f32 %v896_v4, %v4556_v47  ;;  %v1017_v13 = vadd.f32 %v1016_v5, %v543_v1 }
 0x301   : > { %v899_v8 = vadd.f32 %v898_v6, %v4558_v48  ;;  %v1019_v53 = vadd.f32 %v1018_v17, %v548_v0  ;;  %v900_v9 = vpop.f32.mrb[19].mxu0  ;;  %v1020_v43 = vpop.f32.mrb[19].mxu1 }
 0x302   : > { %v901_v14 = vadd.f32 %v900_v9, %v4558_v48  ;;  %v1021_v15 = vadd.f32 %v1020_v43, %v548_v0  ;;  %v568_v37 = vpop.permute.xlu1 %567  ;;  %v563_v38 = vpop.permute.xlu0 %562 }
 0x303   : > { %v1101_v16 = vpack.c.bf16 %v899_v8, %v895_v7  ;;  %v1125_v18 = vpack.c.bf16 %v1019_v53, %v1015_v46 }
 0x304   : > { %v1102_v19 = vpack.c.bf16 %v901_v14, %v897_v10  ;;  %v1126_v20 = vpack.c.bf16 %v1021_v15, %v1017_v13 }
 0x305   : > { %1149 = vst [vmem:[#allocation2 + $0x40] sm:$0xff] %v1101_v16  ;;  %1173 = vst [vmem:[#allocation2 + $0x100] sm:$0xff] %v1125_v18 }
 0x306   : > { %1150 = vst [vmem:[#allocation2 + $0x48] sm:$0xff] %v1102_v19  ;;  %1174 = vst [vmem:[#allocation2 + $0x108] sm:$0xff] %v1126_v20  ;;  %v904_v21 = vpop.f32.mrb[20].mxu0  ;;  %v1024_v22 = vpop.f32.mrb[20].mxu1 }
 0x307   : > { %v906_v23 = vpop.f32.mrb[21].mxu0  ;;  %v1026_v24 = vpop.f32.mrb[21].mxu1  ;;  %v905_v26 = vadd.f32 %v904_v21, %v4560_v49  ;;  %v1025_v48 = vadd.f32 %v1024_v22, %v553_v12 }
 0x308   : > { %v908_v25 = vpop.f32.mrb[22].mxu0  ;;  %v1028_v47 = vpop.f32.mrb[22].mxu1  ;;  %v907_v30 = vadd.f32 %v906_v23, %v4560_v49  ;;  %v1027_v45 = vadd.f32 %v1026_v24, %v553_v12 }
 0x309   : > { %v909_v27 = vadd.f32 %v908_v25, %v4562_v50  ;;  %v1029_v28 = vadd.f32 %v1028_v47, %v558_v11  ;;  %v910_v29 = vpop.f32.mrb[23].mxu0  ;;  %v1030_v44 = vpop.f32.mrb[23].mxu1 }
 0x30a   : > { %v911_v31 = vadd.f32 %v910_v29, %v4562_v50  ;;  %v1031_v32 = vadd.f32 %v1030_v44, %v558_v11  ;;  %v578_v10 = vpop.permute.xlu1 %577  ;;  %v573_v13 = vpop.permute.xlu0 %572 }
 0x30b   : > { %v1103_v33 = vpack.c.bf16 %v909_v27, %v905_v26  ;;  %v1127_v34 = vpack.c.bf16 %v1029_v28, %v1025_v48 }
 0x30c   : > { %v1104_v35 = vpack.c.bf16 %v911_v31, %v907_v30  ;;  %v1128_v36 = vpack.c.bf16 %v1031_v32, %v1027_v45 }
 0x30d   : > { %1151 = vst [vmem:[#allocation2 + $0x50] sm:$0xff] %v1103_v33  ;;  %1175 = vst [vmem:[#allocation2 + $0x110] sm:$0xff] %v1127_v34 }
 0x30e   : > { %1152 = vst [vmem:[#allocation2 + $0x58] sm:$0xff] %v1104_v35  ;;  %1176 = vst [vmem:[#allocation2 + $0x118] sm:$0xff] %v1128_v36  ;;  %v914_v39 = vpop.f32.mrb[24].mxu0  ;;  %v1034_v40 = vpop.f32.mrb[24].mxu1 }
 0x30f   : > { %v916_v41 = vpop.f32.mrb[25].mxu0  ;;  %v1036_v42 = vpop.f32.mrb[25].mxu1  ;;  %v915_v1 = vadd.f32 %v914_v39, %v4564_v51  ;;  %v1035_v50 = vadd.f32 %v1034_v40, %v563_v38 }
 0x310   : > { %v918_v0 = vpop.f32.mrb[26].mxu0  ;;  %v1038_v49 = vpop.f32.mrb[26].mxu1  ;;  %v917_v6 = vadd.f32 %v916_v41, %v4564_v51  ;;  %v1037_v17 = vadd.f32 %v1036_v42, %v563_v38 }
 0x311   : > { %v919_v2 = vadd.f32 %v918_v0, %v4566_v52  ;;  %v1039_v3 = vadd.f32 %v1038_v49, %v568_v37  ;;  %v920_v4 = vpop.f32.mrb[27].mxu0  ;;  %v1040_v5 = vpop.f32.mrb[27].mxu1 }
 0x312   : > { %v921_v7 = vadd.f32 %v920_v4, %v4566_v52  ;;  %v1041_v46 = vadd.f32 %v1040_v5, %v568_v37  ;;  %v588_v29 = vpop.permute.xlu1 %587  ;;  %v583_v44 = vpop.permute.xlu0 %582 }
 0x313   : > { %v1105_v8 = vpack.c.bf16 %v919_v2, %v915_v1  ;;  %v1129_v53 = vpack.c.bf16 %v1039_v3, %v1035_v50 }
 0x314   : > { %v1106_v9 = vpack.c.bf16 %v921_v7, %v917_v6  ;;  %v1130_v43 = vpack.c.bf16 %v1041_v46, %v1037_v17 }
 0x315   : > { %1153 = vst [vmem:[#allocation2 + $0x60] sm:$0xff] %v1105_v8  ;;  %1177 = vst [vmem:[#allocation2 + $0x120] sm:$0xff] %v1129_v53 }
 0x316   : > { %1154 = vst [vmem:[#allocation2 + $0x68] sm:$0xff] %v1106_v9  ;;  %1178 = vst [vmem:[#allocation2 + $0x128] sm:$0xff] %v1130_v43  ;;  %v924_v14 = vpop.f32.mrb[28].mxu0  ;;  %v1044_v15 = vpop.f32.mrb[28].mxu1 }
 0x317   : > { %v926_v16 = vpop.f32.mrb[29].mxu0  ;;  %v1046_v18 = vpop.f32.mrb[29].mxu1  ;;  %v925_v20 = vadd.f32 %v924_v14, %v4570_v55  ;;  %v1045_v52 = vadd.f32 %v1044_v15, %v573_v13 }
 0x318   : > { %v928_v19 = vpop.f32.mrb[30].mxu0  ;;  %v1048_v51 = vpop.f32.mrb[30].mxu1  ;;  %v927_v23 = vadd.f32 %v926_v16, %v4570_v55  ;;  %v1047_v24 = vadd.f32 %v1046_v18, %v573_v13 }
 0x319   : > { %v929_v11 = vadd.f32 %v928_v19, %v4568_v54  ;;  %v1049_v12 = vadd.f32 %v1048_v51, %v578_v10  ;;  %v930_v21 = vpop.f32.mrb[31].mxu0  ;;  %v1050_v22 = vpop.f32.mrb[31].mxu1 }
 0x31a   : > { %v931_v25 = vadd.f32 %v930_v21, %v4568_v54  ;;  %v1051_v47 = vadd.f32 %v1050_v22, %v578_v10  ;;  %v598_v2 = vpop.permute.xlu1 %597  ;;  %v593_v3 = vpop.permute.xlu0 %592 }
 0x31b   : > { %v1107_v26 = vpack.c.bf16 %v929_v11, %v925_v20  ;;  %v1131_v48 = vpack.c.bf16 %v1049_v12, %v1045_v52 }
 0x31c   : > { %v1108_v27 = vpack.c.bf16 %v931_v25, %v927_v23  ;;  %v1132_v28 = vpack.c.bf16 %v1051_v47, %v1047_v24 }
 0x31d   : > { %1155 = vst [vmem:[#allocation2 + $0x70] sm:$0xff] %v1107_v26  ;;  %1179 = vst [vmem:[#allocation2 + $0x130] sm:$0xff] %v1131_v48 }
 0x31e   : > { %1156 = vst [vmem:[#allocation2 + $0x78] sm:$0xff] %v1108_v27  ;;  %1180 = vst [vmem:[#allocation2 + $0x138] sm:$0xff] %v1132_v28  ;;  %v934_v30 = vpop.f32.mrb[32].mxu0  ;;  %v1054_v45 = vpop.f32.mrb[32].mxu1 }
 0x31f   : > { %v936_v31 = vpop.f32.mrb[33].mxu0  ;;  %v1056_v32 = vpop.f32.mrb[33].mxu1  ;;  %v935_v34 = vadd.f32 %v934_v30, %v4574_v57  ;;  %v1055_v54 = vadd.f32 %v1054_v45, %v583_v44 }
 0x320   : > { %v938_v33 = vpop.f32.mrb[34].mxu0  ;;  %v1058_v55 = vpop.f32.mrb[34].mxu1  ;;  %v937_v39 = vadd.f32 %v936_v31, %v4574_v57  ;;  %v1057_v40 = vadd.f32 %v1056_v32, %v583_v44 }
 0x321   : > { %v939_v35 = vadd.f32 %v938_v33, %v4572_v56  ;;  %v1059_v36 = vadd.f32 %v1058_v55, %v588_v29  ;;  %v940_v37 = vpop.f32.mrb[35].mxu0  ;;  %v1060_v38 = vpop.f32.mrb[35].mxu1 }
 0x322   : > { %v941_v41 = vadd.f32 %v940_v37, %v4572_v56  ;;  %v1061_v42 = vadd.f32 %v1060_v38, %v588_v29  ;;  %v608_v20 = vpop.permute.xlu1 %607  ;;  %v603_v52 = vpop.permute.xlu0 %602 }
 0x323   : > { %v1109_v0 = vpack.c.bf16 %v939_v35, %v935_v34  ;;  %v1133_v49 = vpack.c.bf16 %v1059_v36, %v1055_v54 }
 0x324   : > { %v1110_v1 = vpack.c.bf16 %v941_v41, %v937_v39  ;;  %v1134_v50 = vpack.c.bf16 %v1061_v42, %v1057_v40 }
 0x325   : > { %1157 = vst [vmem:[#allocation2 + $0x80] sm:$0xff] %v1109_v0  ;;  %1181 = vst [vmem:[#allocation2 + $0x140] sm:$0xff] %v1133_v49 }
 0x326   : > { %1158 = vst [vmem:[#allocation2 + $0x88] sm:$0xff] %v1110_v1  ;;  %1182 = vst [vmem:[#allocation2 + $0x148] sm:$0xff] %v1134_v50  ;;  %v944_v4 = vpop.f32.mrb[36].mxu0  ;;  %v1064_v5 = vpop.f32.mrb[36].mxu1 }
 0x327   : > { %v946_v6 = vpop.f32.mrb[37].mxu0  ;;  %v1066_v17 = vpop.f32.mrb[37].mxu1  ;;  %v945_v46 = vadd.f32 %v944_v4, %v4578_v59  ;;  %v1065_v56 = vadd.f32 %v1064_v5, %v593_v3 }
 0x328   : > { %v948_v7 = vpop.f32.mrb[38].mxu0  ;;  %v1068_v57 = vpop.f32.mrb[38].mxu1  ;;  %v947_v10 = vadd.f32 %v946_v6, %v4578_v59  ;;  %v1067_v13 = vadd.f32 %v1066_v17, %v593_v3 }
 0x329   : > { %v949_v8 = vadd.f32 %v948_v7, %v4576_v58  ;;  %v1069_v53 = vadd.f32 %v1068_v57, %v598_v2  ;;  %v950_v9 = vpop.f32.mrb[39].mxu0  ;;  %v1070_v43 = vpop.f32.mrb[39].mxu1 }
 0x32a   : > { %v951_v14 = vadd.f32 %v950_v9, %v4576_v58  ;;  %v1071_v15 = vadd.f32 %v1070_v43, %v598_v2  ;;  %v618_v33 = vpop.permute.xlu1 %617  ;;  %v613_v55 = vpop.permute.xlu0 %612 }
 0x32b   : > { %v1111_v16 = vpack.c.bf16 %v949_v8, %v945_v46  ;;  %v1135_v18 = vpack.c.bf16 %v1069_v53, %v1065_v56 }
 0x32c   : > { %v1112_v19 = vpack.c.bf16 %v951_v14, %v947_v10  ;;  %v1136_v51 = vpack.c.bf16 %v1071_v15, %v1067_v13 }
 0x32d   : > { %1159 = vst [vmem:[#allocation2 + $0x90] sm:$0xff] %v1111_v16  ;;  %1183 = vst [vmem:[#allocation2 + $0x150] sm:$0xff] %v1135_v18 }
 0x32e   : > { %1160 = vst [vmem:[#allocation2 + $0x98] sm:$0xff] %v1112_v19  ;;  %1184 = vst [vmem:[#allocation2 + $0x158] sm:$0xff] %v1136_v51  ;;  %v954_v11 = vpop.f32.mrb[40].mxu0  ;;  %v1074_v12 = vpop.f32.mrb[40].mxu1 }
 0x32f   : > { %v956_v21 = vpop.f32.mrb[41].mxu0  ;;  %v1076_v22 = vpop.f32.mrb[41].mxu1  ;;  %v955_v24 = vadd.f32 %v954_v11, %v4582_v61  ;;  %v1075_v58 = vadd.f32 %v1074_v12, %v603_v52 }
 0x330   : > { %v958_v23 = vpop.f32.mrb[42].mxu0  ;;  %v1078_v59 = vpop.f32.mrb[42].mxu1  ;;  %v957_v27 = vadd.f32 %v956_v21, %v4582_v61  ;;  %v1077_v28 = vadd.f32 %v1076_v22, %v603_v52 }
 0x331   : > { %v959_v25 = vadd.f32 %v958_v23, %v4580_v60  ;;  %v1079_v47 = vadd.f32 %v1078_v59, %v608_v20  ;;  %v960_v26 = vpop.f32.mrb[43].mxu0  ;;  %v1080_v48 = vpop.f32.mrb[43].mxu1 }
 0x332   : > { %v961_v29 = vadd.f32 %v960_v26, %v4580_v60  ;;  %v1081_v44 = vadd.f32 %v1080_v48, %v608_v20 }
 0x333   : > { %v1113_v30 = vpack.c.bf16 %v959_v25, %v955_v24  ;;  %v1137_v45 = vpack.c.bf16 %v1079_v47, %v1075_v58 }
 0x334   : > { %v1114_v31 = vpack.c.bf16 %v961_v29, %v957_v27  ;;  %v1138_v32 = vpack.c.bf16 %v1081_v44, %v1077_v28 }
 0x335   : > { %1161 = vst [vmem:[#allocation2 + $0xa0] sm:$0xff] %v1113_v30  ;;  %1185 = vst [vmem:[#allocation2 + $0x160] sm:$0xff] %v1137_v45 }
 0x336   : > { %1162 = vst [vmem:[#allocation2 + $0xa8] sm:$0xff] %v1114_v31  ;;  %1186 = vst [vmem:[#allocation2 + $0x168] sm:$0xff] %v1138_v32  ;;  %v964_v34 = vpop.f32.mrb[44].mxu0  ;;  %v1084_v54 = vpop.f32.mrb[44].mxu1 }
 0x337   : > { %v966_v35 = vpop.f32.mrb[45].mxu0  ;;  %v1086_v36 = vpop.f32.mrb[45].mxu1  ;;  %v965_v38 = vadd.f32 %v964_v34, %v4586_v63  ;;  %v1085_v60 = vadd.f32 %v1084_v54, %v613_v55 }
 0x338   : > { %v968_v37 = vpop.f32.mrb[46].mxu0  ;;  %v1088_v61 = vpop.f32.mrb[46].mxu1  ;;  %v967_v0 = vadd.f32 %v966_v35, %v4586_v63  ;;  %v1087_v49 = vadd.f32 %v1086_v36, %v613_v55 }
 0x339   : > { %v969_v39 = vadd.f32 %v968_v37, %v4584_v62  ;;  %v1089_v40 = vadd.f32 %v1088_v61, %v618_v33  ;;  %v970_v41 = vpop.f32.mrb[47].mxu0  ;;  %v1090_v42 = vpop.f32.mrb[47].mxu1 }
 0x33a   : > { %v971_v1 = vadd.f32 %v970_v41, %v4584_v62  ;;  %v1091_v50 = vadd.f32 %v1090_v42, %v618_v33 }
 0x33b   : > { %v1115_v2 = vpack.c.bf16 %v969_v39, %v965_v38  ;;  %v1139_v3 = vpack.c.bf16 %v1089_v40, %v1085_v60 }
 0x33c   : > { %v1116_v4 = vpack.c.bf16 %v971_v1, %v967_v0  ;;  %v1140_v5 = vpack.c.bf16 %v1091_v50, %v1087_v49 }
 0x33d   : > { %1163 = vst [vmem:[#allocation2 + $0xb0] sm:$0xff] %v1115_v2  ;;  %1187 = vst [vmem:[#allocation2 + $0x170] sm:$0xff] %v1139_v3 }
 0x33e   : > { %1164 = vst [vmem:[#allocation2 + $0xb8] sm:$0xff] %v1116_v4  ;;  %1188 = vst [vmem:[#allocation2 + $0x178] sm:$0xff] %v1140_v5 }
 0x33f PF: > { %v1196_v6 = vld [vmem:[#allocation2 + $0x80] sm:$0xff]  ;;  %v1197_v17 = vld [vmem:[#allocation2 + $0x88] sm:$0xff]  ;;  %s3251_s10 = sshll.u32 %s4134_s21, 7  ;;  %v1198_v63 = vld [vmem:[#allocation2 + $0x90] sm:$0xff]  ;;  %vm1236_vm2 = vcmask 261120   ;;  %vm4154_vm3 = vmmov 0  }
 0x340   : > { %1204 = vxpose.xlu0.c.b16.start [1/2] (short) %v1196_v6, 128  ;;  %1220 = vxpose.xlu1.c.b16.start [1/2] (short) %v1197_v17, 128  ;;  %s1190_s14 = sshra.s32 %s3251_s10, 7  ;;  %v1199_v7 = vld [vmem:[#allocation2 + $0x98] sm:$0xff]  ;;  %v1660_v11 = vld [vmem:[#allocation2 + $0xa0] sm:$0xff]  ;;  %v1661_v21 = vld [vmem:[#allocation2 + $0xa8] sm:$0xff]  ;;  %s3318_s8 = sshll.u32 %s4138_s22, 1 }
 0x341   : > { %s3252_s12 = sshll.u32 %s1190_s14, 3  ;;  %v1201_v42 = vld [vmem:[#allocation2 + $0x108] sm:$0xff]  ;;  %s3115_s9 = sadd.s32 %s4134_s21, %s3318_s8 }
 0x342   : > { %s4631_s15 = scalar_lea.vmem [#allocation2], %s3252_s12  ;;  %1632 = vmatprep.mubr.bf16.mxu1 %v1201_v42  ;;  %s3319_s27 = sshll.u32 %s3115_s9, 7 }
 0x343   : > { %s5853_s10 = scalar_lea.vmem [#allocation4], %s4262_s13  ;;  %s5784_s16 = scalar_lea.hbm %s5846_s5, %s3319_s27 }
 0x344   : > { %1205 = vxpose.xlu0.c.b16.end [2/2] (short) %v1198_v63, 128  ;;  %1221 = vxpose.xlu1.c.b16.end [2/2] (short) %v1199_v7, 128  ;;  %v1662_v12 = vld [vmem:[#allocation2 + $0xb0] sm:$0xff]  ;;  %s3119_s14 = sshll.u32 %s5853_s10, 4  ;;  %s5854_s22 = smov %s5853_s10  ;;  %s5786_s14 = int_to_ptr.vmem [resolvable:$true] %s3119_s14 }
 0x345   : > { %v1194_v62 = vld [vmem:[%s4631_s15] sm:$0xff]  ;;  %v1195_v57 = vld [vmem:[%s4631_s15 + $0x10] sm:$0xff]  ;;  %v1663_v22 = vld [vmem:[#allocation2 + $0xb8] sm:$0xff]  ;;  %s5855_s21 = sand.u32 1, %s4126_s19   ;;  %s4056_s26 = scalar_lea.vmem %s5786_s14, 128 }
 0x346   : > { %3516 = vmatprep.subr.bf16.mxu0 %v1194_v62  ;;  %s3104_s17 = scalar_lea.sflag [#allocation5], %s5855_s21  ;;  %p4057_p0 = scmp.ne.s32.totalorder %s5786_s14, %s4056_s26 }
 0x347   : > { %3517 = vmatpush3.bf16.msra.mxu0 %v1194_v62  ;;  %s4156_s30 = smov [#allocation4]  }
 0x348   : > { %3518 = vmatprep.subr.bf16.mxu0 %v1195_v57  ;;  %p4058_p1 = pnand %p4057_p0, %p4238_p3  ;;  %s4060_s8 = sshll.u32 %s4156_s30, 4  ;;  %s4061_s8 = int_to_ptr.vmem [resolvable:$false] %s4060_s8 }
 0x349   : > { %s4062_s9 = scalar_lea.vmem %s4061_s8, 256  ;;  %p4063_p4 = scmp.lt.s32.totalorder %s5786_s14, %s4061_s8 }
 0x34a   : > { %p4059_p2 = pneg %p4058_p1  ;;  %p4064_p5 = scmp.lt.s32.totalorder %s4062_s9, %s4056_s26 }
 0x34b   : > { %3519 = vmatpush3.bf16.msra.mxu0 %v1195_v57 }
 0x34c   : > { %p4065_p6 = por %p4064_p5, %p4063_p4 }
 0x34e   : > { %p4066_p7 = pnand %p4065_p6, %p4059_p2 }
 0x35d   : > { %1668 = vxpose.xlu0.c.b16.start [1/2] (short) %v1660_v11, 128  ;;  %1684 = vxpose.xlu1.c.b16.start [1/2] (short) %v1661_v21, 128 }
 0x361   : > { %1669 = vxpose.xlu0.c.b16.end [2/2] (short) %v1662_v12, 128  ;;  %1685 = vxpose.xlu1.c.b16.end [2/2] (short) %v1663_v22, 128 }
 0x3a6   : > { %v1212_v46 = vpop.trf.xlu0  ;;  %v1228_v9 = vpop.trf.xlu1 }
 0x3a7   : > { %3520 = vmatprep.mubr.msk.bf16.mxu0 %vm1236_vm2, %v1212_v46 }
 0x3aa   : > { %v1213_v56 = vpop.trf.xlu0  ;;  %v1229_v13 = vpop.trf.xlu1 }
 0x3ab   : > { %3521 = vmatmul.mubr.msk.bf16.vlgmr.msra.gmra.mrb[0].mxu0 %vm1236_vm2, %v1213_v56 }
 0x3ae   : > { %v1214_v8 = vpop.trf.xlu0  ;;  %v1230_v15 = vpop.trf.xlu1 }
 0x3af   : > { %3524 = vmatprep.mubr.msk.bf16.mxu0 %vm1236_vm2, %v1214_v8 }
 0x3b2   : > { %v1215_v53 = vpop.trf.xlu0  ;;  %v1231_v18 = vpop.trf.xlu1 }
 0x3b3   : > { %3525 = vmatmul.mubr.msk.bf16.gmra.mrb[4].mxu0 %vm1236_vm2, %v1215_v53 }
 0x3b6   : > { %v1216_v43 = vpop.trf.xlu0  ;;  %v1232_v19 = vpop.trf.xlu1 }
 0x3b7   : > { %3528 = vmatprep.mubr.msk.bf16.mxu0 %vm1236_vm2, %v1216_v43 }
 0x3ba   : > { %v1217_v10 = vpop.trf.xlu0  ;;  %v1233_v51 = vpop.trf.xlu1 }
 0x3bb   : > { %3529 = vmatmul.mubr.msk.bf16.gmra.mrb[8].mxu0 %vm1236_vm2, %v1217_v10 }
 0x3be   : > { %v1218_v14 = vpop.trf.xlu0  ;;  %v1234_v20 = vpop.trf.xlu1 }
 0x3bf   : > { %3532 = vmatprep.mubr.msk.bf16.mxu0 %vm1236_vm2, %v1218_v14 }
 0x3c2   : > { %v1219_v16 = vpop.trf.xlu0  ;;  %v1235_v52 = vpop.trf.xlu1 }
 0x3c3   : > { %3533 = vmatmul.mubr.msk.bf16.gmra.mrb[12].mxu0 %vm1236_vm2, %v1219_v16 }
 0x3c4   : > { %3536 = vmatprep.mubr.msk.bf16.mxu0 %vm1236_vm2, %v1228_v9 }
 0x3cb   : > { %3537 = vmatmul.mubr.msk.bf16.gmra.mrb[16].mxu0 %vm1236_vm2, %v1229_v13 }
 0x3cc   : > { %3540 = vmatprep.mubr.msk.bf16.mxu0 %vm1236_vm2, %v1230_v15 }
 0x3d3   : > { %3541 = vmatmul.mubr.msk.bf16.gmra.mrb[20].mxu0 %vm1236_vm2, %v1231_v18 }
 0x3d4   : > { %3544 = vmatprep.mubr.msk.bf16.mxu0 %vm1236_vm2, %v1232_v19 }
 0x3db   : > { %3545 = vmatmul.mubr.msk.bf16.gmra.mrb[24].mxu0 %vm1236_vm2, %v1233_v51 }
 0x3dc   : > { %3548 = vmatprep.mubr.msk.bf16.mxu0 %vm1236_vm2, %v1234_v20 }
 0x3e3   : > { %3549 = vmatmul.mubr.msk.bf16.gmra.mrb[28].mxu0 %vm1236_vm2, %v1235_v52 }
 0x47e   : > { %v4651_v23 = vpop.f32.mrb[0].mxu0 }
 0x47f   : > { %v4653_v59 = vpop.f32.mrb[1].mxu0 }
 0x480   : > { %v4655_v24 = vpop.f32.mrb[2].mxu0 }
 0x481   : > { %v4657_v58 = vpop.f32.mrb[3].mxu0 }
 0x486   : > { %v4659_v25 = vpop.f32.mrb[4].mxu0 }
 0x487   : > { %v1448_v47 = vmax.f32 %v4651_v23, %v4659_v25  ;;  %v4663_v26 = vpop.f32.mrb[5].mxu0 }
 0x488   : > { %v1446_v48 = vmax.f32 %v4653_v59, %v4663_v26  ;;  %v4667_v27 = vpop.f32.mrb[6].mxu0 }
 0x489   : > { %v1449_v28 = vmax.f32 %v4655_v24, %v4667_v27  ;;  %v4671_v29 = vpop.f32.mrb[7].mxu0 }
 0x48a   : > { %v1447_v44 = vmax.f32 %v4657_v58, %v4671_v29 }
 0x48e   : > { %v4675_v30 = vpop.f32.mrb[8].mxu0 }
 0x48f   : > { %v1452_v45 = vmax.f32 %v1448_v47, %v4675_v30  ;;  %v4678_v31 = vpop.f32.mrb[9].mxu0 }
 0x490   : > { %v1450_v32 = vmax.f32 %v1446_v48, %v4678_v31  ;;  %v4681_v33 = vpop.f32.mrb[10].mxu0 }
 0x491   : > { %v1453_v55 = vmax.f32 %v1449_v28, %v4681_v33  ;;  %v4684_v34 = vpop.f32.mrb[11].mxu0 }
 0x492   : > { %v1451_v54 = vmax.f32 %v1447_v44, %v4684_v34 }
 0x496   : > { %v4687_v35 = vpop.f32.mrb[12].mxu0 }
 0x497   : > { %v1456_v36 = vmax.f32 %v1452_v45, %v4687_v35  ;;  %v4690_v37 = vpop.f32.mrb[13].mxu0 }
 0x498   : > { %v1454_v61 = vmax.f32 %v1450_v32, %v4690_v37  ;;  %v4693_v38 = vpop.f32.mrb[14].mxu0 }
 0x499   : > { %v1457_v60 = vmax.f32 %v1453_v55, %v4693_v38  ;;  %v4696_v39 = vpop.f32.mrb[15].mxu0 }
 0x49a   : > { %v1455_v40 = vmax.f32 %v1451_v54, %v4696_v39 }
 0x49e   : > { %v4699_v41 = vpop.f32.mrb[16].mxu0 }
 0x49f   : > { %v1460_v0 = vmax.f32 %v1456_v36, %v4699_v41  ;;  %v4702_v49 = vpop.f32.mrb[17].mxu0 }
 0x4a0   : > { %v1458_v1 = vmax.f32 %v1454_v61, %v4702_v49  ;;  %v4705_v50 = vpop.f32.mrb[18].mxu0 }
 0x4a1   : > { %v1461_v2 = vmax.f32 %v1457_v60, %v4705_v50  ;;  %v4708_v3 = vpop.f32.mrb[19].mxu0 }
 0x4a2   : > { %v1459_v4 = vmax.f32 %v1455_v40, %v4708_v3 }
 0x4a6   : > { %v4711_v5 = vpop.f32.mrb[20].mxu0 }
 0x4a7   : > { %v1464_v6 = vmax.f32 %v1460_v0, %v4711_v5  ;;  %v4714_v17 = vpop.f32.mrb[21].mxu0 }
 0x4a8   : > { %v1462_v63 = vmax.f32 %v1458_v1, %v4714_v17  ;;  %v4717_v7 = vpop.f32.mrb[22].mxu0 }
 0x4a9   : > { %v1465_v62 = vmax.f32 %v1461_v2, %v4717_v7  ;;  %v4720_v57 = vpop.f32.mrb[23].mxu0 }
 0x4aa   : > { %v1463_v46 = vmax.f32 %v1459_v4, %v4720_v57 }
 0x4ae   : > { %v4723_v56 = vpop.f32.mrb[24].mxu0 }
 0x4af   : > { %v1468_v8 = vmax.f32 %v1464_v6, %v4723_v56  ;;  %v4726_v53 = vpop.f32.mrb[25].mxu0 }
 0x4b0   : > { %v1466_v9 = vmax.f32 %v1462_v63, %v4726_v53  ;;  %v4729_v43 = vpop.f32.mrb[26].mxu0 }
 0x4b1   : > { %v1469_v10 = vmax.f32 %v1465_v62, %v4729_v43  ;;  %v4732_v13 = vpop.f32.mrb[27].mxu0 }
 0x4b2   : > { %v1467_v14 = vmax.f32 %v1463_v46, %v4732_v13 }
 0x4b6   : > { %v4735_v15 = vpop.f32.mrb[28].mxu0 }
 0x4b7   : > { %v1472_v16 = vmax.f32 %v1468_v8, %v4735_v15  ;;  %v4738_v18 = vpop.f32.mrb[29].mxu0 }
 0x4b8   : > { %v1470_v19 = vmax.f32 %v1466_v9, %v4738_v18  ;;  %v4741_v51 = vpop.f32.mrb[30].mxu0 }
 0x4b9   : > { %v1473_v20 = vmax.f32 %v1469_v10, %v4741_v51  ;;  %v4744_v52 = vpop.f32.mrb[31].mxu0 }
 0x4ba   : > { %v1471_v11 = vmax.f32 %v1467_v14, %v4744_v52 }
 0x4bb   : > { %v1475_v12 = vmax.f32 %v1472_v16, %v1473_v20 }
 0x4bc   : > { %v1474_v21 = vmax.f32 %v1470_v19, %v1471_v11 }
 0x4be   : > { %v1476_v22 = vmax.f32 %v1474_v21, %v1475_v12 }
 0x4c0   : > { %v1477_v47 = vrot.slane %v1476_v22, 4 }
 0x4c2   : > { %v1478_v48 = vmax.f32 %v1476_v22, %v1477_v47 }
 0x4c4   : > { %v1479_v28 = vrot.slane %v1478_v48, 2 }
 0x4c6   : > { %v1480_v44 = vmax.f32 %v1478_v48, %v1479_v28 }
 0x4c8   : > { %v1481_v45 = vrot.slane %v1480_v44, 1 }
 0x4ca   : > { %v4747_v32 = vmax.f32 %v1480_v44, %v1481_v45 }
 0x4cc   : > { %v1483_v55 = vsub.f32 %v4653_v59, %v4747_v32  ;;  %v1484_v54 = vsub.f32 %v4657_v58, %v4747_v32  ;;  %v1485_v36 = vsub.f32 %v4651_v23, %v4747_v32  ;;  %v1486_v61 = vsub.f32 %v4655_v24, %v4747_v32 }
 0x4cd   : > { %v1487_v60 = vsub.f32 %v4663_v26, %v4747_v32  ;;  %v1488_v40 = vsub.f32 %v4671_v29, %v4747_v32  ;;  %v1489_v42 = vsub.f32 %v4659_v25, %v4747_v32  ;;  %v1490_v59 = vsub.f32 %v4667_v27, %v4747_v32 }
 0x4ce   : > { %v1491_v58 = vsub.f32 %v4678_v31, %v4747_v32  ;;  %v1492_v23 = vsub.f32 %v4684_v34, %v4747_v32  ;;  %v1493_v24 = vsub.f32 %v4675_v30, %v4747_v32  ;;  %v1494_v26 = vsub.f32 %v4681_v33, %v4747_v32 }
 0x4cf   : > { %v1495_v29 = vsub.f32 %v4690_v37, %v4747_v32  ;;  %v1496_v25 = vsub.f32 %v4696_v39, %v4747_v32  ;;  %v1497_v27 = vsub.f32 %v4687_v35, %v4747_v32  ;;  %v1498_v31 = vsub.f32 %v4693_v38, %v4747_v32 }
 0x4d0   : > { %v1499_v34 = vsub.f32 %v4702_v49, %v4747_v32  ;;  %v1500_v30 = vsub.f32 %v4708_v3, %v4747_v32  ;;  %v1501_v33 = vsub.f32 %v4699_v41, %v4747_v32  ;;  %v1502_v37 = vsub.f32 %v4705_v50, %v4747_v32 }
 0x4d1   : > { %v1503_v39 = vsub.f32 %v4714_v17, %v4747_v32  ;;  %v1504_v35 = vsub.f32 %v4720_v57, %v4747_v32  ;;  %v1505_v38 = vsub.f32 %v4711_v5, %v4747_v32  ;;  %v1506_v0 = vsub.f32 %v4717_v7, %v4747_v32 }
 0x4d2   : > { %v1507_v49 = vsub.f32 %v4726_v53, %v4747_v32  ;;  %v1508_v41 = vsub.f32 %v4732_v13, %v4747_v32  ;;  %v1509_v1 = vsub.f32 %v4723_v56, %v4747_v32  ;;  %v1510_v50 = vsub.f32 %v4729_v43, %v4747_v32 }
 0x4d3   : > { %v1511_v2 = vsub.f32 %v4738_v18, %v4747_v32  ;;  %v1512_v3 = vsub.f32 %v4744_v52, %v4747_v32  ;;  %v1513_v4 = vsub.f32 %v4735_v15, %v4747_v32  ;;  %v1514_v5 = vsub.f32 %v4741_v51, %v4747_v32 }
 0x4d4   : > { %3792 = vpow2.f32 %v1483_v55 }
 0x4d5   : > { %3794 = vpow2.f32 %v1484_v54 }
 0x4d6   : > { %3796 = vpow2.f32 %v1485_v36 }
 0x4d7   : > { %3798 = vpow2.f32 %v1486_v61 }
 0x4d8   : > { %3800 = vpow2.f32 %v1487_v60 }
 0x4d9   : > { %3802 = vpow2.f32 %v1488_v40 }
 0x4da   : > { %3804 = vpow2.f32 %v1489_v42 }
 0x4db   : > { %3806 = vpow2.f32 %v1490_v59 }
 0x4dc   : > { %3808 = vpow2.f32 %v1491_v58 }
 0x4dd   : > { %3810 = vpow2.f32 %v1492_v23 }
 0x4de   : > { %v4813_v6 = vpop.eup %3792  ;;  %3812 = vpow2.f32 %v1493_v24 }
 0x4df   : > { %v4815_v17 = vpop.eup %3794  ;;  %3814 = vpow2.f32 %v1494_v26 }
 0x4e0   : > { %v4817_v63 = vpop.eup %3796  ;;  %3816 = vpow2.f32 %v1495_v29  ;;  %v1547_v7 = vadd.f32 %v4815_v17, %v4813_v6  ;;  %v1584_v62 = vpack.c.bf16 %v4815_v17, %v4813_v6 }
 0x4e1   : > { %v4823_v57 = vpop.eup %3798  ;;  %3818 = vpow2.f32 %v1496_v25 }
 0x4e2   : > { %v4825_v46 = vpop.eup %3800  ;;  %3820 = vpow2.f32 %v1497_v27  ;;  %v1548_v56 = vadd.f32 %v4817_v63, %v1547_v7  ;;  %v1585_v8 = vpack.c.bf16 %v4823_v57, %v4817_v63 }
 0x4e3   : > { %v4830_v53 = vpop.eup %3802  ;;  %3822 = vpow2.f32 %v1498_v31 }
 0x4e4   : > { %v4832_v9 = vpop.eup %3804  ;;  %3824 = vpow2.f32 %v1499_v34  ;;  %v1549_v10 = vadd.f32 %v4823_v57, %v1548_v56  ;;  %v1586_v13 = vpack.c.bf16 %v4830_v53, %v4825_v46  ;;  %v1676_v56 = vpop.trf.xlu0 }
 0x4e5   : > { %v4837_v14 = vpop.eup %3806  ;;  %3826 = vpow2.f32 %v1500_v30 }
 0x4e6   : > { %v4839_v16 = vpop.eup %3808  ;;  %3828 = vpow2.f32 %v1501_v33  ;;  %v1550_v19 = vadd.f32 %v4825_v46, %v1549_v10  ;;  %v1587_v20 = vpack.c.bf16 %v4837_v14, %v4832_v9 }
 0x4e7   : > { %v4844_v11 = vpop.eup %3810  ;;  %3830 = vpow2.f32 %v1502_v37 }
 0x4e8   : > { %v4846_v12 = vpop.eup %3812  ;;  %3832 = vpow2.f32 %v1503_v39  ;;  %v1551_v21 = vadd.f32 %v4830_v53, %v1550_v19  ;;  %v1588_v22 = vpack.c.bf16 %v4844_v11, %v4839_v16  ;;  %v1677_v19 = vpop.trf.xlu0 }
 0x4e9   : > { %v4851_v47 = vpop.eup %3814  ;;  %3834 = vpow2.f32 %v1504_v35 }
 0x4ea   : > { %v4853_v48 = vpop.eup %3816  ;;  %3836 = vpow2.f32 %v1505_v38  ;;  %v1552_v28 = vadd.f32 %v4832_v9, %v1551_v21  ;;  %v1589_v44 = vpack.c.bf16 %v4851_v47, %v4846_v12  ;;  %v1200_v9 = vld [vmem:[#allocation2 + $0x100] sm:$0xff] }
 0x4eb   : > { %v4858_v45 = vpop.eup %3818  ;;  %3838 = vpow2.f32 %v1506_v0 }
 0x4ec   : > { %v4860_v55 = vpop.eup %3820  ;;  %3840 = vpow2.f32 %v1507_v49  ;;  %v1553_v54 = vadd.f32 %v4837_v14, %v1552_v28  ;;  %v1590_v36 = vpack.c.bf16 %v4858_v45, %v4853_v48  ;;  %v1659_v14 = vld [vmem:[%s4631_s15 + $0x30] sm:$0xff] }
 0x4ed   : > { %v4865_v61 = vpop.eup %3822  ;;  %3842 = vpow2.f32 %v1508_v41 }
 0x4ee   : > { %v3825_v60 = vpop.eup %3824  ;;  %3844 = vpow2.f32 %v1509_v1  ;;  %v1554_v40 = vadd.f32 %v4839_v16, %v1553_v54  ;;  %v1591_v42 = vpack.c.bf16 %v4865_v61, %v4860_v55 }
 0x4ef   : > { %v3827_v59 = vpop.eup %3826  ;;  %3846 = vpow2.f32 %v1510_v50 }
 0x4f0   : > { %v3829_v58 = vpop.eup %3828  ;;  %3848 = vpow2.f32 %v1511_v2  ;;  %v1555_v23 = vadd.f32 %v4844_v11, %v1554_v40  ;;  %v1592_v24 = vpack.c.bf16 %v3827_v59, %v3825_v60 }
 0x4f1   : > { %v3831_v26 = vpop.eup %3830  ;;  %3850 = vpow2.f32 %v1512_v3 }
 0x4f2   : > { %v3833_v29 = vpop.eup %3832  ;;  %3852 = vpow2.f32 %v1513_v4  ;;  %v1556_v43 = vadd.f32 %v4846_v12, %v1555_v23  ;;  %3341 = vmatprep.subr.bf16.mxu1 %v1592_v24  ;;  %v1593_v25 = vpack.c.bf16 %v3831_v26, %v3829_v58  ;;  %v1202_v12 = vld [vmem:[#allocation2 + $0x110] sm:$0xff]  ;;  %v2123_v24 = vld [vmem:[#allocation2 + $0xc0] sm:$0xff] }
 0x4f3   : > { %v3835_v27 = vpop.eup %3834  ;;  %3854 = vpow2.f32 %v1514_v5  ;;  %3342 = vmatpush3.bf16.msra.mxu1 %v1584_v62  ;;  %2131 = vxpose.xlu0.c.b16.start [1/2] (short) %v2123_v24, 128 }
 0x4f4   : > { %v3837_v18 = vpop.eup %3836  ;;  %v1557_v31 = vadd.f32 %v4851_v47, %v1556_v43  ;;  %3343 = vmatprep.subr.bf16.mxu1 %v1593_v25  ;;  %v1594_v52 = vpack.c.bf16 %v3835_v27, %v3833_v29 }
 0x4f5   : > { %v3839_v34 = vpop.eup %3838 }
 0x4f6   : > { %v3841_v30 = vpop.eup %3840  ;;  %v1558_v15 = vadd.f32 %v4853_v48, %v1557_v31  ;;  %v1595_v33 = vpack.c.bf16 %v3839_v34, %v3837_v18 }
 0x4f7   : > { %v3843_v37 = vpop.eup %3842  ;;  %3344 = vmatpush3.bf16.msra.mxu1 %v1585_v8  ;;  %v1658_v8 = vld [vmem:[%s4631_s15 + $0x20] sm:$0xff] }
 0x4f8   : > { %v3845_v39 = vpop.eup %3844  ;;  %v1559_v35 = vadd.f32 %v4858_v45, %v1558_v15  ;;  %3345 = vmatprep.subr.bf16.mxu1 %v1594_v52  ;;  %v1596_v38 = vpack.c.bf16 %v3843_v37, %v3841_v30  ;;  %v2124_v52 = vld [vmem:[#allocation2 + $0xc8] sm:$0xff] }
 0x4f9   : > { %v3847_v51 = vpop.eup %3846  ;;  %2147 = vxpose.xlu1.c.b16.start [1/2] (short) %v2124_v52, 128 }
 0x4fa   : > { %v3849_v32 = vpop.eup %3848  ;;  %v1560_v0 = vadd.f32 %v4860_v55, %v1559_v35  ;;  %v1597_v49 = vpack.c.bf16 %v3847_v51, %v3845_v39  ;;  %v1692_v55 = vpop.trf.xlu1 }
 0x4fb   : > { %v3851_v41 = vpop.eup %3850  ;;  %3346 = vmatpush3.bf16.msra.mxu1 %v1586_v13  ;;  %v1203_v13 = vld [vmem:[#allocation2 + $0x118] sm:$0xff] }
 0x4fc   : > { %v3853_v1 = vpop.eup %3852  ;;  %v1561_v50 = vadd.f32 %v4865_v61, %v1560_v0  ;;  %3347 = vmatprep.subr.bf16.mxu1 %v1595_v33  ;;  %v1598_v2 = vpack.c.bf16 %v3851_v41, %v3849_v32 }
 0x4fd   : > { %v3855_v3 = vpop.eup %3854 }
 0x4fe   : > { %v1562_v4 = vadd.f32 %v3825_v60, %v1561_v50  ;;  %v1599_v5 = vpack.c.bf16 %v3855_v3, %v3853_v1 }
 0x4ff   : > { %3348 = vmatpush3.bf16.msra.mxu1 %v1587_v20 }
 0x500   : > { %v1563_v6 = vadd.f32 %v3827_v59, %v1562_v4  ;;  %3349 = vmatprep.subr.bf16.mxu1 %v1596_v38 }
 0x502   : > { %v1564_v17 = vadd.f32 %v3829_v58, %v1563_v6 }
 0x503   : > { %3350 = vmatpush3.bf16.msra.mxu1 %v1588_v22  ;;  %v1678_v22 = vpop.trf.xlu0 }
 0x504   : > { %v1565_v63 = vadd.f32 %v3831_v26, %v1564_v17  ;;  %3351 = vmatprep.subr.bf16.mxu1 %v1597_v49  ;;  %v2125_v26 = vld [vmem:[#allocation2 + $0xd0] sm:$0xff] }
 0x505   : > { %2132 = vxpose.xlu0.c.b16.end [2/2] (short) %v2125_v26, 128 }
 0x506   : > { %v1566_v7 = vadd.f32 %v3833_v29, %v1565_v63 }
 0x507   : > { %3352 = vmatpush3.bf16.msra.mxu1 %v1589_v44  ;;  %v1679_v28 = vpop.trf.xlu0 }
 0x508   : > { %v1567_v62 = vadd.f32 %v3835_v27, %v1566_v7  ;;  %3353 = vmatprep.subr.bf16.mxu1 %v1598_v2 }
 0x50a   : > { %v1568_v57 = vadd.f32 %v3837_v18, %v1567_v62 }
 0x50b   : > { %3354 = vmatpush3.bf16.msra.mxu1 %v1590_v36  ;;  %v1680_v44 = vpop.trf.xlu0  ;;  %v1693_v36 = vpop.trf.xlu1 }
 0x50c   : > { %v1569_v46 = vadd.f32 %v3839_v34, %v1568_v57  ;;  %3355 = vmatprep.subr.bf16.mxu1 %v1599_v5  ;;  %v2126_v34 = vld [vmem:[#allocation2 + $0xd8] sm:$0xff] }
 0x50d   : > { %2148 = vxpose.xlu1.c.b16.end [2/2] (short) %v2126_v34, 128 }
 0x50e   : > { %v1570_v53 = vadd.f32 %v3841_v30, %v1569_v46 }
 0x50f   : > { %3356 = vmatpush3.bf16.msra.mxu1 %v1591_v42  ;;  %v1681_v45 = vpop.trf.xlu0  ;;  %v1694_v60 = vpop.trf.xlu1 }
 0x510   : > { %v1571_v10 = vadd.f32 %v3843_v37, %v1570_v53  ;;  %3552 = vmatprep.subr.bf16.mxu1 %v1658_v8 }
 0x512   : > { %v1572_v16 = vadd.f32 %v3845_v39, %v1571_v10  ;;  %1633 = vmatmul.mubr.bf16.vlgmr.msra.gmra.mrb[0].mxu1 %v1200_v9 }
 0x513   : > { %1640 = vmatprep.mubr.bf16.mxu1 %v1203_v13  ;;  %3553 = vmatpush3.bf16.msra.mxu1 %v1658_v8  ;;  %v1682_v54 = vpop.trf.xlu0  ;;  %v1695_v40 = vpop.trf.xlu1 }
 0x514   : > { %v1573_v20 = vadd.f32 %v3847_v51, %v1572_v16  ;;  %3554 = vmatprep.subr.bf16.mxu1 %v1659_v14 }
 0x516   : > { %v1574_v11 = vadd.f32 %v3849_v32, %v1573_v20 }
 0x517   : > { %3555 = vmatpush3.bf16.msra.mxu1 %v1659_v14  ;;  %v1683_v61 = vpop.trf.xlu0  ;;  %v1696_v42 = vpop.trf.xlu1 }
 0x518   : > { %v1575_v21 = vadd.f32 %v3851_v41, %v1574_v11 }
 0x51a   : > { %v1576_v47 = vadd.f32 %v3853_v1, %v1575_v21  ;;  %1641 = vmatmul.mubr.bf16.gmra.mrb[4].mxu1 %v1202_v12 }
 0x51b   : > { %3556 = vmatprep.mubr.msk.bf16.mxu1 %vm1236_vm2, %v1676_v56  ;;  %v1697_v59 = vpop.trf.xlu1 }
 0x51c   : > { %v1577_v48 = vadd.f32 %v3855_v3, %v1576_v47 }
 0x51e   : > { %v1578_v29 = vrot.slane %v1577_v48, 4 }
 0x51f   : > { %v1698_v58 = vpop.trf.xlu1 }
 0x520   : > { %v1579_v43 = vadd.f32 %v1578_v29, %v1577_v48 }
 0x522   : > { %3557 = vmatmul.mubr.msk.bf16.vlgmr.msra.gmra.mrb[8].mxu1 %vm1236_vm2, %v1677_v19  ;;  %v1580_v25 = vrot.slane %v1579_v43, 2 }
 0x523   : > { %3560 = vmatprep.mubr.msk.bf16.mxu1 %vm1236_vm2, %v1678_v22  ;;  %v1699_v23 = vpop.trf.xlu1 }
 0x524   : > { %v1581_v27 = vadd.f32 %v1580_v25, %v1579_v43 }
 0x526   : > { %v1582_v18 = vrot.slane %v1581_v27, 1 }
 0x528   : > { %v1583_v31 = vadd.f32 %v1582_v18, %v1581_v27 }
 0x52a   : > { %3561 = vmatmul.mubr.msk.bf16.gmra.mrb[12].mxu1 %vm1236_vm2, %v1679_v28  ;;  %3856 = vrcp.f32 %v1583_v31 }
 0x52b   : > { %3564 = vmatprep.mubr.msk.bf16.mxu1 %vm1236_vm2, %v1680_v44 }
 0x532   : > { %3565 = vmatmul.mubr.msk.bf16.gmra.mrb[16].mxu1 %vm1236_vm2, %v1681_v45 }
 0x533   : > { %3568 = vmatprep.mubr.msk.bf16.mxu1 %vm1236_vm2, %v1682_v54 }
 0x534   : > { %v3857_v39 = vpop.eup %3856 }
 0x53a   : > { %3569 = vmatmul.mubr.msk.bf16.gmra.mrb[20].mxu1 %vm1236_vm2, %v1683_v61 }
 0x53b   : > { %3572 = vmatprep.mubr.msk.bf16.mxu1 %vm1236_vm2, %v1692_v55 }
 0x542   : > { %3573 = vmatmul.mubr.msk.bf16.gmra.mrb[24].mxu1 %vm1236_vm2, %v1693_v36 }
 0x543   : > { %3576 = vmatprep.mubr.msk.bf16.mxu1 %vm1236_vm2, %v1694_v60  ;;  %v1665_v60 = vld [vmem:[#allocation2 + $0x128] sm:$0xff] }
 0x544   : > { %2095 = vmatprep.mubr.bf16.mxu0 %v1665_v60 }
 0x54a   : > { %3577 = vmatmul.mubr.msk.bf16.gmra.mrb[28].mxu1 %vm1236_vm2, %v1695_v40 }
 0x54b   : > { %3580 = vmatprep.mubr.msk.bf16.mxu1 %vm1236_vm2, %v1696_v42 }
 0x552   : > { %3581 = vmatmul.mubr.msk.bf16.gmra.mrb[32].mxu1 %vm1236_vm2, %v1697_v59 }
 0x553   : > { %3584 = vmatprep.mubr.msk.bf16.mxu1 %vm1236_vm2, %v1698_v58 }
 0x55a   : > { %3585 = vmatmul.mubr.msk.bf16.gmra.mrb[36].mxu1 %vm1236_vm2, %v1699_v23 }
 0x5e5   : > { %v3357_v30 = vpop.f32.mrb[0].mxu1 }
 0x5e6   : > { %v3358_v15 = vpop.f32.mrb[1].mxu1 }
 0x5e7   : > { %v3359_v33 = vadd.f32 %v3358_v15, %v3357_v30  ;;  %v3360_v37 = vpop.f32.mrb[2].mxu1 }
 0x5e8   : > { %v3361_v35 = vpop.f32.mrb[3].mxu1 }
 0x5e9   : > { %v4922_v38 = vmul.f32 %v3857_v39, %v3359_v33  ;;  %v3362_v51 = vadd.f32 %v3361_v35, %v3360_v37 }
 0x5eb   : > { %v4924_v32 = vmul.f32 %v3857_v39, %v3362_v51 }
 0x5ed   : > { %v1654_v0 = vpack.c.bf16 %v4924_v32, %v4922_v38  ;;  %v3363_v49 = vpop.f32.mrb[4].mxu1 }
 0x5ee   : > { %v3364_v41 = vpop.f32.mrb[5].mxu1 }
 0x5ef   : > { %v3365_v1 = vadd.f32 %v3364_v41, %v3363_v49  ;;  %v3366_v50 = vpop.f32.mrb[6].mxu1 }
 0x5f0   : > { %v3367_v2 = vpop.f32.mrb[7].mxu1 }
 0x5f1   : > { %v4928_v3 = vmul.f32 %v3857_v39, %v3365_v1  ;;  %v3368_v4 = vadd.f32 %v3367_v2, %v3366_v50 }
 0x5f3   : > { %v4930_v5 = vmul.f32 %v3857_v39, %v3368_v4 }
 0x5f5   : > { %v1655_v6 = vpack.c.bf16 %v4930_v5, %v4928_v3  ;;  %v4934_v17 = vpop.f32.mrb[8].mxu1  ;;  %v3056_v3 = vld [vmem:[%s5845_s4] sm:$0xff]  ;;  %v4155_v5 = vmov 0  }
 0x5f6   : > { %v4936_v63 = vpop.f32.mrb[9].mxu1 }
 0x5f7   : > { %v4938_v7 = vpop.f32.mrb[10].mxu1 }
 0x5f8   : > { %v4940_v62 = vpop.f32.mrb[11].mxu1 }
 0x5fd   : > { %v4942_v57 = vpop.f32.mrb[12].mxu1 }
 0x5fe   : > { %v1911_v46 = vmax.f32 %v4934_v17, %v4942_v57  ;;  %v4946_v56 = vpop.f32.mrb[13].mxu1 }
 0x5ff   : > { %v1909_v8 = vmax.f32 %v4936_v63, %v4946_v56  ;;  %v4950_v53 = vpop.f32.mrb[14].mxu1 }
 0x600   : > { %v1912_v9 = vmax.f32 %v4938_v7, %v4950_v53  ;;  %v4954_v10 = vpop.f32.mrb[15].mxu1 }
 0x601   : > { %v1910_v13 = vmax.f32 %v4940_v62, %v4954_v10 }
 0x605   : > { %v4958_v14 = vpop.f32.mrb[16].mxu1 }
 0x606   : > { %v1915_v16 = vmax.f32 %v1911_v46, %v4958_v14  ;;  %v4961_v19 = vpop.f32.mrb[17].mxu1 }
 0x607   : > { %v1913_v20 = vmax.f32 %v1909_v8, %v4961_v19  ;;  %v4964_v11 = vpop.f32.mrb[18].mxu1 }
 0x608   : > { %v1916_v12 = vmax.f32 %v1912_v9, %v4964_v11  ;;  %v4967_v21 = vpop.f32.mrb[19].mxu1 }
 0x609   : > { %v1914_v22 = vmax.f32 %v1910_v13, %v4967_v21 }
 0x60d   : > { %v4970_v47 = vpop.f32.mrb[20].mxu1 }
 0x60e   : > { %v1919_v48 = vmax.f32 %v1915_v16, %v4970_v47  ;;  %v4973_v28 = vpop.f32.mrb[21].mxu1 }
 0x60f   : > { %v1917_v44 = vmax.f32 %v1913_v20, %v4973_v28  ;;  %v4976_v45 = vpop.f32.mrb[22].mxu1 }
 0x610   : > { %v1920_v55 = vmax.f32 %v1916_v12, %v4976_v45  ;;  %v4979_v54 = vpop.f32.mrb[23].mxu1 }
 0x611   : > { %v1918_v36 = vmax.f32 %v1914_v22, %v4979_v54 }
 0x615   : > { %v4982_v61 = vpop.f32.mrb[24].mxu1 }
 0x616   : > { %v1923_v40 = vmax.f32 %v1919_v48, %v4982_v61  ;;  %v4985_v42 = vpop.f32.mrb[25].mxu1 }
 0x617   : > { %v1921_v59 = vmax.f32 %v1917_v44, %v4985_v42  ;;  %v4988_v58 = vpop.f32.mrb[26].mxu1 }
 0x618   : > { %v1924_v23 = vmax.f32 %v1920_v55, %v4988_v58  ;;  %v4991_v24 = vpop.f32.mrb[27].mxu1 }
 0x619   : > { %v1922_v26 = vmax.f32 %v1918_v36, %v4991_v24 }
 0x61d   : > { %v4994_v29 = vpop.f32.mrb[28].mxu1 }
 0x61e   : > { %v1927_v43 = vmax.f32 %v1923_v40, %v4994_v29  ;;  %v4997_v25 = vpop.f32.mrb[29].mxu1 }
 0x61f   : > { %v1925_v27 = vmax.f32 %v1921_v59, %v4997_v25  ;;  %v5000_v18 = vpop.f32.mrb[30].mxu1 }
 0x620   : > { %v1928_v31 = vmax.f32 %v1924_v23, %v5000_v18  ;;  %v5003_v52 = vpop.f32.mrb[31].mxu1 }
 0x621   : > { %v1926_v34 = vmax.f32 %v1922_v26, %v5003_v52 }
 0x625   : > { %v5006_v30 = vpop.f32.mrb[32].mxu1 }
 0x626   : > { %v1931_v15 = vmax.f32 %v1927_v43, %v5006_v30  ;;  %v5009_v33 = vpop.f32.mrb[33].mxu1 }
 0x627   : > { %v1929_v37 = vmax.f32 %v1925_v27, %v5009_v33  ;;  %v5012_v39 = vpop.f32.mrb[34].mxu1 }
 0x628   : > { %v1932_v35 = vmax.f32 %v1928_v31, %v5012_v39  ;;  %v5015_v51 = vpop.f32.mrb[35].mxu1 }
 0x629   : > { %v1930_v49 = vmax.f32 %v1926_v34, %v5015_v51 }
 0x62d   : > { %v5018_v41 = vpop.f32.mrb[36].mxu1 }
 0x62e   : > { %v1935_v1 = vmax.f32 %v1931_v15, %v5018_v41  ;;  %v5021_v50 = vpop.f32.mrb[37].mxu1 }
 0x62f   : > { %v1933_v2 = vmax.f32 %v1929_v37, %v5021_v50  ;;  %v5024_v4 = vpop.f32.mrb[38].mxu1 }
 0x630   : > { %v1936_v46 = vmax.f32 %v1932_v35, %v5024_v4  ;;  %v5027_v8 = vpop.f32.mrb[39].mxu1 }
 0x631   : > { %v1934_v9 = vmax.f32 %v1930_v49, %v5027_v8 }
 0x632   : > { %v1938_v13 = vmax.f32 %v1935_v1, %v1936_v46 }
 0x633   : > { %v1937_v16 = vmax.f32 %v1933_v2, %v1934_v9 }
 0x635   : > { %v1939_v20 = vmax.f32 %v1937_v16, %v1938_v13 }
 0x637   : > { %v1940_v12 = vrot.slane %v1939_v20, 4 }
 0x639   : > { %v1941_v22 = vmax.f32 %v1939_v20, %v1940_v12 }
 0x63b   : > { %v1942_v48 = vrot.slane %v1941_v22, 2 }
 0x63d   : > { %v1943_v44 = vmax.f32 %v1941_v22, %v1942_v48 }
 0x63f   : > { %v1944_v55 = vrot.slane %v1943_v44, 1 }
 0x641   : > { %v5030_v36 = vmax.f32 %v1943_v44, %v1944_v55 }
 0x643   : > { %v1946_v60 = vsub.f32 %v4936_v63, %v5030_v36  ;;  %v1947_v40 = vsub.f32 %v4940_v62, %v5030_v36  ;;  %v1948_v59 = vsub.f32 %v4934_v17, %v5030_v36  ;;  %v1949_v23 = vsub.f32 %v4938_v7, %v5030_v36 }
 0x644   : > { %v1950_v26 = vsub.f32 %v4946_v56, %v5030_v36  ;;  %v1951_v43 = vsub.f32 %v4954_v10, %v5030_v36  ;;  %v1952_v27 = vsub.f32 %v4942_v57, %v5030_v36  ;;  %v1953_v63 = vsub.f32 %v4950_v53, %v5030_v36 }
 0x645   : > { %v1954_v62 = vsub.f32 %v4961_v19, %v5030_v36  ;;  %v1955_v17 = vsub.f32 %v4967_v21, %v5030_v36  ;;  %v1956_v7 = vsub.f32 %v4958_v14, %v5030_v36  ;;  %v1957_v56 = vsub.f32 %v4964_v11, %v5030_v36 }
 0x646   : > { %v1958_v10 = vsub.f32 %v4973_v28, %v5030_v36  ;;  %v1959_v57 = vsub.f32 %v4979_v54, %v5030_v36  ;;  %v1960_v53 = vsub.f32 %v4970_v47, %v5030_v36  ;;  %v1961_v19 = vsub.f32 %v4976_v45, %v5030_v36 }
 0x647   : > { %v1962_v21 = vsub.f32 %v4985_v42, %v5030_v36  ;;  %v1963_v14 = vsub.f32 %v4991_v24, %v5030_v36  ;;  %v1964_v11 = vsub.f32 %v4982_v61, %v5030_v36  ;;  %v1965_v28 = vsub.f32 %v4988_v58, %v5030_v36 }
 0x648   : > { %v1966_v54 = vsub.f32 %v4997_v25, %v5030_v36  ;;  %v1967_v47 = vsub.f32 %v5003_v52, %v5030_v36  ;;  %v1968_v45 = vsub.f32 %v4994_v29, %v5030_v36  ;;  %v1969_v42 = vsub.f32 %v5000_v18, %v5030_v36 }
 0x649   : > { %v1970_v24 = vsub.f32 %v5009_v33, %v5030_v36  ;;  %v1971_v61 = vsub.f32 %v5015_v51, %v5030_v36  ;;  %v1972_v58 = vsub.f32 %v5006_v30, %v5030_v36  ;;  %v1973_v25 = vsub.f32 %v5012_v39, %v5030_v36 }
 0x64a   : > { %v1974_v31 = vsub.f32 %v5021_v50, %v5030_v36  ;;  %v1975_v29 = vsub.f32 %v5027_v8, %v5030_v36  ;;  %v1976_v18 = vsub.f32 %v5018_v41, %v5030_v36  ;;  %v1977_v52 = vsub.f32 %v5024_v4, %v5030_v36 }
 0x64b   : > { %3858 = vpow2.f32 %v1946_v60 }
 0x64c   : > { %3860 = vpow2.f32 %v1947_v40 }
 0x64d   : > { %3862 = vpow2.f32 %v1948_v59 }
 0x64e   : > { %3864 = vpow2.f32 %v1949_v23 }
 0x64f   : > { %3866 = vpow2.f32 %v1950_v26 }
 0x650   : > { %3868 = vpow2.f32 %v1951_v43 }
 0x651   : > { %3870 = vpow2.f32 %v1952_v27 }
 0x652   : > { %3872 = vpow2.f32 %v1953_v63 }
 0x653   : > { %3874 = vpow2.f32 %v1954_v62 }
 0x654   : > { %3876 = vpow2.f32 %v1955_v17 }
 0x655   : > { %v5096_v34 = vpop.eup %3858  ;;  %3878 = vpow2.f32 %v1956_v7 }
 0x656   : > { %v5098_v30 = vpop.eup %3860  ;;  %3880 = vpow2.f32 %v1957_v56 }
 0x657   : > { %v5100_v15 = vpop.eup %3862  ;;  %3882 = vpow2.f32 %v1958_v10  ;;  %v2010_v33 = vadd.f32 %v5098_v30, %v5096_v34  ;;  %v2047_v37 = vpack.c.bf16 %v5098_v30, %v5096_v34 }
 0x658   : > { %v5106_v35 = vpop.eup %3864  ;;  %3884 = vpow2.f32 %v1959_v57 }
 0x659   : > { %v5108_v51 = vpop.eup %3866  ;;  %3886 = vpow2.f32 %v1960_v53  ;;  %v2011_v49 = vadd.f32 %v5100_v15, %v2010_v33  ;;  %v2048_v1 = vpack.c.bf16 %v5106_v35, %v5100_v15 }
 0x65a   : > { %v5113_v2 = vpop.eup %3868  ;;  %3888 = vpow2.f32 %v1961_v19 }
 0x65b   : > { %v5115_v46 = vpop.eup %3870  ;;  %3890 = vpow2.f32 %v1962_v21  ;;  %v2012_v9 = vadd.f32 %v5106_v35, %v2011_v49  ;;  %v2049_v13 = vpack.c.bf16 %v5113_v2, %v5108_v51 }
 0x65c   : > { %v5120_v16 = vpop.eup %3872  ;;  %3892 = vpow2.f32 %v1963_v14 }
 0x65d   : > { %v5122_v20 = vpop.eup %3874  ;;  %3894 = vpow2.f32 %v1964_v11  ;;  %v2013_v12 = vadd.f32 %v5108_v51, %v2012_v9  ;;  %v2050_v22 = vpack.c.bf16 %v5120_v16, %v5115_v46 }
 0x65e   : > { %v5127_v48 = vpop.eup %3876  ;;  %3896 = vpow2.f32 %v1965_v28 }
 0x65f   : > { %v5129_v44 = vpop.eup %3878  ;;  %3898 = vpow2.f32 %v1966_v54  ;;  %v2014_v55 = vadd.f32 %v5113_v2, %v2013_v12  ;;  %v2051_v60 = vpack.c.bf16 %v5127_v48, %v5122_v20  ;;  %v2121_v12 = vld [vmem:[%s4631_s15 + $0x40] sm:$0xff] }
 0x660   : > { %v5134_v40 = vpop.eup %3880  ;;  %3900 = vpow2.f32 %v1967_v47 }
 0x661   : > { %v5136_v59 = vpop.eup %3882  ;;  %3902 = vpow2.f32 %v1968_v45  ;;  %v2015_v23 = vadd.f32 %v5115_v46, %v2014_v55  ;;  %v2052_v26 = vpack.c.bf16 %v5134_v40, %v5129_v44  ;;  %v1667_v55 = vld [vmem:[#allocation2 + $0x138] sm:$0xff] }
 0x662   : > { %v5141_v43 = vpop.eup %3884  ;;  %3904 = vpow2.f32 %v1969_v42 }
 0x663   : > { %v5143_v27 = vpop.eup %3886  ;;  %3906 = vpow2.f32 %v1970_v24  ;;  %v2016_v63 = vadd.f32 %v5120_v16, %v2015_v23  ;;  %v2053_v62 = vpack.c.bf16 %v5141_v43, %v5136_v59  ;;  %v2139_v16 = vpop.trf.xlu0 }
 0x664   : > { %v5148_v17 = vpop.eup %3888  ;;  %3908 = vpow2.f32 %v1971_v61 }
 0x665   : > { %v3891_v7 = vpop.eup %3890  ;;  %3910 = vpow2.f32 %v1972_v58  ;;  %v2017_v56 = vadd.f32 %v5122_v20, %v2016_v63  ;;  %v2054_v10 = vpack.c.bf16 %v5148_v17, %v5143_v27  ;;  %v1664_v20 = vld [vmem:[#allocation2 + $0x120] sm:$0xff] }
 0x666   : > { %v3893_v57 = vpop.eup %3892  ;;  %3912 = vpow2.f32 %v1973_v25 }
 0x667   : > { %v3895_v53 = vpop.eup %3894  ;;  %3914 = vpow2.f32 %v1974_v31  ;;  %v2018_v19 = vadd.f32 %v5127_v48, %v2017_v56  ;;  %v2055_v21 = vpack.c.bf16 %v3893_v57, %v3891_v7 }
 0x668   : > { %v3897_v14 = vpop.eup %3896  ;;  %3916 = vpow2.f32 %v1975_v29 }
 0x669   : > { %v3899_v11 = vpop.eup %3898  ;;  %3918 = vpow2.f32 %v1976_v18  ;;  %v2019_v39 = vadd.f32 %v5129_v44, %v2018_v19  ;;  %3387 = vmatprep.subr.bf16.mxu0 %v2055_v21  ;;  %v2056_v28 = vpack.c.bf16 %v3897_v14, %v3895_v53  ;;  %v2140_v44 = vpop.trf.xlu0 }
 0x66a   : > { %v3901_v54 = vpop.eup %3900  ;;  %3920 = vpow2.f32 %v1977_v52  ;;  %3388 = vmatpush3.bf16.msra.mxu0 %v2047_v37 }
 0x66b   : > { %v3903_v50 = vpop.eup %3902  ;;  %v2020_v47 = vadd.f32 %v5134_v40, %v2019_v39  ;;  %3389 = vmatprep.subr.bf16.mxu0 %v2056_v28  ;;  %v2057_v8 = vpack.c.bf16 %v3901_v54, %v3899_v11 }
 0x66c   : > { %v3905_v45 = vpop.eup %3904 }
 0x66d   : > { %v3907_v42 = vpop.eup %3906  ;;  %v2021_v41 = vadd.f32 %v5136_v59, %v2020_v47  ;;  %v2058_v24 = vpack.c.bf16 %v3905_v45, %v3903_v50  ;;  %v2588_v47 = vld [vmem:[#allocation2 + $0xf0] sm:$0xff] }
 0x66e   : > { %v3909_v61 = vpop.eup %3908  ;;  %3390 = vmatpush3.bf16.msra.mxu0 %v2048_v1 }
 0x66f   : > { %v3911_v58 = vpop.eup %3910  ;;  %v2022_v25 = vadd.f32 %v5141_v43, %v2021_v41  ;;  %3391 = vmatprep.subr.bf16.mxu0 %v2057_v8  ;;  %v2059_v31 = vpack.c.bf16 %v3909_v61, %v3907_v42 }
 0x670   : > { %v3913_v4 = vpop.eup %3912 }
 0x671   : > { %v3915_v36 = vpop.eup %3914  ;;  %v2023_v29 = vadd.f32 %v5143_v27, %v2022_v25  ;;  %v2060_v18 = vpack.c.bf16 %v3913_v4, %v3911_v58  ;;  %v2141_v27 = vpop.trf.xlu0  ;;  %v2589_v25 = vld [vmem:[#allocation2 + $0xf8] sm:$0xff] }
 0x672   : > { %v3917_v52 = vpop.eup %3916  ;;  %3392 = vmatpush3.bf16.msra.mxu0 %v2049_v13 }
 0x673   : > { %v3919_v34 = vpop.eup %3918  ;;  %v2024_v30 = vadd.f32 %v5148_v17, %v2023_v29  ;;  %3393 = vmatprep.subr.bf16.mxu0 %v2058_v24  ;;  %v2061_v15 = vpack.c.bf16 %v3917_v52, %v3915_v36 }
 0x674   : > { %v3921_v33 = vpop.eup %3920 }
 0x675   : > { %v2025_v37 = vadd.f32 %v3891_v7, %v2024_v30  ;;  %v2062_v35 = vpack.c.bf16 %v3921_v33, %v3919_v34  ;;  %v2142_v17 = vpop.trf.xlu0 }
 0x676   : > { %3394 = vmatpush3.bf16.msra.mxu0 %v2050_v22 }
 0x677   : > { %v2026_v49 = vadd.f32 %v3893_v57, %v2025_v37  ;;  %3395 = vmatprep.subr.bf16.mxu0 %v2059_v31 }
 0x679   : > { %v2027_v1 = vadd.f32 %v3895_v53, %v2026_v49  ;;  %v2143_v7 = vpop.trf.xlu0 }
 0x67a   : > { %3396 = vmatpush3.bf16.msra.mxu0 %v2051_v60  ;;  %v2122_v60 = vld [vmem:[%s4631_s15 + $0x50] sm:$0xff] }
 0x67b   : > { %v2028_v51 = vadd.f32 %v3897_v14, %v2027_v1  ;;  %3397 = vmatprep.subr.bf16.mxu0 %v2060_v18 }
 0x67d   : > { %v2029_v2 = vadd.f32 %v3899_v11, %v2028_v51  ;;  %v2144_v56 = vpop.trf.xlu0 }
 0x67e   : > { %3398 = vmatpush3.bf16.msra.mxu0 %v2052_v26  ;;  %v1666_v26 = vld [vmem:[#allocation2 + $0x130] sm:$0xff] }
 0x67f   : > { %v2030_v9 = vadd.f32 %v3901_v54, %v2029_v2  ;;  %3399 = vmatprep.subr.bf16.mxu0 %v2061_v15 }
 0x681   : > { %v2031_v46 = vadd.f32 %v3903_v50, %v2030_v9  ;;  %v2145_v57 = vpop.trf.xlu0  ;;  %v2586_v50 = vld [vmem:[#allocation2 + $0xe0] sm:$0xff] }
 0x682   : > { %3400 = vmatpush3.bf16.msra.mxu0 %v2053_v62  ;;  %2594 = vxpose.xlu0.c.b16.start [1/2] (short) %v2586_v50, 128  ;;  %v2128_v50 = vld [vmem:[#allocation2 + $0x148] sm:$0xff] }
 0x683   : > { %v2032_v13 = vadd.f32 %v3905_v45, %v2031_v46  ;;  %3401 = vmatprep.subr.bf16.mxu0 %v2062_v35  ;;  %2558 = vmatprep.mubr.bf16.mxu1 %v2128_v50 }
 0x685   : > { %v2033_v22 = vadd.f32 %v3907_v42, %v2032_v13  ;;  %v2146_v19 = vpop.trf.xlu0 }
 0x686   : > { %3402 = vmatpush3.bf16.msra.mxu0 %v2054_v10  ;;  %v2155_v10 = vpop.trf.xlu1  ;;  %2595 = vxpose.xlu0.c.b16.end [2/2] (short) %v2588_v47, 128 }
 0x687   : > { %v2034_v48 = vadd.f32 %v3909_v61, %v2033_v22  ;;  %3588 = vmatprep.subr.bf16.mxu0 %v2121_v12 }
 0x689   : > { %v2035_v59 = vadd.f32 %v3911_v58, %v2034_v48  ;;  %2096 = vmatmul.mubr.bf16.vlgmr.msra.gmra.mrb[32].mxu0 %v1664_v20  ;;  %v2587_v58 = vld [vmem:[#allocation2 + $0xe8] sm:$0xff] }
 0x68a   : > { %2103 = vmatprep.mubr.bf16.mxu0 %v1667_v55  ;;  %3589 = vmatpush3.bf16.msra.mxu0 %v2121_v12  ;;  %v2156_v53 = vpop.trf.xlu1 }
 0x68b   : > { %v2036_v40 = vadd.f32 %v3913_v4, %v2035_v59  ;;  %3590 = vmatprep.subr.bf16.mxu0 %v2122_v60  ;;  %2610 = vxpose.xlu1.c.b16.start [1/2] (short) %v2587_v58, 128 }
 0x68d   : > { %v2037_v23 = vadd.f32 %v3915_v36, %v2036_v40 }
 0x68e   : > { %3591 = vmatpush3.bf16.msra.mxu0 %v2122_v60  ;;  %v2157_v21 = vpop.trf.xlu1 }
 0x68f   : > { %v2038_v43 = vadd.f32 %v3917_v52, %v2037_v23  ;;  %2611 = vxpose.xlu1.c.b16.end [2/2] (short) %v2589_v25, 128  ;;  %3791 = vset.pattern.permute.xlu0 %v4155_v5 }
 0x691   : > { %v2039_v63 = vadd.f32 %v3919_v34, %v2038_v43  ;;  %2104 = vmatmul.mubr.bf16.gmra.mrb[36].mxu0 %v1666_v26 }
 0x692   : > { %3592 = vmatprep.mubr.msk.bf16.mxu0 %vm1236_vm2, %v2139_v16  ;;  %v2158_v14 = vpop.trf.xlu1 }
 0x693   : > { %v2040_v62 = vadd.f32 %v3921_v33, %v2039_v63 }
 0x695   : > { %v2041_v8 = vrot.slane %v2040_v62, 4 }
 0x696   : > { %v2159_v11 = vpop.trf.xlu1 }
 0x697   : > { %v2042_v45 = vadd.f32 %v2041_v8, %v2040_v62 }
 0x699   : > { %3593 = vmatmul.mubr.msk.bf16.vlgmr.msra.gmra.mrb[40].mxu0 %vm1236_vm2, %v2140_v44  ;;  %v2043_v42 = vrot.slane %v2042_v45, 2 }
 0x69a   : > { %3596 = vmatprep.mubr.msk.bf16.mxu0 %vm1236_vm2, %v2141_v27  ;;  %v2160_v39 = vpop.trf.xlu1 }
 0x69b   : > { %v2044_v41 = vadd.f32 %v2043_v42, %v2042_v45 }
 0x69d   : > { %v2045_v24 = vrot.slane %v2044_v41, 1 }
 0x69e   : > { %v2161_v28 = vpop.trf.xlu1 }
 0x69f   : > { %v2046_v61 = vadd.f32 %v2045_v24, %v2044_v41 }
 0x6a1   : > { %3597 = vmatmul.mubr.msk.bf16.gmra.mrb[44].mxu0 %vm1236_vm2, %v2142_v17  ;;  %3922 = vrcp.f32 %v2046_v61 }
 0x6a2   : > { %3600 = vmatprep.mubr.msk.bf16.mxu0 %vm1236_vm2, %v2143_v7  ;;  %v2162_v54 = vpop.trf.xlu1 }
 0x6a7   : > { %3059 = vperm.xlu0 %3791, %v3056_v3  }
 0x6a9   : > { %3601 = vmatmul.mubr.msk.bf16.gmra.mrb[48].mxu0 %vm1236_vm2, %v2144_v56 }
 0x6aa   : > { %3604 = vmatprep.mubr.msk.bf16.mxu0 %vm1236_vm2, %v2145_v57 }
 0x6ab   : > { %v3923_v18 = vpop.eup %3922 }
 0x6b1   : > { %3605 = vmatmul.mubr.msk.bf16.gmra.mrb[52].mxu0 %vm1236_vm2, %v2146_v19 }
 0x6b2   : > { %3608 = vmatprep.mubr.msk.bf16.mxu0 %vm1236_vm2, %v2155_v10 }
 0x6b9   : > { %3609 = vmatmul.mubr.msk.bf16.gmra.mrb[56].mxu0 %vm1236_vm2, %v2156_v53 }
 0x6ba   : > { %3612 = vmatprep.mubr.msk.bf16.mxu0 %vm1236_vm2, %v2157_v21 }
 0x6c1   : > { %3613 = vmatmul.mubr.msk.bf16.gmra.mrb[60].mxu0 %vm1236_vm2, %v2158_v14 }
 0x6c2   : > { %3616 = vmatprep.mubr.msk.bf16.mxu0 %vm1236_vm2, %v2159_v11 }
 0x6c9   : > { %3617 = vmatmul.mubr.msk.bf16.gmra.mrb[64].mxu0 %vm1236_vm2, %v2160_v39 }
 0x6ca   : > { %3620 = vmatprep.mubr.msk.bf16.mxu0 %vm1236_vm2, %v2161_v28 }
 0x6d1   : > { %3621 = vmatmul.mubr.msk.bf16.gmra.mrb[68].mxu0 %vm1236_vm2, %v2162_v54 }
 0x75c   : > { %v3403_v31 = vpop.f32.mrb[32].mxu0 }
 0x75d   : > { %v3404_v4 = vpop.f32.mrb[33].mxu0 }
 0x75e   : > { %v3405_v36 = vadd.f32 %v3404_v4, %v3403_v31  ;;  %v3406_v29 = vpop.f32.mrb[34].mxu0 }
 0x75f   : > { %v3407_v52 = vpop.f32.mrb[35].mxu0 }
 0x760   : > { %v5205_v34 = vmul.f32 %v3923_v18, %v3405_v36  ;;  %v3408_v30 = vadd.f32 %v3407_v52, %v3406_v29 }
 0x762   : > { %v5207_v15 = vmul.f32 %v3923_v18, %v3408_v30 }
 0x764   : > { %v2117_v33 = vpack.c.bf16 %v5207_v15, %v5205_v34  ;;  %v3409_v37 = vpop.f32.mrb[36].mxu0 }
 0x765   : > { %v3410_v35 = vpop.f32.mrb[37].mxu0 }
 0x766   : > { %v3411_v49 = vadd.f32 %v3410_v35, %v3409_v37  ;;  %v3412_v1 = vpop.f32.mrb[38].mxu0 }
 0x767   : > { %v3413_v51 = vpop.f32.mrb[39].mxu0 }
 0x768   : > { %v5211_v2 = vmul.f32 %v3923_v18, %v3411_v49  ;;  %v3414_v9 = vadd.f32 %v3413_v51, %v3412_v1 }
 0x76a   : > { %v5213_v46 = vmul.f32 %v3923_v18, %v3414_v9 }
 0x76c   : > { %v5217_v16 = vpop.f32.mrb[40].mxu0  ;;  %v5850_v38 = vpack.c.bf16 %v5213_v46, %v5211_v2 }
 0x76d   : > { %v5219_v12 = vpop.f32.mrb[41].mxu0 }
 0x76e   : > { %v5221_v22 = vpop.f32.mrb[42].mxu0 }
 0x76f   : > { %v5223_v20 = vpop.f32.mrb[43].mxu0 }
 0x774   : > { %v5225_v48 = vpop.f32.mrb[44].mxu0 }
 0x775   : > { %v2374_v55 = vmax.f32 %v5217_v16, %v5225_v48  ;;  %v5229_v60 = vpop.f32.mrb[45].mxu0 }
 0x776   : > { %v2372_v59 = vmax.f32 %v5219_v12, %v5229_v60  ;;  %v5233_v44 = vpop.f32.mrb[46].mxu0 }
 0x777   : > { %v2375_v40 = vmax.f32 %v5221_v22, %v5233_v44  ;;  %v5237_v23 = vpop.f32.mrb[47].mxu0 }
 0x778   : > { %v2373_v26 = vmax.f32 %v5223_v20, %v5237_v23 }
 0x77c   : > { %v5241_v43 = vpop.f32.mrb[48].mxu0 }
 0x77d   : > { %v2378_v27 = vmax.f32 %v2374_v55, %v5241_v43  ;;  %v5244_v63 = vpop.f32.mrb[49].mxu0 }
 0x77e   : > { %v2376_v62 = vmax.f32 %v2372_v59, %v5244_v63  ;;  %v5247_v17 = vpop.f32.mrb[50].mxu0 }
 0x77f   : > { %v2379_v7 = vmax.f32 %v2375_v40, %v5247_v17  ;;  %v5250_v56 = vpop.f32.mrb[51].mxu0 }
 0x780   : > { %v2377_v10 = vmax.f32 %v2373_v26, %v5250_v56 }
 0x784   : > { %v5253_v57 = vpop.f32.mrb[52].mxu0 }
 0x785   : > { %v2382_v53 = vmax.f32 %v2378_v27, %v5253_v57  ;;  %v5256_v19 = vpop.f32.mrb[53].mxu0 }
 0x786   : > { %v2380_v21 = vmax.f32 %v2376_v62, %v5256_v19  ;;  %v5259_v14 = vpop.f32.mrb[54].mxu0 }
 0x787   : > { %v2383_v11 = vmax.f32 %v2379_v7, %v5259_v14  ;;  %v5262_v39 = vpop.f32.mrb[55].mxu0 }
 0x788   : > { %v2381_v28 = vmax.f32 %v2377_v10, %v5262_v39 }
 0x78c   : > { %v5265_v54 = vpop.f32.mrb[56].mxu0 }
 0x78d   : > { %v2386_v47 = vmax.f32 %v2382_v53, %v5265_v54  ;;  %v5268_v8 = vpop.f32.mrb[57].mxu0 }
 0x78e   : > { %v2384_v45 = vmax.f32 %v2380_v21, %v5268_v8  ;;  %v5271_v42 = vpop.f32.mrb[58].mxu0 }
 0x78f   : > { %v2387_v41 = vmax.f32 %v2383_v11, %v5271_v42  ;;  %v5274_v24 = vpop.f32.mrb[59].mxu0 }
 0x790   : > { %v2385_v61 = vmax.f32 %v2381_v28, %v5274_v24 }
 0x794   : > { %v5277_v58 = vpop.f32.mrb[60].mxu0 }
 0x795   : > { %v2390_v25 = vmax.f32 %v2386_v47, %v5277_v58  ;;  %v5280_v31 = vpop.f32.mrb[61].mxu0 }
 0x796   : > { %v2388_v4 = vmax.f32 %v2384_v45, %v5280_v31  ;;  %v5283_v36 = vpop.f32.mrb[62].mxu0 }
 0x797   : > { %v2391_v29 = vmax.f32 %v2387_v41, %v5283_v36  ;;  %v5286_v18 = vpop.f32.mrb[63].mxu0 }
 0x798   : > { %v2389_v52 = vmax.f32 %v2385_v61, %v5286_v18 }
 0x79c   : > { %v5289_v30 = vpop.f32.mrb[64].mxu0 }
 0x79d   : > { %v2394_v37 = vmax.f32 %v2390_v25, %v5289_v30  ;;  %v5292_v35 = vpop.f32.mrb[65].mxu0 }
 0x79e   : > { %v2392_v49 = vmax.f32 %v2388_v4, %v5292_v35  ;;  %v5295_v1 = vpop.f32.mrb[66].mxu0 }
 0x79f   : > { %v2395_v51 = vmax.f32 %v2391_v29, %v5295_v1  ;;  %v5298_v9 = vpop.f32.mrb[67].mxu0 }
 0x7a0   : > { %v2393_v55 = vmax.f32 %v2389_v52, %v5298_v9 }
 0x7a4   : > { %v5301_v59 = vpop.f32.mrb[68].mxu0 }
 0x7a5   : > { %v2398_v40 = vmax.f32 %v2394_v37, %v5301_v59  ;;  %v5304_v26 = vpop.f32.mrb[69].mxu0 }
 0x7a6   : > { %v2396_v27 = vmax.f32 %v2392_v49, %v5304_v26  ;;  %v5307_v62 = vpop.f32.mrb[70].mxu0 }
 0x7a7   : > { %v2399_v7 = vmax.f32 %v2395_v51, %v5307_v62  ;;  %v5310_v10 = vpop.f32.mrb[71].mxu0 }
 0x7a8   : > { %v2397_v53 = vmax.f32 %v2393_v55, %v5310_v10 }
 0x7a9   : > { %v2401_v21 = vmax.f32 %v2398_v40, %v2399_v7 }
 0x7aa   : > { %v2400_v11 = vmax.f32 %v2396_v27, %v2397_v53 }
 0x7ac   : > { %v2402_v28 = vmax.f32 %v2400_v11, %v2401_v21 }
 0x7ae   : > { %v2403_v50 = vrot.slane %v2402_v28, 4 }
 0x7b0   : > { %v2404_v47 = vmax.f32 %v2402_v28, %v2403_v50 }
 0x7b2   : > { %v2405_v45 = vrot.slane %v2404_v47, 2 }
 0x7b4   : > { %v2406_v41 = vmax.f32 %v2404_v47, %v2405_v45 }
 0x7b6   : > { %v2407_v61 = vrot.slane %v2406_v41, 1 }
 0x7b8   : > { %v5313_v25 = vmax.f32 %v2406_v41, %v2407_v61 }
 0x7ba   : > { %v2409_v4 = vsub.f32 %v5219_v12, %v5313_v25  ;;  %v2410_v29 = vsub.f32 %v5223_v20, %v5313_v25  ;;  %v2411_v52 = vsub.f32 %v5217_v16, %v5313_v25  ;;  %v2412_v37 = vsub.f32 %v5221_v22, %v5313_v25 }
 0x7bb   : > { %v2413_v49 = vsub.f32 %v5229_v60, %v5313_v25  ;;  %v2414_v51 = vsub.f32 %v5237_v23, %v5313_v25  ;;  %v2415_v55 = vsub.f32 %v5225_v48, %v5313_v25  ;;  %v2416_v12 = vsub.f32 %v5233_v44, %v5313_v25 }
 0x7bc   : > { %v2417_v20 = vsub.f32 %v5244_v63, %v5313_v25  ;;  %v2418_v16 = vsub.f32 %v5250_v56, %v5313_v25  ;;  %v2419_v22 = vsub.f32 %v5241_v43, %v5313_v25  ;;  %v2420_v60 = vsub.f32 %v5247_v17, %v5313_v25 }
 0x7bd   : > { %v2421_v23 = vsub.f32 %v5256_v19, %v5313_v25  ;;  %v2422_v48 = vsub.f32 %v5262_v39, %v5313_v25  ;;  %v2423_v44 = vsub.f32 %v5253_v57, %v5313_v25  ;;  %v2424_v63 = vsub.f32 %v5259_v14, %v5313_v25 }
 0x7be   : > { %v2425_v56 = vsub.f32 %v5268_v8, %v5313_v25  ;;  %v2426_v43 = vsub.f32 %v5274_v24, %v5313_v25  ;;  %v2427_v17 = vsub.f32 %v5265_v54, %v5313_v25  ;;  %v2428_v19 = vsub.f32 %v5271_v42, %v5313_v25 }
 0x7bf   : > { %v2429_v39 = vsub.f32 %v5280_v31, %v5313_v25  ;;  %v2430_v57 = vsub.f32 %v5286_v18, %v5313_v25  ;;  %v2431_v14 = vsub.f32 %v5277_v58, %v5313_v25  ;;  %v2432_v8 = vsub.f32 %v5283_v36, %v5313_v25 }
 0x7c0   : > { %v2433_v24 = vsub.f32 %v5292_v35, %v5313_v25  ;;  %v2434_v54 = vsub.f32 %v5298_v9, %v5313_v25  ;;  %v2435_v42 = vsub.f32 %v5289_v30, %v5313_v25  ;;  %v2436_v31 = vsub.f32 %v5295_v1, %v5313_v25 }
 0x7c1   : > { %v2437_v18 = vsub.f32 %v5304_v26, %v5313_v25  ;;  %v2438_v58 = vsub.f32 %v5310_v10, %v5313_v25  ;;  %v2439_v36 = vsub.f32 %v5301_v59, %v5313_v25  ;;  %v2440_v35 = vsub.f32 %v5307_v62, %v5313_v25 }
 0x7c2   : > { %3924 = vpow2.f32 %v2409_v4 }
 0x7c3   : > { %3926 = vpow2.f32 %v2410_v29 }
 0x7c4   : > { %3928 = vpow2.f32 %v2411_v52 }
 0x7c5   : > { %3930 = vpow2.f32 %v2412_v37 }
 0x7c6   : > { %3932 = vpow2.f32 %v2413_v49 }
 0x7c7   : > { %3934 = vpow2.f32 %v2414_v51 }
 0x7c8   : > { %3936 = vpow2.f32 %v2415_v55 }
 0x7c9   : > { %3938 = vpow2.f32 %v2416_v12 }
 0x7ca   : > { %3940 = vpow2.f32 %v2417_v20 }
 0x7cb   : > { %3942 = vpow2.f32 %v2418_v16 }
 0x7cc   : > { %v5379_v30 = vpop.eup %3924  ;;  %3944 = vpow2.f32 %v2419_v22 }
 0x7cd   : > { %v5381_v9 = vpop.eup %3926  ;;  %3946 = vpow2.f32 %v2420_v60 }
 0x7ce   : > { %v5383_v40 = vpop.eup %3928  ;;  %3948 = vpow2.f32 %v2421_v23  ;;  %v2473_v27 = vadd.f32 %v5381_v9, %v5379_v30  ;;  %v2510_v7 = vpack.c.bf16 %v5381_v9, %v5379_v30 }
 0x7cf   : > { %v5389_v53 = vpop.eup %3930  ;;  %3950 = vpow2.f32 %v2422_v48 }
 0x7d0   : > { %v5391_v21 = vpop.eup %3932  ;;  %3952 = vpow2.f32 %v2423_v44  ;;  %v2474_v11 = vadd.f32 %v5383_v40, %v2473_v27  ;;  %v2511_v28 = vpack.c.bf16 %v5389_v53, %v5383_v40 }
 0x7d1   : > { %v5396_v50 = vpop.eup %3934  ;;  %3954 = vpow2.f32 %v2424_v63 }
 0x7d2   : > { %v5398_v47 = vpop.eup %3936  ;;  %3956 = vpow2.f32 %v2425_v56  ;;  %v2475_v45 = vadd.f32 %v5389_v53, %v2474_v11  ;;  %v2512_v41 = vpack.c.bf16 %v5396_v50, %v5391_v21 }
 0x7d3   : > { %v5403_v61 = vpop.eup %3938  ;;  %3958 = vpow2.f32 %v2426_v43 }
 0x7d4   : > { %v5405_v4 = vpop.eup %3940  ;;  %3960 = vpow2.f32 %v2427_v17  ;;  %v2476_v29 = vadd.f32 %v5391_v21, %v2475_v45  ;;  %v2513_v52 = vpack.c.bf16 %v5403_v61, %v5398_v47 }
 0x7d5   : > { %v5410_v37 = vpop.eup %3942  ;;  %3962 = vpow2.f32 %v2428_v19 }
 0x7d6   : > { %v5412_v49 = vpop.eup %3944  ;;  %3964 = vpow2.f32 %v2429_v39  ;;  %v2477_v51 = vadd.f32 %v5396_v50, %v2476_v29  ;;  %v2514_v55 = vpack.c.bf16 %v5410_v37, %v5405_v4 }
 0x7d7   : > { %v5417_v12 = vpop.eup %3946  ;;  %3966 = vpow2.f32 %v2430_v57 }
 0x7d8   : > { %v5419_v20 = vpop.eup %3948  ;;  %3968 = vpow2.f32 %v2431_v14  ;;  %v2478_v16 = vadd.f32 %v5398_v47, %v2477_v51  ;;  %v2515_v22 = vpack.c.bf16 %v5417_v12, %v5412_v49 }
 0x7d9   : > { %v5424_v60 = vpop.eup %3950  ;;  %3970 = vpow2.f32 %v2432_v8 }
 0x7da   : > { %v5426_v23 = vpop.eup %3952  ;;  %3972 = vpow2.f32 %v2433_v24  ;;  %v2479_v48 = vadd.f32 %v5403_v61, %v2478_v16  ;;  %v2516_v44 = vpack.c.bf16 %v5424_v60, %v5419_v20 }
 0x7db   : > { %v5431_v63 = vpop.eup %3954  ;;  %3974 = vpow2.f32 %v2434_v54 }
 0x7dc   : > { %v3957_v56 = vpop.eup %3956  ;;  %3976 = vpow2.f32 %v2435_v42  ;;  %v2480_v43 = vadd.f32 %v5405_v4, %v2479_v48  ;;  %v2517_v17 = vpack.c.bf16 %v5431_v63, %v5426_v23  ;;  %v2127_v4 = vld [vmem:[#allocation2 + $0x140] sm:$0xff] }
 0x7dd   : > { %v3959_v19 = vpop.eup %3958  ;;  %3978 = vpow2.f32 %v2436_v31 }
 0x7de   : > { %v3961_v39 = vpop.eup %3960  ;;  %3980 = vpow2.f32 %v2437_v18  ;;  %v2481_v57 = vadd.f32 %v5410_v37, %v2480_v43  ;;  %v2518_v14 = vpack.c.bf16 %v3959_v19, %v3957_v56 }
 0x7df   : > { %v3963_v8 = vpop.eup %3962  ;;  %3982 = vpow2.f32 %v2438_v58 }
 0x7e0   : > { %v3965_v24 = vpop.eup %3964  ;;  %3984 = vpow2.f32 %v2439_v36  ;;  %v2482_v1 = vadd.f32 %v5412_v49, %v2481_v57  ;;  %3433 = vmatprep.subr.bf16.mxu1 %v2518_v14  ;;  %v2519_v54 = vpack.c.bf16 %v3963_v8, %v3961_v39 }
 0x7e1   : > { %v3967_v42 = vpop.eup %3966  ;;  %3986 = vpow2.f32 %v2440_v35  ;;  %3434 = vmatpush3.bf16.msra.mxu1 %v2510_v7 }
 0x7e2   : > { %v3969_v26 = vpop.eup %3968  ;;  %v2483_v31 = vadd.f32 %v5417_v12, %v2482_v1  ;;  %3435 = vmatprep.subr.bf16.mxu1 %v2519_v54  ;;  %v2520_v10 = vpack.c.bf16 %v3967_v42, %v3965_v24 }
 0x7e3   : > { %v3971_v18 = vpop.eup %3970 }
 0x7e4   : > { %v3973_v58 = vpop.eup %3972  ;;  %v2484_v59 = vadd.f32 %v5419_v20, %v2483_v31  ;;  %v2521_v36 = vpack.c.bf16 %v3971_v18, %v3969_v26 }
 0x7e5   : > { %v3975_v30 = vpop.eup %3974  ;;  %3436 = vmatpush3.bf16.msra.mxu1 %v2511_v28 }
 0x7e6   : > { %v3977_v9 = vpop.eup %3976  ;;  %v2485_v40 = vadd.f32 %v5424_v60, %v2484_v59  ;;  %3437 = vmatprep.subr.bf16.mxu1 %v2520_v10  ;;  %v2522_v27 = vpack.c.bf16 %v3975_v30, %v3973_v58 }
 0x7e7   : > { %v3979_v62 = vpop.eup %3978 }
 0x7e8   : > { %v3981_v25 = vpop.eup %3980  ;;  %v2486_v35 = vadd.f32 %v5426_v23, %v2485_v40  ;;  %v2523_v7 = vpack.c.bf16 %v3979_v62, %v3977_v9  ;;  %v2584_v23 = vld [vmem:[%s4631_s15 + $0x60] sm:$0xff] }
 0x7e9   : > { %v3983_v53 = vpop.eup %3982  ;;  %3438 = vmatpush3.bf16.msra.mxu1 %v2512_v41 }
 0x7ea   : > { %v3985_v11 = vpop.eup %3984  ;;  %v2487_v45 = vadd.f32 %v5431_v63, %v2486_v35  ;;  %3439 = vmatprep.subr.bf16.mxu1 %v2521_v36  ;;  %v2524_v28 = vpack.c.bf16 %v3983_v53, %v3981_v25  ;;  %v2585_v63 = vld [vmem:[%s4631_s15 + $0x70] sm:$0xff] }
 0x7eb   : > { %v3987_v29 = vpop.eup %3986 }
 0x7ec   : > { %v2488_v51 = vadd.f32 %v3957_v56, %v2487_v45  ;;  %v2525_v20 = vpack.c.bf16 %v3987_v29, %v3985_v11 }
 0x7ed   : > { %3440 = vmatpush3.bf16.msra.mxu1 %v2513_v52  ;;  %v2602_v52 = vpop.trf.xlu0 }
 0x7ee   : > { %v2489_v16 = vadd.f32 %v3959_v19, %v2488_v51  ;;  %3441 = vmatprep.subr.bf16.mxu1 %v2522_v27 }
 0x7f0   : > { %v2490_v60 = vadd.f32 %v3961_v39, %v2489_v16 }
 0x7f1   : > { %3442 = vmatpush3.bf16.msra.mxu1 %v2514_v55  ;;  %v2130_v55 = vld [vmem:[#allocation2 + $0x158] sm:$0xff]  ;;  %v2603_v49 = vpop.trf.xlu0 }
 0x7f2   : > { %v2491_v21 = vadd.f32 %v3963_v8, %v2490_v60  ;;  %3443 = vmatprep.subr.bf16.mxu1 %v2523_v7 }
 0x7f4   : > { %v2492_v50 = vadd.f32 %v3965_v24, %v2491_v21  ;;  %v2618_v24 = vpop.trf.xlu1 }
 0x7f5   : > { %3444 = vmatpush3.bf16.msra.mxu1 %v2515_v22  ;;  %v2604_v19 = vpop.trf.xlu0 }
 0x7f6   : > { %v2493_v41 = vadd.f32 %v3967_v42, %v2492_v50  ;;  %3445 = vmatprep.subr.bf16.mxu1 %v2524_v28 }
 0x7f8   : > { %v2494_v47 = vadd.f32 %v3969_v26, %v2493_v41  ;;  %v2619_v54 = vpop.trf.xlu1 }
 0x7f9   : > { %3446 = vmatpush3.bf16.msra.mxu1 %v2516_v44  ;;  %v2129_v44 = vld [vmem:[#allocation2 + $0x150] sm:$0xff]  ;;  %v2605_v57 = vpop.trf.xlu0 }
 0x7fa   : > { %v2495_v61 = vadd.f32 %v3971_v18, %v2494_v47  ;;  %3447 = vmatprep.subr.bf16.mxu1 %v2525_v20 }
 0x7fc   : > { %v2496_v48 = vadd.f32 %v3973_v58, %v2495_v61  ;;  %v2620_v26 = vpop.trf.xlu1 }
 0x7fd   : > { %3448 = vmatpush3.bf16.msra.mxu1 %v2517_v17  ;;  %v2606_v14 = vpop.trf.xlu0 }
 0x7fe   : > { %v2497_v37 = vadd.f32 %v3975_v30, %v2496_v48  ;;  %3624 = vmatprep.subr.bf16.mxu1 %v2584_v23 }
 0x800   : > { %v2498_v56 = vadd.f32 %v3977_v9, %v2497_v37  ;;  %2559 = vmatmul.mubr.bf16.vlgmr.msra.gmra.mrb[40].mxu1 %v2127_v4  ;;  %v2621_v31 = vpop.trf.xlu1 }
 0x801   : > { %2566 = vmatprep.mubr.bf16.mxu1 %v2130_v55  ;;  %3625 = vmatpush3.bf16.msra.mxu1 %v2584_v23  ;;  %v2607_v8 = vpop.trf.xlu0 }
 0x802   : > { %v2499_v12 = vadd.f32 %v3979_v62, %v2498_v56  ;;  %3626 = vmatprep.subr.bf16.mxu1 %v2585_v63 }
 0x804   : > { %v2500_v22 = vadd.f32 %v3981_v25, %v2499_v12  ;;  %v2622_v10 = vpop.trf.xlu1 }
 0x805   : > { %3627 = vmatpush3.bf16.msra.mxu1 %v2585_v63  ;;  %v2608_v1 = vpop.trf.xlu0 }
 0x806   : > { %v2501_v43 = vadd.f32 %v3983_v53, %v2500_v22 }
 0x808   : > { %v2502_v39 = vadd.f32 %v3985_v11, %v2501_v43  ;;  %2567 = vmatmul.mubr.bf16.gmra.mrb[44].mxu1 %v2129_v44  ;;  %v2623_v18 = vpop.trf.xlu1 }
 0x809   : > { %3628 = vmatprep.mubr.msk.bf16.mxu1 %vm1236_vm2, %v2602_v52  ;;  %v2609_v42 = vpop.trf.xlu0 }
 0x80a   : > { %v2503_v17 = vadd.f32 %v3987_v29, %v2502_v39 }
 0x80c   : > { %v2624_v58 = vpop.trf.xlu1  ;;  %v2504_v36 = vrot.slane %v2503_v17, 4 }
 0x80e   : > { %v2505_v30 = vadd.f32 %v2504_v36, %v2503_v17 }
 0x810   : > { %3629 = vmatmul.mubr.msk.bf16.vlgmr.msra.gmra.mrb[48].mxu1 %vm1236_vm2, %v2603_v49  ;;  %v2625_v59 = vpop.trf.xlu1  ;;  %v2506_v9 = vrot.slane %v2505_v30, 2 }
 0x811   : > { %3632 = vmatprep.mubr.msk.bf16.mxu1 %vm1236_vm2, %v2604_v19 }
 0x812   : > { %v2507_v40 = vadd.f32 %v2506_v9, %v2505_v30  ;;  %v2591_v9 = vld [vmem:[#allocation2 + $0x168] sm:$0xff] }
 0x813   : > { %3021 = vmatprep.mubr.bf16.mxu0 %v2591_v9 }
 0x814   : > { %v2508_v27 = vrot.slane %v2507_v40, 1 }
 0x816   : > { %v2509_v62 = vadd.f32 %v2508_v27, %v2507_v40 }
 0x818   : > { %3633 = vmatmul.mubr.msk.bf16.gmra.mrb[52].mxu1 %vm1236_vm2, %v2605_v57  ;;  %3988 = vrcp.f32 %v2509_v62 }
 0x819   : > { %3636 = vmatprep.mubr.msk.bf16.mxu1 %vm1236_vm2, %v2606_v14 }
 0x820   : > { %3637 = vmatmul.mubr.msk.bf16.gmra.mrb[56].mxu1 %vm1236_vm2, %v2607_v8 }
 0x821   : > { %3640 = vmatprep.mubr.msk.bf16.mxu1 %vm1236_vm2, %v2608_v1 }
 0x822   : > { %v3989_v11 = vpop.eup %3988 }
 0x828   : > { %3641 = vmatmul.mubr.msk.bf16.gmra.mrb[60].mxu1 %vm1236_vm2, %v2609_v42 }
 0x829   : > { %3644 = vmatprep.mubr.msk.bf16.mxu1 %vm1236_vm2, %v2618_v24 }
 0x830   : > { %3645 = vmatmul.mubr.msk.bf16.gmra.mrb[64].mxu1 %vm1236_vm2, %v2619_v54 }
 0x831   : > { %3648 = vmatprep.mubr.msk.bf16.mxu1 %vm1236_vm2, %v2620_v26 }
 0x838   : > { %3649 = vmatmul.mubr.msk.bf16.gmra.mrb[68].mxu1 %vm1236_vm2, %v2621_v31 }
 0x839   : > { %3652 = vmatprep.mubr.msk.bf16.mxu1 %vm1236_vm2, %v2622_v10 }
 0x840   : > { %3653 = vmatmul.mubr.msk.bf16.gmra.mrb[72].mxu1 %vm1236_vm2, %v2623_v18 }
 0x841   : > { %3656 = vmatprep.mubr.msk.bf16.mxu1 %vm1236_vm2, %v2624_v58 }
 0x848   : > { %3657 = vmatmul.mubr.msk.bf16.gmra.mrb[76].mxu1 %vm1236_vm2, %v2625_v59 }
 0x8d3   : > { %v3449_v25 = vpop.f32.mrb[40].mxu1 }
 0x8d4   : > { %v3450_v35 = vpop.f32.mrb[41].mxu1 }
 0x8d5   : > { %v3451_v7 = vadd.f32 %v3450_v35, %v3449_v25  ;;  %v3452_v53 = vpop.f32.mrb[42].mxu1 }
 0x8d6   : > { %v3453_v45 = vpop.f32.mrb[43].mxu1 }
 0x8d7   : > { %v5488_v28 = vmul.f32 %v3989_v11, %v3451_v7  ;;  %v3454_v29 = vadd.f32 %v3453_v45, %v3452_v53 }
 0x8d9   : > { %v5490_v51 = vmul.f32 %v3989_v11, %v3454_v29 }
 0x8db   : > { %v3455_v16 = vpop.f32.mrb[44].mxu1  ;;  %v5851_v32 = vpack.c.bf16 %v5490_v51, %v5488_v28 }
 0x8dc   : > { %v3456_v60 = vpop.f32.mrb[45].mxu1 }
 0x8dd   : > { %v3457_v21 = vadd.f32 %v3456_v60, %v3455_v16  ;;  %v3458_v50 = vpop.f32.mrb[46].mxu1 }
 0x8de   : > { %v3459_v41 = vpop.f32.mrb[47].mxu1 }
 0x8df   : > { %v5494_v47 = vmul.f32 %v3989_v11, %v3457_v21  ;;  %v3460_v61 = vadd.f32 %v3459_v41, %v3458_v50 }
 0x8e1   : > { %v5496_v52 = vmul.f32 %v3989_v11, %v3460_v61 }
 0x8e3   : > { %v5500_v48 = vpop.f32.mrb[48].mxu1 }
 0x8e4   : > { %v5502_v4 = vpop.f32.mrb[49].mxu1 }
 0x8e5   : > { %v5504_v37 = vpop.f32.mrb[50].mxu1 }
 0x8e6   : > { %v5506_v55 = vpop.f32.mrb[51].mxu1 }
 0x8eb   : > { %v5508_v63 = vpop.f32.mrb[52].mxu1 }
 0x8ec   : > { %v2837_v56 = vmax.f32 %v5500_v48, %v5508_v63  ;;  %v5512_v49 = vpop.f32.mrb[53].mxu1 }
 0x8ed   : > { %v2835_v12 = vmax.f32 %v5502_v4, %v5512_v49  ;;  %v5516_v22 = vpop.f32.mrb[54].mxu1 }
 0x8ee   : > { %v2838_v44 = vmax.f32 %v5504_v37, %v5516_v22  ;;  %v5520_v43 = vpop.f32.mrb[55].mxu1 }
 0x8ef   : > { %v2836_v19 = vmax.f32 %v5506_v55, %v5520_v43 }
 0x8f3   : > { %v5524_v39 = vpop.f32.mrb[56].mxu1 }
 0x8f4   : > { %v2841_v17 = vmax.f32 %v2837_v56, %v5524_v39  ;;  %v5527_v57 = vpop.f32.mrb[57].mxu1 }
 0x8f5   : > { %v2839_v14 = vmax.f32 %v2835_v12, %v5527_v57  ;;  %v5530_v8 = vpop.f32.mrb[58].mxu1 }
 0x8f6   : > { %v2842_v24 = vmax.f32 %v2838_v44, %v5530_v8  ;;  %v5533_v1 = vpop.f32.mrb[59].mxu1 }
 0x8f7   : > { %v2840_v54 = vmax.f32 %v2836_v19, %v5533_v1 }
 0x8fb   : > { %v5536_v42 = vpop.f32.mrb[60].mxu1 }
 0x8fc   : > { %v2845_v26 = vmax.f32 %v2841_v17, %v5536_v42  ;;  %v5539_v31 = vpop.f32.mrb[61].mxu1 }
 0x8fd   : > { %v2843_v10 = vmax.f32 %v2839_v14, %v5539_v31  ;;  %v5542_v18 = vpop.f32.mrb[62].mxu1 }
 0x8fe   : > { %v2846_v58 = vmax.f32 %v2842_v24, %v5542_v18  ;;  %v5545_v59 = vpop.f32.mrb[63].mxu1 }
 0x8ff   : > { %v2844_v36 = vmax.f32 %v2840_v54, %v5545_v59 }
 0x903   : > { %v5548_v30 = vpop.f32.mrb[64].mxu1 }
 0x904   : > { %v2849_v40 = vmax.f32 %v2845_v26, %v5548_v30  ;;  %v5551_v27 = vpop.f32.mrb[65].mxu1 }
 0x905   : > { %v2847_v62 = vmax.f32 %v2843_v10, %v5551_v27  ;;  %v5554_v25 = vpop.f32.mrb[66].mxu1 }
 0x906   : > { %v2850_v35 = vmax.f32 %v2846_v58, %v5554_v25  ;;  %v5557_v7 = vpop.f32.mrb[67].mxu1 }
 0x907   : > { %v2848_v53 = vmax.f32 %v2844_v36, %v5557_v7 }
 0x90b   : > { %v5560_v11 = vpop.f32.mrb[68].mxu1 }
 0x90c   : > { %v2853_v45 = vmax.f32 %v2849_v40, %v5560_v11  ;;  %v5563_v29 = vpop.f32.mrb[69].mxu1 }
 0x90d   : > { %v2851_v16 = vmax.f32 %v2847_v62, %v5563_v29  ;;  %v5566_v60 = vpop.f32.mrb[70].mxu1 }
 0x90e   : > { %v2854_v21 = vmax.f32 %v2850_v35, %v5566_v60  ;;  %v5569_v50 = vpop.f32.mrb[71].mxu1 }
 0x90f   : > { %v2852_v41 = vmax.f32 %v2848_v53, %v5569_v50 }
 0x913   : > { %v5572_v61 = vpop.f32.mrb[72].mxu1 }
 0x914   : > { %v2857_v56 = vmax.f32 %v2853_v45, %v5572_v61  ;;  %v5575_v12 = vpop.f32.mrb[73].mxu1 }
 0x915   : > { %v2855_v44 = vmax.f32 %v2851_v16, %v5575_v12  ;;  %v5578_v19 = vpop.f32.mrb[74].mxu1 }
 0x916   : > { %v2858_v17 = vmax.f32 %v2854_v21, %v5578_v19  ;;  %v5581_v14 = vpop.f32.mrb[75].mxu1 }
 0x917   : > { %v2856_v24 = vmax.f32 %v2852_v41, %v5581_v14 }
 0x91b   : > { %v5584_v54 = vpop.f32.mrb[76].mxu1 }
 0x91c   : > { %v2861_v26 = vmax.f32 %v2857_v56, %v5584_v54  ;;  %v5587_v10 = vpop.f32.mrb[77].mxu1 }
 0x91d   : > { %v2859_v58 = vmax.f32 %v2855_v44, %v5587_v10  ;;  %v5590_v36 = vpop.f32.mrb[78].mxu1 }
 0x91e   : > { %v2862_v9 = vmax.f32 %v2858_v17, %v5590_v36  ;;  %v5593_v40 = vpop.f32.mrb[79].mxu1 }
 0x91f   : > { %v2860_v62 = vmax.f32 %v2856_v24, %v5593_v40 }
 0x920   : > { %v2864_v35 = vmax.f32 %v2861_v26, %v2862_v9 }
 0x921   : > { %v2863_v53 = vmax.f32 %v2859_v58, %v2860_v62 }
 0x923   : > { %v2865_v45 = vmax.f32 %v2863_v53, %v2864_v35 }
 0x925   : > { %v2866_v16 = vrot.slane %v2865_v45, 4 }
 0x927   : > { %v2867_v21 = vmax.f32 %v2865_v45, %v2866_v16 }
 0x929   : > { %v2868_v41 = vrot.slane %v2867_v21, 2 }
 0x92b   : > { %v2869_v23 = vmax.f32 %v2867_v21, %v2868_v41 }
 0x92d   : > { %v2870_v56 = vrot.slane %v2869_v23, 1 }
 0x92f   : > { %v5596_v20 = vmax.f32 %v2869_v23, %v2870_v56 }
 0x931   : > { %v2872_v44 = vsub.f32 %v5502_v4, %v5596_v20  ;;  %v2873_v17 = vsub.f32 %v5506_v55, %v5596_v20  ;;  %v2874_v13 = vsub.f32 %v5500_v48, %v5596_v20  ;;  %v2875_v24 = vsub.f32 %v5504_v37, %v5596_v20 }
 0x932   : > { %v2876_v26 = vsub.f32 %v5512_v49, %v5596_v20  ;;  %v2877_v58 = vsub.f32 %v5520_v43, %v5596_v20  ;;  %v2878_v23 = vsub.f32 %v5508_v63, %v5596_v20  ;;  %v2879_v4 = vsub.f32 %v5516_v22, %v5596_v20 }
 0x933   : > { %v2880_v55 = vsub.f32 %v5527_v57, %v5596_v20  ;;  %v2881_v48 = vsub.f32 %v5533_v1, %v5596_v20  ;;  %v2882_v37 = vsub.f32 %v5524_v39, %v5596_v20  ;;  %v2883_v49 = vsub.f32 %v5530_v8, %v5596_v20 }
 0x934   : > { %v2884_v43 = vsub.f32 %v5539_v31, %v5596_v20  ;;  %v2885_v63 = vsub.f32 %v5545_v59, %v5596_v20  ;;  %v2886_v22 = vsub.f32 %v5536_v42, %v5596_v20  ;;  %v2887_v57 = vsub.f32 %v5542_v18, %v5596_v20 }
 0x935   : > { %v2888_v1 = vsub.f32 %v5551_v27, %v5596_v20  ;;  %v2889_v39 = vsub.f32 %v5557_v7, %v5596_v20  ;;  %v2890_v8 = vsub.f32 %v5548_v30, %v5596_v20  ;;  %v2891_v31 = vsub.f32 %v5554_v25, %v5596_v20 }
 0x936   : > { %v2892_v59 = vsub.f32 %v5563_v29, %v5596_v20  ;;  %v2893_v42 = vsub.f32 %v5569_v50, %v5596_v20  ;;  %v2894_v18 = vsub.f32 %v5560_v11, %v5596_v20  ;;  %v2895_v27 = vsub.f32 %v5566_v60, %v5596_v20 }
 0x937   : > { %v2896_v7 = vsub.f32 %v5575_v12, %v5596_v20  ;;  %v2897_v30 = vsub.f32 %v5581_v14, %v5596_v20  ;;  %v2898_v25 = vsub.f32 %v5572_v61, %v5596_v20  ;;  %v2899_v29 = vsub.f32 %v5578_v19, %v5596_v20 }
 0x938   : > { %v2900_v50 = vsub.f32 %v5587_v10, %v5596_v20  ;;  %v2901_v11 = vsub.f32 %v5593_v40, %v5596_v20  ;;  %v2902_v60 = vsub.f32 %v5584_v54, %v5596_v20  ;;  %v2903_v12 = vsub.f32 %v5590_v36, %v5596_v20 }
 0x939   : > { %3990 = vpow2.f32 %v2872_v44 }
 0x93a   : > { %3992 = vpow2.f32 %v2873_v17 }
 0x93b   : > { %3994 = vpow2.f32 %v2874_v13 }
 0x93c   : > { %3996 = vpow2.f32 %v2875_v24 }
 0x93d   : > { %3998 = vpow2.f32 %v2876_v26 }
 0x93e   : > { %4000 = vpow2.f32 %v2877_v58 }
 0x93f   : > { %4002 = vpow2.f32 %v2878_v23 }
 0x940   : > { %4004 = vpow2.f32 %v2879_v4 }
 0x941   : > { %4006 = vpow2.f32 %v2880_v55 }
 0x942   : > { %4008 = vpow2.f32 %v2881_v48 }
 0x943   : > { %v5662_v61 = vpop.eup %3990  ;;  %4010 = vpow2.f32 %v2882_v37 }
 0x944   : > { %v5664_v14 = vpop.eup %3992  ;;  %4012 = vpow2.f32 %v2883_v49 }
 0x945   : > { %v5666_v9 = vpop.eup %3994  ;;  %4014 = vpow2.f32 %v2884_v43  ;;  %v2936_v62 = vadd.f32 %v5664_v14, %v5662_v61  ;;  %v2973_v13 = vpack.c.bf16 %v5664_v14, %v5662_v61 }
 0x946   : > { %v5672_v35 = vpop.eup %3996  ;;  %4016 = vpow2.f32 %v2885_v63 }
 0x947   : > { %v5674_v53 = vpop.eup %3998  ;;  %4018 = vpow2.f32 %v2886_v22  ;;  %v2937_v45 = vadd.f32 %v5666_v9, %v2936_v62  ;;  %v2974_v16 = vpack.c.bf16 %v5672_v35, %v5666_v9 }
 0x948   : > { %v5679_v21 = vpop.eup %4000  ;;  %4020 = vpow2.f32 %v2887_v57 }
 0x949   : > { %v5681_v41 = vpop.eup %4002  ;;  %4022 = vpow2.f32 %v2888_v1  ;;  %v2938_v56 = vadd.f32 %v5672_v35, %v2937_v45  ;;  %v2975_v44 = vpack.c.bf16 %v5679_v21, %v5674_v53 }
 0x94a   : > { %v5686_v17 = vpop.eup %4004  ;;  %4024 = vpow2.f32 %v2889_v39 }
 0x94b   : > { %v5688_v24 = vpop.eup %4006  ;;  %4026 = vpow2.f32 %v2890_v8  ;;  %v2939_v26 = vadd.f32 %v5674_v53, %v2938_v56  ;;  %v2976_v58 = vpack.c.bf16 %v5686_v17, %v5681_v41 }
 0x94c   : > { %v5693_v23 = vpop.eup %4008  ;;  %4028 = vpow2.f32 %v2891_v31 }
 0x94d   : > { %v5695_v4 = vpop.eup %4010  ;;  %4030 = vpow2.f32 %v2892_v59  ;;  %v2940_v55 = vadd.f32 %v5679_v21, %v2939_v26  ;;  %v2977_v48 = vpack.c.bf16 %v5693_v23, %v5688_v24 }
 0x94e   : > { %v5700_v37 = vpop.eup %4012  ;;  %4032 = vpow2.f32 %v2893_v42 }
 0x94f   : > { %v5702_v49 = vpop.eup %4014  ;;  %4034 = vpow2.f32 %v2894_v18  ;;  %v2941_v43 = vadd.f32 %v5681_v41, %v2940_v55  ;;  %v2978_v63 = vpack.c.bf16 %v5700_v37, %v5695_v4 }
 0x950   : > { %v5707_v22 = vpop.eup %4016  ;;  %4036 = vpow2.f32 %v2895_v27 }
 0x951   : > { %v5709_v57 = vpop.eup %4018  ;;  %4038 = vpow2.f32 %v2896_v7  ;;  %v2942_v1 = vadd.f32 %v5686_v17, %v2941_v43  ;;  %v2979_v39 = vpack.c.bf16 %v5707_v22, %v5702_v49 }
 0x952   : > { %v5714_v8 = vpop.eup %4020  ;;  %4040 = vpow2.f32 %v2897_v30 }
 0x953   : > { %v4023_v31 = vpop.eup %4022  ;;  %4042 = vpow2.f32 %v2898_v25  ;;  %v2943_v59 = vadd.f32 %v5688_v24, %v2942_v1  ;;  %v2980_v42 = vpack.c.bf16 %v5714_v8, %v5709_v57  ;;  %v2593_v24 = vld [vmem:[#allocation2 + $0x178] sm:$0xff] }
 0x954   : > { %v4025_v18 = vpop.eup %4024  ;;  %4044 = vpow2.f32 %v2899_v29 }
 0x955   : > { %v4027_v27 = vpop.eup %4026  ;;  %4046 = vpow2.f32 %v2900_v50  ;;  %v2944_v7 = vadd.f32 %v5693_v23, %v2943_v59  ;;  %v2981_v30 = vpack.c.bf16 %v4025_v18, %v4023_v31 }
 0x956   : > { %v4029_v61 = vpop.eup %4028  ;;  %4048 = vpow2.f32 %v2901_v11 }
 0x957   : > { %v4031_v25 = vpop.eup %4030  ;;  %4050 = vpow2.f32 %v2902_v60  ;;  %v2945_v19 = vadd.f32 %v5695_v4, %v2944_v7  ;;  %3479 = vmatprep.subr.bf16.mxu0 %v2981_v30  ;;  %v2982_v29 = vpack.c.bf16 %v4029_v61, %v4027_v27 }
 0x958   : > { %v4033_v14 = vpop.eup %4032  ;;  %4052 = vpow2.f32 %v2903_v12  ;;  %3480 = vmatpush3.bf16.msra.mxu0 %v2973_v13 }
 0x959   : > { %v4035_v10 = vpop.eup %4034  ;;  %v2946_v50 = vadd.f32 %v5700_v37, %v2945_v19  ;;  %3481 = vmatprep.subr.bf16.mxu0 %v2982_v29  ;;  %v2983_v40 = vpack.c.bf16 %v4033_v14, %v4031_v25  ;;  %v2592_v37 = vld [vmem:[#allocation2 + $0x170] sm:$0xff] }
 0x95a   : > { %v4037_v11 = vpop.eup %4036 }
 0x95b   : > { %v4039_v9 = vpop.eup %4038  ;;  %v2947_v54 = vadd.f32 %v5702_v49, %v2946_v50  ;;  %v2984_v60 = vpack.c.bf16 %v4037_v11, %v4035_v10 }
 0x95c   : > { %v4041_v62 = vpop.eup %4040  ;;  %3482 = vmatpush3.bf16.msra.mxu0 %v2974_v16 }
 0x95d   : > { %v4043_v35 = vpop.eup %4042  ;;  %v2948_v45 = vadd.f32 %v5707_v22, %v2947_v54  ;;  %3483 = vmatprep.subr.bf16.mxu0 %v2983_v40  ;;  %v2985_v56 = vpack.c.bf16 %v4041_v62, %v4039_v9 }
 0x95e   : > { %v4045_v20 = vpop.eup %4044 }
 0x95f   : > { %v4047_v36 = vpop.eup %4046  ;;  %v2949_v12 = vadd.f32 %v5709_v57, %v2948_v45  ;;  %v2986_v13 = vpack.c.bf16 %v4045_v20, %v4043_v35 }
 0x960   : > { %v4049_v26 = vpop.eup %4048  ;;  %3484 = vmatpush3.bf16.msra.mxu0 %v2975_v44 }
 0x961   : > { %v4051_v55 = vpop.eup %4050  ;;  %v2950_v49 = vadd.f32 %v5714_v8, %v2949_v12  ;;  %3485 = vmatprep.subr.bf16.mxu0 %v2984_v60  ;;  %v2987_v16 = vpack.c.bf16 %v4049_v26, %v4047_v36 }
 0x962   : > { %v4053_v43 = vpop.eup %4052 }
 0x963   : > { %v2951_v1 = vadd.f32 %v4023_v31, %v2950_v49  ;;  %v2988_v22 = vpack.c.bf16 %v4053_v43, %v4051_v55 }
 0x964   : > { %3486 = vmatpush3.bf16.msra.mxu0 %v2976_v58  ;;  %v2590_v58 = vld [vmem:[#allocation2 + $0x160] sm:$0xff] }
 0x965   : > { %v2952_v59 = vadd.f32 %v4025_v18, %v2951_v1  ;;  %3487 = vmatprep.subr.bf16.mxu0 %v2985_v56  ;;  %v4153_v18 = vmov 0.0  }
 0x967   : > { %v2953_v57 = vadd.f32 %v4027_v27, %v2952_v59 }
 0x968   : > { %3488 = vmatpush3.bf16.msra.mxu0 %v2977_v48 }
 0x969   : > { %v2954_v53 = vadd.f32 %v4029_v61, %v2953_v57  ;;  %3489 = vmatprep.subr.bf16.mxu0 %v2986_v13 }
 0x96b   : > { %v2955_v21 = vadd.f32 %v4031_v25, %v2954_v53 }
 0x96c   : > { %3490 = vmatpush3.bf16.msra.mxu0 %v2978_v63 }
 0x96d   : > { %v2956_v44 = vadd.f32 %v4033_v14, %v2955_v21  ;;  %3491 = vmatprep.subr.bf16.mxu0 %v2987_v16 }
 0x96f   : > { %v2957_v8 = vadd.f32 %v4035_v10, %v2956_v44 }
 0x970   : > { %3492 = vmatpush3.bf16.msra.mxu0 %v2979_v39 }
 0x971   : > { %v2958_v41 = vadd.f32 %v4037_v11, %v2957_v8  ;;  %3493 = vmatprep.subr.bf16.mxu0 %v2988_v22 }
 0x973   : > { %v2959_v17 = vadd.f32 %v4039_v9, %v2958_v41 }
 0x974   : > { %3494 = vmatpush3.bf16.msra.mxu0 %v2980_v42 }
 0x975   : > { %v2960_v31 = vadd.f32 %v4041_v62, %v2959_v17  ;;  %3660 = vmatprep.subr.bf16.mxu0 %v4153_v18  ;;  %v3047_v62 = vld [vmem:[%s5844_s3] sm:$0xf] }
 0x977   : > { %v2961_v23 = vadd.f32 %v4043_v35, %v2960_v31  ;;  %3022 = vmatmul.mubr.bf16.vlgmr.msra.gmra.mrb[72].mxu0 %v2590_v58  ;;  %v3060_v35 = vpop.permute.xlu0 %3059 }
 0x978   : > { %3661 = vmatpush3.bf16.msra.mxu0 %v1654_v0  ;;  %3029 = vmatprep.mubr.bf16.mxu0 %v2593_v24  ;;  %v5852_v0 = vpack.c.bf16 %v5496_v52, %v5494_v47 }
 0x979   : > { %v2962_v4 = vadd.f32 %v4045_v20, %v2961_v23  ;;  %3662 = vmatprep.subr.bf16.mxu0 %v4153_v18 }
 0x97b   : > { %v2963_v48 = vadd.f32 %v4047_v36, %v2962_v4 }
 0x97c   : > { %3663 = vmatpush3.bf16.msra.mxu0 %v1655_v6 }
 0x97d   : > { %v2964_v63 = vadd.f32 %v4049_v26, %v2963_v48  ;;  %3664 = vmatprep.subr.bf16.mxu0 %v4153_v18 }
 0x97f   : > { %v2965_v39 = vadd.f32 %v4051_v55, %v2964_v63  ;;  %3030 = vmatmul.mubr.bf16.gmra.mrb[76].mxu0 %v2592_v37 }
 0x980   : > { %3665 = vmatpush3.bf16.msra.mxu0 %v2117_v33  ;;  %3676 = vmatprep.mubr.msk.bf16.mxu0 %vm4154_vm3, %v4153_v18 }
 0x981   : > { %v2966_v42 = vadd.f32 %v4053_v43, %v2965_v39  ;;  %3666 = vmatprep.subr.bf16.mxu0 %v4153_v18 }
 0x983   : > { %v2967_v6 = vrot.slane %v2966_v42, 4 }
 0x984   : > { %3667 = vmatpush3.bf16.msra.mxu0 %v5850_v38 }
 0x985   : > { %3668 = vmatprep.subr.bf16.mxu0 %v4153_v18  ;;  %v2968_v34 = vadd.f32 %v2967_v6, %v2966_v42 }
 0x987   : > { %v2969_v15 = vrot.slane %v2968_v34, 2 }
 0x988   : > { %3669 = vmatpush3.bf16.msra.mxu0 %v5851_v32 }
 0x989   : > { %3670 = vmatprep.subr.bf16.mxu0 %v4153_v18  ;;  %v2970_v33 = vadd.f32 %v2969_v15, %v2968_v34 }
 0x98b   : > { %v2971_v2 = vrot.slane %v2970_v33, 1 }
 0x98c   : > { %3671 = vmatpush3.bf16.msra.mxu0 %v5852_v0 }
 0x98d   : > { %3672 = vmatprep.subr.bf16.mxu0 %v4153_v18  ;;  %v2972_v46 = vadd.f32 %v2971_v2, %v2970_v33 }
 0x98f   : > { %4054 = vrcp.f32 %v2972_v46 }
 0x999   : > { %v4055_v27 = vpop.eup %4054 }
 0xa4a   : > { %v3495_v28 = vpop.f32.mrb[72].mxu0 }
 0xa4b   : > { %v3496_v51 = vpop.f32.mrb[73].mxu0 }
 0xa4c   : > { %v3497_v47 = vadd.f32 %v3496_v51, %v3495_v28  ;;  %v3498_v52 = vpop.f32.mrb[74].mxu0 }
 0xa4d   : > { %v3499_v7 = vpop.f32.mrb[75].mxu0 }
 0xa4e   : > { %v3039_v30 = vmul.f32 %v4055_v27, %v3497_v47  ;;  %v3500_v61 = vadd.f32 %v3499_v7, %v3498_v52 }
 0xa50   : > { %v3040_v25 = vmul.f32 %v4055_v27, %v3500_v61 }
 0xa52   : > { %v3043_v19 = vpack.c.bf16 %v3040_v25, %v3039_v30  ;;  %v3501_v29 = vpop.f32.mrb[76].mxu0 }
 0xa53   : > { %v3502_v14 = vpop.f32.mrb[77].mxu0 }
 0xa54   : > { %v3503_v10 = vadd.f32 %v3502_v14, %v3501_v29  ;;  %v3504_v50 = vpop.f32.mrb[78].mxu0  ;;  %3673 = vmatpush3.bf16.msra.mxu0 %v3043_v19 }
 0xa55   : > { %v3505_v40 = vpop.f32.mrb[79].mxu0  ;;  %3674 = vmatprep.subr.bf16.mxu0 %v4153_v18 }
 0xa56   : > { %v3041_v11 = vmul.f32 %v4055_v27, %v3503_v10  ;;  %v3506_v9 = vadd.f32 %v3505_v40, %v3504_v50 }
 0xa58   : > { %v3042_v54 = vmul.f32 %v4055_v27, %v3506_v9 }
 0xa5a   : > { %v3044_v60 = vpack.c.bf16 %v3042_v54, %v3041_v11 }
 0xa5c   : > { %3675 = vmatpush3.bf16.msra.mxu0 %v3044_v60 }
 0xa5f   : > { %3677 = vmatmul.mubr.bf16.vlgmr.msra.gmra.mrb[80].mxu0 %v3047_v62 }
 0xb32   : > { %v3096_v45 = vpop.f32.mrb[80].mxu0 }
 0xb33   : > { %v3678_v56 = vpop.f32.mrb[81].mxu0  ;;  %v3097_v20 = vadd.f32 %v3096_v45, %v3060_v35 }
 0xb34   : > { %v3099_v36 = vpop.f32.mrb[82].mxu0 }
 0xb35   : > { %3102 = vst [vmem:[%s5854_s22] sm:$0xff] %v3097_v20  ;;  %v3679_v12 = vpop.f32.mrb[83].mxu0 }
 0xb36   : > { %4069 = shalt.err (!%p4066_p7)
}
 0xb37   : > { %s4070_s13 = scalar_lea.hbm %s5784_s16, 128  ;;  %s4074_s12 = scalar_lea.hbm %s5846_s5, 512 }
 0xb38   : > { %p4071_p9 = scmp.ne.s32.totalorder %s5784_s16, %s4070_s13  ;;  %p4075_p12 = scmp.lt.u32.totalorder %s5784_s16, %s5846_s5 }
 0xb39   : > { %p4076_p13 = scmp.lt.u32.totalorder %s4074_s12, %s4070_s13  ;;  %p4078_p1 = scmp.lt.u32.totalorder %s4070_s13, %s5784_s16 }
 0xb3a   : > { %p4072_p10 = pnand %p4071_p9, %p4238_p3 }
 0xb3b   : > { %p4077_p0 = por %p4076_p13, %p4075_p12 }
 0xb3c   : > { %p4073_p11 = pneg %p4072_p10 }
 0xb3d   : > { %p4079_p2 = por %p4078_p1, %p4077_p0 }
 0xb3f   : > { %p4080_p4 = pnand %p4079_p2, %p4073_p11 }
 0xb41   : > { %4083 = shalt.err (!%p4080_p4)
}
 0xb42   : > { %3688 = dma.vmem_to_hbm [thread:$0]  (%p4238_p3), %s5786_s14, 128, %s5784_s16, %s3104_s17  }
 0xb43 PF: > { %p3694_p5 = scmp.ge.s32.totalorder %s4150_s25, 2  ;;  %s3131_s21 = sand.u32 1, %s4122_s18  }
 0xb44   : > { %s3132_s26 = scalar_lea.sflag [#allocation5], %s3131_s21 }
 0xb45   : > { %p3691_p6 = pnand %p3694_p5, %p4247_p8 }
 0xb47   : > { %4117 = dma.done.wait (!%p3691_p6), %s3132_s26, 128  }
 0xb48   : > { %4119 = vsyncadd (!%p3691_p6), %s3132_s26, 4294967168  ;;  %s18_s25 = sadd.s32 1, %s4150_s25   ;;  %s5856_s18 = smov %s4126_s19 }
 0xb49   : > { %p15_p7 = scmp.ge.s32.totalorder %s18_s25, 6   ;;  %s5857_s19 = smov %s4130_s20 }
 0xb4a   : > { %s5858_s20 = smov %s4256_s11  ;;  %s5859_s21 = smov %s4142_s23 }
 0xb4b   : > { %s5860_s22 = smov %s4146_s24  ;;  %s5861_s23 = smov %s5864_s28 }
 0xb4c   : > { %s5862_s24 = smov %s5868_s29  ;;  %17 = sbr.rel (!%p15_p7) target bundleno = 5 (0x5), region = 80 }
 0xb53   :  { %3137 = vsyncpa [#allocation5], 1 }
 0xb54   :  { %3139 = vsyncpa [#allocation5 + $0x1], 1 }

</bundles_post_ra>
